<compile_context>
chip_gen: v5e
topology: v5e:2x2
jax: 0.10.0
libtpu: 0.0.40
codegen_flags: <defaults>
</compile_context>

<pallas_src>
import jax
import jax.numpy as jnp
from jax.experimental import pallas as pl
from jax.experimental.pallas import tpu as pltpu


# ----------------------------- Pallas kernels -------------------------------

def _make_stack_kernel(num_head, dim_head, has_context, project_context):
    """Fused [token-embed + depth x Layer + final LayerNorm] kernel body."""
    inner = num_head * dim_head

    def kernel(*refs):
        it = iter(refs)
        x_ref = next(it)                     # (N, in_dim) raw tokens (f32)
        tpw = next(it)                       # (in_dim, D) token_proj weight (bf16)
        tpb = next(it)                       # (1, D)      token_proj bias   (f32)
        pos = next(it)                       # (N, D)      position embedding (f32)
        ctx_ref = next(it) if has_context else None
        cpw = next(it) if (has_context and project_context) else None
        (n1g, n1b, wqkv1, wo1, bo1,
         n2g, n2b, wq2, wkv2, wo2, bo2,
         n3g, n3b, w1, b1, w2, b2, w3, b3,
         fng, fnb) = [next(it) for _ in range(21)]
        o_ref = next(it)                     # (N, D) final post-LN hidden (bf16)
        h_scr = next(it)                     # (N, D)     f32 residual stream (persists)
        attn_scr = next(it)                  # (N, inner) f32 per-head output slab
        ctx_scr = next(it) if (has_context and project_context) else None

        l = pl.program_id(1)
        n_layers = pl.num_programs(1)
        dt = jnp.bfloat16

        def ln(v, g_ref, b_ref):             # LayerNorm in f32
            mu = jnp.mean(v, axis=-1, keepdims=True)
            c = v - mu
            var = jnp.mean(c * c, axis=-1, keepdims=True)
            return c * jax.lax.rsqrt(var + 1e-5) * g_ref[...] + b_ref[...]

        def mha(q, k, v):
            # Per-head attention; each head's (Nq, dh) result goes straight into the
            # VMEM slab so nothing is concatenated and no f32 head output stays live.
            # Softmax scale is pre-folded into the query projection weights.
            for h in range(num_head):
                lo = h * dim_head
                qh = q[:, lo:lo + dim_head]
                kh = k[:, lo:lo + dim_head]
                vh = v[:, lo:lo + dim_head]
                s = jax.lax.dot_general(qh, kh, (((1,), (1,)), ((), ())),
                                        preferred_element_type=jnp.float32)
                m = jnp.max(s, axis=-1, keepdims=True)
                p = jnp.exp(s - m)
                # approx reciprocal -> EUP slot; ~1e-4 rel. error vs exact divide.
                p = p * pl.reciprocal(jnp.sum(p, axis=-1, keepdims=True), approx=True)
                attn_scr[:, lo:lo + dim_head] = jnp.dot(
                    p.astype(dt), vh, preferred_element_type=jnp.float32)
            return attn_scr[...]              # (Nq, inner) f32

        # ---- depth step 0: fused token embedding (+ context projection) ----
        @pl.when(l == 0)
        def _():
            emb = jnp.dot(x_ref[...].astype(dt), tpw[...],
                          preferred_element_type=jnp.float32)
            h_scr[...] = emb + tpb[...] + pos[...]
            if has_context and project_context:
                ctx_scr[...] = jnp.dot(ctx_ref[...], cpw[...],
                                       preferred_element_type=jnp.float32).astype(dt)

        x = h_scr[...]                        # (N, D) f32 residual stream

        # ---- self-attention: x = attn1(LN1(x)) + x (single fused QKV matmul) ----
        h1 = ln(x, n1g, n1b).astype(dt)
        qkv = jnp.dot(h1, wqkv1[...], preferred_element_type=jnp.float32)
        a1 = mha(qkv[:, :inner].astype(dt),
                 qkv[:, inner:2 * inner].astype(dt),
                 qkv[:, 2 * inner:].astype(dt))
        x = x + jnp.dot(a1.astype(dt), wo1[...],
                        preferred_element_type=jnp.float32) + bo1[...]

        # ---- cross-attention: x = attn2(LN2(x), context) + x ----
        h2 = ln(x, n2g, n2b).astype(dt)
        if has_context:
            kv_src = ctx_scr[...] if project_context else ctx_ref[...]
        else:
            kv_src = h2   # CrossAttention default: context = its own (normed) input
        q2 = jnp.dot(h2, wq2[...], preferred_element_type=jnp.float32).astype(dt)
        kv = jnp.dot(kv_src, wkv2[...], preferred_element_type=jnp.float32)
        a2 = mha(q2, kv[:, :inner].astype(dt), kv[:, inner:].astype(dt))
        x = x + jnp.dot(a2.astype(dt), wo2[...],
                        preferred_element_type=jnp.float32) + bo2[...]

        # ---- SwiGLU FFN: x = W3(silu(W1 h) * (W2 h)) + x ----
        h3 = ln(x, n3g, n3b).astype(dt)
        x1 = jnp.dot(h3, w1[...], preferred_element_type=jnp.float32) + b1[...]
        x2 = jnp.dot(h3, w2[...], preferred_element_type=jnp.float32) + b2[...]
        gate = jax.nn.silu(x1) * x2
        x = x + jnp.dot(gate.astype(dt), w3[...],
                        preferred_element_type=jnp.float32) + b3[...]

        h_scr[...] = x

        # ---- last layer: fused final LayerNorm; emit lane-dense bf16 hidden ----
        @pl.when(l == n_layers - 1)
        def _():
            o_ref[...] = ln(x, fng, fnb).astype(o_ref.dtype)

    return kernel


def _logits_kernel(h_ref, w_ref, b_ref, o_ref):
    # Pure MXU matmul + bias; the final LayerNorm was fused into the stacked kernel,
    # so nothing is recomputed per class tile.
    o_ref[...] = (jnp.dot(h_ref[...], w_ref[...], preferred_element_type=jnp.float32)
                  + b_ref[...]).astype(o_ref.dtype)


# ----------------------------- Pallas wrappers -------------------------------

def _pick_tile(n, target, aligns):
    """Largest tile <= target that divides n, preferring the given alignments."""
    if n <= target:
        return n
    for a in aligns:
        t = (target // a) * a
        while t >= a:
            if n % t == 0:
                return t
            t -= a
    # TODO(synk): pad the dimension (e.g. num_classes) to a 128-multiple instead of
    #             falling back to the full extent.
    return n


def transformer_stack(params, x, context, *, num_head, dim_head):
    """token_proj + pos + (context_proj) + depth x Layer + final LN, one pallas_call."""
    B, N, Din = x.shape
    D = params['token_proj_w'].shape[1]
    depth = params['attn1_qkv_w'].shape[0]
    inner = num_head * dim_head
    has_context = context is not None
    project_context = has_context and ('context_proj_w' in params)

    b_map = lambda b, l: (b, 0, 0)       # batch-indexed, constant over depth
    c3_map = lambda b, l: (0, 0, 0)
    c2_map = lambda b, l: (0, 0)
    stk_map = lambda b, l: (l, 0, 0)     # stacked per-layer weights

    in_specs, args, blk_bytes = [], [], []

    def add(arr, block_shape, index_map):
        in_specs.append(pl.BlockSpec(block_shape, index_map))
        args.append(arr)
        n = 1
        for s in block_shape:
            if s is not None:
                n *= int(s)
        blk_bytes.append(n * arr.dtype.itemsize)

    add(x, (None, N, Din), b_map)
    add(params['token_proj_w'], (Din, D), c2_map)
    add(params['token_proj_b'], (1, D), c2_map)
    add(params['pos_emb'], (None, N, D), c3_map)
    if has_context:
        _, M, Dc = context.shape
        add(context.astype(jnp.bfloat16), (None, M, Dc), b_map)
        if project_context:
            add(params['context_proj_w'], (Dc, D), c2_map)
    else:
        M = N   # unused (self-conditioning path reads the normed hidden instead)

    stacked_names = ('norm1_g', 'norm1_b', 'attn1_qkv_w', 'attn1_out_w', 'attn1_out_b',
                     'norm2_g', 'norm2_b', 'attn2_q_w', 'attn2_kv_w', 'attn2_out_w',
                     'attn2_out_b', 'norm3_g', 'norm3_b', 'ffn_w1', 'ffn_b1',
                     'ffn_w2', 'ffn_b2', 'ffn_w3', 'ffn_b3')
    for name in stacked_names:
        arr = params[name]
        add(arr, (None,) + arr.shape[1:], stk_map)
    add(params['norm_g'], (1, D), c2_map)
    add(params['norm_b'], (1, D), c2_map)

    scratch = [pltpu.VMEM((N, D), jnp.float32),        # residual stream
               pltpu.VMEM((N, inner), jnp.float32)]    # per-head attention slab
    if has_context and project_context:
        scratch.append(pltpu.VMEM((M, D), jnp.bfloat16))

    # Scoped-VMEM budget: per-step blocks (x2 for double buffering, x1.5 slack) +
    # scratch + output, clamped so it also fits v7x's 64 MiB physical VMEM.
    step_bytes = sum(blk_bytes)
    step_bytes += N * D * 2                                       # bf16 output block
    step_bytes += (N * D + N * inner) * 4
    step_bytes += M * D * 2 if (has_context and project_context) else 0
    vmem_limit = int(min(max(3 * step_bytes + (2 << 20), 32 << 20), 60 << 20))

    kernel = _make_stack_kernel(num_head, dim_head, has_context, project_context)
    return pl.pallas_call(
        kernel,
        out_shape=jax.ShapeDtypeStruct((B, N, D), jnp.bfloat16),
        grid=(B, depth),
        in_specs=in_specs,
        out_specs=pl.BlockSpec((None, N, D), b_map),
        scratch_shapes=scratch,
        compiler_params=pltpu.CompilerParams(
            dimension_semantics=("parallel", "arbitrary"),
            vmem_limit_bytes=vmem_limit),
    )(*args)


def logits_head(h2d, w, b):
    R, D = h2d.shape
    C = w.shape[1]
    tm = _pick_tile(R, 256, (256, 128, 16, 8))   # bf16 rows: prefer 16-aligned tiles
    tn = _pick_tile(C, 512, (256, 128))          # 256-aligned class tiles fill the MXU
    step_bytes = (tm * D + D * tn) * 2 + tn * 4 + tm * tn * 4
    vmem_limit = int(min(max(3 * step_bytes + (2 << 20), 32 << 20), 60 << 20))
    return pl.pallas_call(
        _logits_kernel,
        out_shape=jax.ShapeDtypeStruct((R, C), jnp.float32),
        grid=(R // tm, C // tn),
        in_specs=[pl.BlockSpec((tm, D), lambda i, j: (i, 0)),
                  pl.BlockSpec((D, tn), lambda i, j: (0, j)),
                  pl.BlockSpec((1, tn), lambda i, j: (0, j))],
        out_specs=pl.BlockSpec((tm, tn), lambda i, j: (i, j)),
        compiler_params=pltpu.CompilerParams(
            dimension_semantics=("parallel", "parallel"),
            vmem_limit_bytes=vmem_limit),
    )(h2d, w, b)


# ----------------------------- model forward ---------------------------------

def cond_transformer_forward(params, cfg, x, context=None):
    B, N, _ = x.shape
    h = transformer_stack(params, x, context,
                          num_head=cfg['num_head'], dim_head=cfg['dim_head'])
    logits = logits_head(h.reshape(B * N, cfg['dim']),
                         params['logits_w'], params['logits_b'])
    return logits.reshape(B, N, -1)


# ----------------------------- param init ------------------------------------

def init_params(key, cfg):
    in_dim, dim = cfg['in_dim'], cfg['dim']
    len_seq, num_classes = cfg['len_seq'], cfg['num_classes']
    num_head, dim_head = cfg['num_head'], cfg['dim_head']
    depth, mlp_dim, context_dim = cfg['depth'], cfg['mlp_dim'], cfg['context_dim']
    inner = num_head * dim_head
    hidden = ((int(mlp_dim * 2 / 3) + 7) // 8) * 8      # SwiGLUFFNFused sizing
    scale = float(dim_head) ** -0.5
    bf = jnp.bfloat16

    keys = iter(jax.random.split(key, 4096))

    def xavier(fan_in, fan_out):
        limit = (6.0 / (fan_in + fan_out)) ** 0.5
        return jax.random.uniform(next(keys), (fan_in, fan_out), jnp.float32,
                                  -limit, limit)

    params = {
        'token_proj_w': xavier(in_dim, dim).astype(bf),
        'token_proj_b': jnp.zeros((1, dim), jnp.float32),
        'pos_emb': jax.random.normal(next(keys), (1, len_seq, dim), jnp.float32)
                   * dim ** -0.5,
        'norm_g': jnp.ones((1, dim), jnp.float32),
        'norm_b': jnp.zeros((1, dim), jnp.float32),
        'logits_w': xavier(dim, num_classes).astype(bf),
        'logits_b': jnp.zeros((1, num_classes), jnp.float32),
    }
    if context_dim is not None and context_dim != dim:
        params['context_proj_w'] = xavier(context_dim, dim).astype(bf)

    def stack(make):
        return jnp.stack([make() for _ in range(depth)], axis=0)

    # Attention softmax scale (dim_head**-0.5) is folded into the query projections.
    params.update({
        'norm1_g': jnp.ones((depth, 1, dim), jnp.float32),
        'norm1_b': jnp.zeros((depth, 1, dim), jnp.float32),
        'attn1_qkv_w': stack(lambda: jnp.concatenate(
            [xavier(dim, inner) * scale, xavier(dim, inner), xavier(dim, inner)],
            axis=1)).astype(bf),
        'attn1_out_w': stack(lambda: xavier(inner, dim)).astype(bf),
        'attn1_out_b': jnp.zeros((depth, 1, dim), jnp.float32),
        'norm2_g': jnp.ones((depth, 1, dim), jnp.float32),
        'norm2_b': jnp.zeros((depth, 1, dim), jnp.float32),
        'attn2_q_w': stack(lambda: xavier(dim, inner) * scale).astype(bf),
        'attn2_kv_w': stack(lambda: jnp.concatenate(
            [xavier(dim, inner), xavier(dim, inner)], axis=1)).astype(bf),
        'attn2_out_w': stack(lambda: xavier(inner, dim)).astype(bf),
        'attn2_out_b': jnp.zeros((depth, 1, dim), jnp.float32),
        'norm3_g': jnp.ones((depth, 1, dim), jnp.float32),
        'norm3_b': jnp.zeros((depth, 1, dim), jnp.float32),
        'ffn_b1': jnp.zeros((depth, 1, hidden), jnp.float32),
        'ffn_b2': jnp.zeros((depth, 1, hidden), jnp.float32),
        'ffn_w3': stack(lambda: xavier(hidden, dim)).astype(bf),
        'ffn_b3': jnp.zeros((depth, 1, dim), jnp.float32),
    })
    # SwiGLUFFNFused w12 (xavier over the fused shape) split into w1 / w2 at init time.
    w12 = [xavier(dim, 2 * hidden) for _ in range(depth)]
    params['ffn_w1'] = jnp.stack([w[:, :hidden] for w in w12]).astype(bf)
    params['ffn_w2'] = jnp.stack([w[:, hidden:] for w in w12]).astype(bf)
    return params


# ----------------------------- main ------------------------------------------

if __name__ == "__main__":
    # Small but lane-dense dims: D = inner = hidden = 128, num_classes = 256 so every
    # matmul output is a full 128-lane multiple (per perf review).
    cfg = dict(in_dim=16, dim=128, len_seq=8, dim_head=32, mlp_dim=192,
               num_head=4, depth=2, context_dim=64, num_classes=256)

    key = jax.random.PRNGKey(0)
    k_param, k_x, k_ctx = jax.random.split(key, 3)
    params = init_params(k_param, cfg)

    B = 2
    x = jax.random.normal(k_x, (B, cfg['len_seq'], cfg['in_dim']), jnp.float32)
    context = jax.random.normal(k_ctx, (B, 8, cfg['context_dim']), jnp.float32)

    fwd = jax.jit(lambda p, xx, cc: cond_transformer_forward(p, cfg, xx, cc))
    logits = jax.block_until_ready(fwd(params, x, context))

    assert logits.shape == (B, cfg['len_seq'], cfg['num_classes']), logits.shape
    assert bool(jnp.all(jnp.isfinite(logits)))
    print("KERNEL_OK")
</pallas_src>

<mosaic_0001>
module attributes {stable_mosaic.version = 11 : i64} {
  func.func @_logits_kernel(%arg0: i32, %arg1: i32, %arg2: memref<16x128xbf16, #tpu.memory_space<vmem>>, %arg3: memref<128x256xbf16, #tpu.memory_space<vmem>>, %arg4: memref<1x256xf32, #tpu.memory_space<vmem>>, %arg5: memref<16x256xf32, #tpu.memory_space<vmem>>) attributes {dimension_semantics = [#tpu.dimension_semantics<parallel>, #tpu.dimension_semantics<parallel>], iteration_bounds = array<i64: 1, 1>, scalar_prefetch = 0 : i64, scratch_operands = 0 : i64, tpu.core_type = #tpu.core_type<tc>, window_params = [{transform_indices = @transform_0, window_bounds = array<i64: 16, 128>}, {transform_indices = @transform_1, window_bounds = array<i64: 128, 256>}, {transform_indices = @transform_2, window_bounds = array<i64: 1, 256>}, {transform_indices = @transform_3, window_bounds = array<i64: 16, 256>}]} {
    %c0 = arith.constant 0 : index
    %c0_0 = arith.constant 0 : index
    %0 = vector.load %arg2[%c0, %c0_0] : memref<16x128xbf16, #tpu.memory_space<vmem>>, vector<16x128xbf16>
    %c0_1 = arith.constant 0 : index
    %c0_2 = arith.constant 0 : index
    %1 = vector.load %arg3[%c0_1, %c0_2] : memref<128x256xbf16, #tpu.memory_space<vmem>>, vector<128x256xbf16>
    %cst = arith.constant dense<0.000000e+00> : vector<16x256xf32>
    %2 = tpu.matmul %0, %1, %cst {dimension_numbers = #tpu.dot_dimension_numbers<[1], [0], [0], [1], [0, 0, 1, 1], [], []>} : vector<16x128xbf16>, vector<128x256xbf16>, vector<16x256xf32> -> vector<16x256xf32>
    %c0_3 = arith.constant 0 : index
    %c0_4 = arith.constant 0 : index
    %3 = vector.load %arg4[%c0_3, %c0_4] : memref<1x256xf32, #tpu.memory_space<vmem>>, vector<1x256xf32>
    %4 = vector.broadcast %3 : vector<1x256xf32> to vector<16x256xf32>
    %5 = arith.addf %2, %4 : vector<16x256xf32>
    %c0_5 = arith.constant 0 : index
    %c0_6 = arith.constant 0 : index
    %6 = vector.load %arg5[%c0_5, %c0_6] : memref<16x256xf32, #tpu.memory_space<vmem>>, vector<16x256xf32>
    tpu.vector_store %arg5[%c0_5, %c0_6], %5 {strides = array<i32>} : memref<16x256xf32, #tpu.memory_space<vmem>>, vector<16x256xf32>,
    return
  }
  func.func @transform_0(%arg0: i32, %arg1: i32) -> (i32, i32) {
    %c0_i32 = arith.constant 0 : i32
    %c0_i32_0 = arith.constant 0 : i32
    return %arg0, %c0_i32 : i32, i32
  }
  func.func @transform_1(%arg0: i32, %arg1: i32) -> (i32, i32) {
    %c0_i32 = arith.constant 0 : i32
    %c0_i32_0 = arith.constant 0 : i32
    return %c0_i32, %arg1 : i32, i32
  }
  func.func @transform_2(%arg0: i32, %arg1: i32) -> (i32, i32) {
    %c0_i32 = arith.constant 0 : i32
    %c0_i32_0 = arith.constant 0 : i32
    return %c0_i32, %arg1 : i32, i32
  }
  func.func @transform_3(%arg0: i32, %arg1: i32) -> (i32, i32) {
    %c0_i32 = arith.constant 0 : i32
    return %arg0, %arg1 : i32, i32
  }
}

module attributes {stable_mosaic.version = 11 : i64} {
  func.func @kernel(%arg0: i32, %arg1: i32, %arg2: memref<1x8x16xf32, #tpu.memory_space<vmem>>, %arg3: memref<16x128xbf16, #tpu.memory_space<vmem>>, %arg4: memref<1x128xf32, #tpu.memory_space<vmem>>, %arg5: memref<1x8x128xf32, #tpu.memory_space<vmem>>, %arg6: memref<1x8x64xbf16, #tpu.memory_space<vmem>>, %arg7: memref<64x128xbf16, #tpu.memory_space<vmem>>, %arg8: memref<1x1x128xf32, #tpu.memory_space<vmem>>, %arg9: memref<1x1x128xf32, #tpu.memory_space<vmem>>, %arg10: memref<1x128x384xbf16, #tpu.memory_space<vmem>>, %arg11: memref<1x128x128xbf16, #tpu.memory_space<vmem>>, %arg12: memref<1x1x128xf32, #tpu.memory_space<vmem>>, %arg13: memref<1x1x128xf32, #tpu.memory_space<vmem>>, %arg14: memref<1x1x128xf32, #tpu.memory_space<vmem>>, %arg15: memref<1x128x128xbf16, #tpu.memory_space<vmem>>, %arg16: memref<1x128x256xbf16, #tpu.memory_space<vmem>>, %arg17: memref<1x128x128xbf16, #tpu.memory_space<vmem>>, %arg18: memref<1x1x128xf32, #tpu.memory_space<vmem>>, %arg19: memref<1x1x128xf32, #tpu.memory_space<vmem>>, %arg20: memref<1x1x128xf32, #tpu.memory_space<vmem>>, %arg21: memref<1x128x128xbf16, #tpu.memory_space<vmem>>, %arg22: memref<1x1x128xf32, #tpu.memory_space<vmem>>, %arg23: memref<1x128x128xbf16, #tpu.memory_space<vmem>>, %arg24: memref<1x1x128xf32, #tpu.memory_space<vmem>>, %arg25: memref<1x128x128xbf16, #tpu.memory_space<vmem>>, %arg26: memref<1x1x128xf32, #tpu.memory_space<vmem>>, %arg27: memref<1x128xf32, #tpu.memory_space<vmem>>, %arg28: memref<1x128xf32, #tpu.memory_space<vmem>>, %arg29: memref<1x8x128xbf16, #tpu.memory_space<vmem>>, %arg30: memref<8x128xf32, #tpu.memory_space<vmem>>, %arg31: memref<8x128xf32, #tpu.memory_space<vmem>>, %arg32: memref<8x128xbf16, #tpu.memory_space<vmem>>) attributes {dimension_semantics = [#tpu.dimension_semantics<parallel>, #tpu.dimension_semantics<arbitrary>], iteration_bounds = array<i64: 2, 2>, scalar_prefetch = 0 : i64, scratch_operands = 3 : i64, tpu.core_type = #tpu.core_type<tc>, window_params = [{transform_indices = @transform_0, window_bounds = array<i64: 1, 8, 16>}, {pipeline_mode = #tpu.pipeline_mode<synchronous>, transform_indices = @transform_1, window_bounds = array<i64: 16, 128>}, {pipeline_mode = #tpu.pipeline_mode<synchronous>, transform_indices = @transform_2, window_bounds = array<i64: 1, 128>}, {pipeline_mode = #tpu.pipeline_mode<synchronous>, transform_indices = @transform_3, window_bounds = array<i64: 1, 8, 128>}, {transform_indices = @transform_4, window_bounds = array<i64: 1, 8, 64>}, {pipeline_mode = #tpu.pipeline_mode<synchronous>, transform_indices = @transform_5, window_bounds = array<i64: 64, 128>}, {transform_indices = @transform_6, window_bounds = array<i64: 1, 1, 128>}, {transform_indices = @transform_7, window_bounds = array<i64: 1, 1, 128>}, {transform_indices = @transform_8, window_bounds = array<i64: 1, 128, 384>}, {transform_indices = @transform_9, window_bounds = array<i64: 1, 128, 128>}, {transform_indices = @transform_10, window_bounds = array<i64: 1, 1, 128>}, {transform_indices = @transform_11, window_bounds = array<i64: 1, 1, 128>}, {transform_indices = @transform_12, window_bounds = array<i64: 1, 1, 128>}, {transform_indices = @transform_13, window_bounds = array<i64: 1, 128, 128>}, {transform_indices = @transform_14, window_bounds = array<i64: 1, 128, 256>}, {transform_indices = @transform_15, window_bounds = array<i64: 1, 128, 128>}, {transform_indices = @transform_16, window_bounds = array<i64: 1, 1, 128>}, {transform_indices = @transform_17, window_bounds = array<i64: 1, 1, 128>}, {transform_indices = @transform_18, window_bounds = array<i64: 1, 1, 128>}, {transform_indices = @transform_19, window_bounds = array<i64: 1, 128, 128>}, {transform_indices = @transform_20, window_bounds = array<i64: 1, 1, 128>}, {transform_indices = @transform_21, window_bounds = array<i64: 1, 128, 128>}, {transform_indices = @transform_22, window_bounds = array<i64: 1, 1, 128>}, {transform_indices = @transform_23, window_bounds = array<i64: 1, 128, 128>}, {transform_indices = @transform_24, window_bounds = array<i64: 1, 1, 128>}, {pipeline_mode = #tpu.pipeline_mode<synchronous>, transform_indices = @transform_25, window_bounds = array<i64: 1, 128>}, {pipeline_mode = #tpu.pipeline_mode<synchronous>, transform_indices = @transform_26, window_bounds = array<i64: 1, 128>}, {transform_indices = @transform_27, window_bounds = array<i64: 1, 8, 128>}]} {
    %c0_i32 = arith.constant 0 : i32
    %0 = arith.cmpi eq, %arg1, %c0_i32 : i32
    %1 = arith.extui %0 : i1 to i32
    %c0_i32_0 = arith.constant 0 : i32
    %2 = arith.cmpi ne, %1, %c0_i32_0 : i32
    scf.if %2 {
      %c0_136 = arith.constant 0 : index
      %c0_137 = arith.constant 0 : index
      %c0_138 = arith.constant 0 : index
      %290 = vector.load %arg2[%c0_136, %c0_137, %c0_138] : memref<1x8x16xf32, #tpu.memory_space<vmem>>, vector<1x8x16xf32>
      %291 = vector.shape_cast %290 : vector<1x8x16xf32> to vector<8x16xf32>
      %292 = arith.truncf %291 : vector<8x16xf32> to vector<8x16xbf16>
      %c0_139 = arith.constant 0 : index
      %c0_140 = arith.constant 0 : index
      %293 = vector.load %arg3[%c0_139, %c0_140] : memref<16x128xbf16, #tpu.memory_space<vmem>>, vector<16x128xbf16>
      %cst_141 = arith.constant dense<0.000000e+00> : vector<8x128xf32>
      %294 = tpu.matmul %292, %293, %cst_141 {dimension_numbers = #tpu.dot_dimension_numbers<[1], [0], [0], [1], [0, 0, 1, 1], [], []>} : vector<8x16xbf16>, vector<16x128xbf16>, vector<8x128xf32> -> vector<8x128xf32>
      %c0_142 = arith.constant 0 : index
      %c0_143 = arith.constant 0 : index
      %295 = vector.load %arg4[%c0_142, %c0_143] : memref<1x128xf32, #tpu.memory_space<vmem>>, vector<1x128xf32>
      %296 = vector.broadcast %295 : vector<1x128xf32> to vector<8x128xf32>
      %297 = arith.addf %294, %296 : vector<8x128xf32>
      %c0_144 = arith.constant 0 : index
      %c0_145 = arith.constant 0 : index
      %c0_146 = arith.constant 0 : index
      %298 = vector.load %arg5[%c0_144, %c0_145, %c0_146] : memref<1x8x128xf32, #tpu.memory_space<vmem>>, vector<1x8x128xf32>
      %299 = vector.shape_cast %298 : vector<1x8x128xf32> to vector<8x128xf32>
      %300 = arith.addf %297, %299 : vector<8x128xf32>
      %c0_147 = arith.constant 0 : index
      %c0_148 = arith.constant 0 : index
      %301 = vector.load %arg30[%c0_147, %c0_148] : memref<8x128xf32, #tpu.memory_space<vmem>>, vector<8x128xf32>
      tpu.vector_store %arg30[%c0_147, %c0_148], %300 {strides = array<i32>} : memref<8x128xf32, #tpu.memory_space<vmem>>, vector<8x128xf32>,
      %c0_149 = arith.constant 0 : index
      %c0_150 = arith.constant 0 : index
      %c0_151 = arith.constant 0 : index
      %302 = vector.load %arg6[%c0_149, %c0_150, %c0_151] : memref<1x8x64xbf16, #tpu.memory_space<vmem>>, vector<1x8x64xbf16>
      %303 = vector.shape_cast %302 : vector<1x8x64xbf16> to vector<8x64xbf16>
      %c0_152 = arith.constant 0 : index
      %c0_153 = arith.constant 0 : index
      %304 = vector.load %arg7[%c0_152, %c0_153] : memref<64x128xbf16, #tpu.memory_space<vmem>>, vector<64x128xbf16>
      %cst_154 = arith.constant dense<0.000000e+00> : vector<8x128xf32>
      %305 = tpu.matmul %303, %304, %cst_154 {dimension_numbers = #tpu.dot_dimension_numbers<[1], [0], [0], [1], [0, 0, 1, 1], [], []>} : vector<8x64xbf16>, vector<64x128xbf16>, vector<8x128xf32> -> vector<8x128xf32>
      %306 = arith.truncf %305 : vector<8x128xf32> to vector<8x128xbf16>
      %c0_155 = arith.constant 0 : index
      %c0_156 = arith.constant 0 : index
      %307 = vector.load %arg32[%c0_155, %c0_156] : memref<8x128xbf16, #tpu.memory_space<vmem>>, vector<8x128xbf16>
      tpu.vector_store %arg32[%c0_155, %c0_156], %306 {strides = array<i32>} : memref<8x128xbf16, #tpu.memory_space<vmem>>, vector<8x128xbf16>,
    } else {
    }
    %c0 = arith.constant 0 : index
    %c0_1 = arith.constant 0 : index
    %3 = vector.load %arg30[%c0, %c0_1] : memref<8x128xf32, #tpu.memory_space<vmem>>, vector<8x128xf32>
    %cst = arith.constant dense<0.000000e+00> : vector<8xf32>
    %4 = vector.multi_reduction <add>, %3, %cst [1] : vector<8x128xf32> to vector<8xf32>
    %5 = vector.shape_cast %4 : vector<8xf32> to vector<8x1xf32>
    %cst_2 = arith.constant 1.280000e+02 : f32
    %6 = vector.broadcast %cst_2 : f32 to vector<8x1xf32>
    %7 = arith.divf %5, %6 : vector<8x1xf32>
    %8 = vector.broadcast %7 : vector<8x1xf32> to vector<8x128xf32>
    %9 = arith.subf %3, %8 : vector<8x128xf32>
    %10 = arith.mulf %9, %9 : vector<8x128xf32>
    %cst_3 = arith.constant dense<0.000000e+00> : vector<8xf32>
    %11 = vector.multi_reduction <add>, %10, %cst_3 [1] : vector<8x128xf32> to vector<8xf32>
    %12 = vector.shape_cast %11 : vector<8xf32> to vector<8x1xf32>
    %cst_4 = arith.constant 1.280000e+02 : f32
    %13 = vector.broadcast %cst_4 : f32 to vector<8x1xf32>
    %14 = arith.divf %12, %13 : vector<8x1xf32>
    %cst_5 = arith.constant 9.99999974E-6 : f32
    %15 = vector.broadcast %cst_5 : f32 to vector<8x1xf32>
    %16 = arith.addf %14, %15 : vector<8x1xf32>
    %17 = math.rsqrt %16 : vector<8x1xf32>
    %18 = vector.broadcast %17 : vector<8x1xf32> to vector<8x128xf32>
    %19 = arith.mulf %9, %18 : vector<8x128xf32>
    %c0_6 = arith.constant 0 : index
    %c0_7 = arith.constant 0 : index
    %c0_8 = arith.constant 0 : index
    %20 = vector.load %arg8[%c0_6, %c0_7, %c0_8] : memref<1x1x128xf32, #tpu.memory_space<vmem>>, vector<1x1x128xf32>
    %21 = vector.shape_cast %20 : vector<1x1x128xf32> to vector<1x128xf32>
    %22 = vector.broadcast %21 : vector<1x128xf32> to vector<8x128xf32>
    %23 = arith.mulf %19, %22 : vector<8x128xf32>
    %c0_9 = arith.constant 0 : index
    %c0_10 = arith.constant 0 : index
    %c0_11 = arith.constant 0 : index
    %24 = vector.load %arg9[%c0_9, %c0_10, %c0_11] : memref<1x1x128xf32, #tpu.memory_space<vmem>>, vector<1x1x128xf32>
    %25 = vector.shape_cast %24 : vector<1x1x128xf32> to vector<1x128xf32>
    %26 = vector.broadcast %25 : vector<1x128xf32> to vector<8x128xf32>
    %27 = arith.addf %23, %26 : vector<8x128xf32>
    %28 = arith.truncf %27 : vector<8x128xf32> to vector<8x128xbf16>
    %c0_12 = arith.constant 0 : index
    %c0_13 = arith.constant 0 : index
    %c0_14 = arith.constant 0 : index
    %29 = vector.load %arg10[%c0_12, %c0_13, %c0_14] : memref<1x128x384xbf16, #tpu.memory_space<vmem>>, vector<1x128x384xbf16>
    %30 = vector.shape_cast %29 : vector<1x128x384xbf16> to vector<128x384xbf16>
    %cst_15 = arith.constant dense<0.000000e+00> : vector<8x384xf32>
    %31 = tpu.matmul %28, %30, %cst_15 {dimension_numbers = #tpu.dot_dimension_numbers<[1], [0], [0], [1], [0, 0, 1, 1], [], []>} : vector<8x128xbf16>, vector<128x384xbf16>, vector<8x384xf32> -> vector<8x384xf32>
    %32 = vector.extract_strided_slice %31 {offsets = [0, 0], sizes = [8, 128], strides = [1, 1]} : vector<8x384xf32> to vector<8x128xf32>
    %33 = arith.truncf %32 : vector<8x128xf32> to vector<8x128xbf16>
    %34 = vector.extract_strided_slice %31 {offsets = [0, 128], sizes = [8, 128], strides = [1, 1]} : vector<8x384xf32> to vector<8x128xf32>
    %35 = arith.truncf %34 : vector<8x128xf32> to vector<8x128xbf16>
    %36 = vector.extract_strided_slice %31 {offsets = [0, 256], sizes = [8, 128], strides = [1, 1]} : vector<8x384xf32> to vector<8x128xf32>
    %37 = arith.truncf %36 : vector<8x128xf32> to vector<8x128xbf16>
    %38 = vector.extract_strided_slice %33 {offsets = [0, 0], sizes = [8, 32], strides = [1, 1]} : vector<8x128xbf16> to vector<8x32xbf16>
    %39 = vector.extract_strided_slice %35 {offsets = [0, 0], sizes = [8, 32], strides = [1, 1]} : vector<8x128xbf16> to vector<8x32xbf16>
    %40 = vector.extract_strided_slice %37 {offsets = [0, 0], sizes = [8, 32], strides = [1, 1]} : vector<8x128xbf16> to vector<8x32xbf16>
    %cst_16 = arith.constant dense<0.000000e+00> : vector<8x8xf32>
    %41 = tpu.matmul %38, %39, %cst_16 {dimension_numbers = #tpu.dot_dimension_numbers<[1], [1], [0], [0], [0, 0, 1, 0], [], []>} : vector<8x32xbf16>, vector<8x32xbf16>, vector<8x8xf32> -> vector<8x8xf32>
    %cst_17 = arith.constant dense<0xFF800000> : vector<8xf32>
    %42 = vector.multi_reduction <maximumf>, %41, %cst_17 [1] : vector<8x8xf32> to vector<8xf32>
    %43 = vector.shape_cast %42 : vector<8xf32> to vector<8x1xf32>
    %44 = vector.broadcast %43 : vector<8x1xf32> to vector<8x8xf32>
    %45 = arith.subf %41, %44 : vector<8x8xf32>
    %46 = math.exp %45 : vector<8x8xf32>
    %cst_18 = arith.constant dense<0.000000e+00> : vector<8xf32>
    %47 = vector.multi_reduction <add>, %46, %cst_18 [1] : vector<8x8xf32> to vector<8xf32>
    %48 = vector.shape_cast %47 : vector<8xf32> to vector<8x1xf32>
    %49 = tpu.reciprocal %48 {approx = true} : vector<8x1xf32> -> vector<8x1xf32>
    %50 = vector.broadcast %49 : vector<8x1xf32> to vector<8x8xf32>
    %51 = arith.mulf %46, %50 : vector<8x8xf32>
    %52 = arith.truncf %51 : vector<8x8xf32> to vector<8x8xbf16>
    %cst_19 = arith.constant dense<0.000000e+00> : vector<8x32xf32>
    %53 = tpu.matmul %52, %40, %cst_19 {dimension_numbers = #tpu.dot_dimension_numbers<[1], [0], [0], [1], [0, 0, 1, 1], [], []>} : vector<8x8xbf16>, vector<8x32xbf16>, vector<8x32xf32> -> vector<8x32xf32>
    %c0_20 = arith.constant 0 : index
    %c0_21 = arith.constant 0 : index
    %54 = vector.load %arg31[%c0_20, %c0_21] : memref<8x128xf32, #tpu.memory_space<vmem>>, vector<8x32xf32>
    tpu.vector_store %arg31[%c0_20, %c0_21], %53 {strides = array<i32>} : memref<8x128xf32, #tpu.memory_space<vmem>>, vector<8x32xf32>,
    %55 = vector.extract_strided_slice %33 {offsets = [0, 32], sizes = [8, 32], strides = [1, 1]} : vector<8x128xbf16> to vector<8x32xbf16>
    %56 = vector.extract_strided_slice %35 {offsets = [0, 32], sizes = [8, 32], strides = [1, 1]} : vector<8x128xbf16> to vector<8x32xbf16>
    %57 = vector.extract_strided_slice %37 {offsets = [0, 32], sizes = [8, 32], strides = [1, 1]} : vector<8x128xbf16> to vector<8x32xbf16>
    %cst_22 = arith.constant dense<0.000000e+00> : vector<8x8xf32>
    %58 = tpu.matmul %55, %56, %cst_22 {dimension_numbers = #tpu.dot_dimension_numbers<[1], [1], [0], [0], [0, 0, 1, 0], [], []>} : vector<8x32xbf16>, vector<8x32xbf16>, vector<8x8xf32> -> vector<8x8xf32>
    %cst_23 = arith.constant dense<0xFF800000> : vector<8xf32>
    %59 = vector.multi_reduction <maximumf>, %58, %cst_23 [1] : vector<8x8xf32> to vector<8xf32>
    %60 = vector.shape_cast %59 : vector<8xf32> to vector<8x1xf32>
    %61 = vector.broadcast %60 : vector<8x1xf32> to vector<8x8xf32>
    %62 = arith.subf %58, %61 : vector<8x8xf32>
    %63 = math.exp %62 : vector<8x8xf32>
    %cst_24 = arith.constant dense<0.000000e+00> : vector<8xf32>
    %64 = vector.multi_reduction <add>, %63, %cst_24 [1] : vector<8x8xf32> to vector<8xf32>
    %65 = vector.shape_cast %64 : vector<8xf32> to vector<8x1xf32>
    %66 = tpu.reciprocal %65 {approx = true} : vector<8x1xf32> -> vector<8x1xf32>
    %67 = vector.broadcast %66 : vector<8x1xf32> to vector<8x8xf32>
    %68 = arith.mulf %63, %67 : vector<8x8xf32>
    %69 = arith.truncf %68 : vector<8x8xf32> to vector<8x8xbf16>
    %cst_25 = arith.constant dense<0.000000e+00> : vector<8x32xf32>
    %70 = tpu.matmul %69, %57, %cst_25 {dimension_numbers = #tpu.dot_dimension_numbers<[1], [0], [0], [1], [0, 0, 1, 1], [], []>} : vector<8x8xbf16>, vector<8x32xbf16>, vector<8x32xf32> -> vector<8x32xf32>
    %c0_26 = arith.constant 0 : index
    %c32 = arith.constant 32 : index
    %71 = vector.load %arg31[%c0_26, %c32] : memref<8x128xf32, #tpu.memory_space<vmem>>, vector<8x32xf32>
    tpu.vector_store %arg31[%c0_26, %c32], %70 {strides = array<i32>} : memref<8x128xf32, #tpu.memory_space<vmem>>, vector<8x32xf32>,
    %72 = vector.extract_strided_slice %33 {offsets = [0, 64], sizes = [8, 32], strides = [1, 1]} : vector<8x128xbf16> to vector<8x32xbf16>
    %73 = vector.extract_strided_slice %35 {offsets = [0, 64], sizes = [8, 32], strides = [1, 1]} : vector<8x128xbf16> to vector<8x32xbf16>
    %74 = vector.extract_strided_slice %37 {offsets = [0, 64], sizes = [8, 32], strides = [1, 1]} : vector<8x128xbf16> to vector<8x32xbf16>
    %cst_27 = arith.constant dense<0.000000e+00> : vector<8x8xf32>
    %75 = tpu.matmul %72, %73, %cst_27 {dimension_numbers = #tpu.dot_dimension_numbers<[1], [1], [0], [0], [0, 0, 1, 0], [], []>} : vector<8x32xbf16>, vector<8x32xbf16>, vector<8x8xf32> -> vector<8x8xf32>
    %cst_28 = arith.constant dense<0xFF800000> : vector<8xf32>
    %76 = vector.multi_reduction <maximumf>, %75, %cst_28 [1] : vector<8x8xf32> to vector<8xf32>
    %77 = vector.shape_cast %76 : vector<8xf32> to vector<8x1xf32>
    %78 = vector.broadcast %77 : vector<8x1xf32> to vector<8x8xf32>
    %79 = arith.subf %75, %78 : vector<8x8xf32>
    %80 = math.exp %79 : vector<8x8xf32>
    %cst_29 = arith.constant dense<0.000000e+00> : vector<8xf32>
    %81 = vector.multi_reduction <add>, %80, %cst_29 [1] : vector<8x8xf32> to vector<8xf32>
    %82 = vector.shape_cast %81 : vector<8xf32> to vector<8x1xf32>
    %83 = tpu.reciprocal %82 {approx = true} : vector<8x1xf32> -> vector<8x1xf32>
    %84 = vector.broadcast %83 : vector<8x1xf32> to vector<8x8xf32>
    %85 = arith.mulf %80, %84 : vector<8x8xf32>
    %86 = arith.truncf %85 : vector<8x8xf32> to vector<8x8xbf16>
    %cst_30 = arith.constant dense<0.000000e+00> : vector<8x32xf32>
    %87 = tpu.matmul %86, %74, %cst_30 {dimension_numbers = #tpu.dot_dimension_numbers<[1], [0], [0], [1], [0, 0, 1, 1], [], []>} : vector<8x8xbf16>, vector<8x32xbf16>, vector<8x32xf32> -> vector<8x32xf32>
    %c0_31 = arith.constant 0 : index
    %c64 = arith.constant 64 : index
    %88 = vector.load %arg31[%c0_31, %c64] : memref<8x128xf32, #tpu.memory_space<vmem>>, vector<8x32xf32>
    tpu.vector_store %arg31[%c0_31, %c64], %87 {strides = array<i32>} : memref<8x128xf32, #tpu.memory_space<vmem>>, vector<8x32xf32>,
    %89 = vector.extract_strided_slice %33 {offsets = [0, 96], sizes = [8, 32], strides = [1, 1]} : vector<8x128xbf16> to vector<8x32xbf16>
    %90 = vector.extract_strided_slice %35 {offsets = [0, 96], sizes = [8, 32], strides = [1, 1]} : vector<8x128xbf16> to vector<8x32xbf16>
    %91 = vector.extract_strided_slice %37 {offsets = [0, 96], sizes = [8, 32], strides = [1, 1]} : vector<8x128xbf16> to vector<8x32xbf16>
    %cst_32 = arith.constant dense<0.000000e+00> : vector<8x8xf32>
    %92 = tpu.matmul %89, %90, %cst_32 {dimension_numbers = #tpu.dot_dimension_numbers<[1], [1], [0], [0], [0, 0, 1, 0], [], []>} : vector<8x32xbf16>, vector<8x32xbf16>, vector<8x8xf32> -> vector<8x8xf32>
    %cst_33 = arith.constant dense<0xFF800000> : vector<8xf32>
    %93 = vector.multi_reduction <maximumf>, %92, %cst_33 [1] : vector<8x8xf32> to vector<8xf32>
    %94 = vector.shape_cast %93 : vector<8xf32> to vector<8x1xf32>
    %95 = vector.broadcast %94 : vector<8x1xf32> to vector<8x8xf32>
    %96 = arith.subf %92, %95 : vector<8x8xf32>
    %97 = math.exp %96 : vector<8x8xf32>
    %cst_34 = arith.constant dense<0.000000e+00> : vector<8xf32>
    %98 = vector.multi_reduction <add>, %97, %cst_34 [1] : vector<8x8xf32> to vector<8xf32>
    %99 = vector.shape_cast %98 : vector<8xf32> to vector<8x1xf32>
    %100 = tpu.reciprocal %99 {approx = true} : vector<8x1xf32> -> vector<8x1xf32>
    %101 = vector.broadcast %100 : vector<8x1xf32> to vector<8x8xf32>
    %102 = arith.mulf %97, %101 : vector<8x8xf32>
    %103 = arith.truncf %102 : vector<8x8xf32> to vector<8x8xbf16>
    %cst_35 = arith.constant dense<0.000000e+00> : vector<8x32xf32>
    %104 = tpu.matmul %103, %91, %cst_35 {dimension_numbers = #tpu.dot_dimension_numbers<[1], [0], [0], [1], [0, 0, 1, 1], [], []>} : vector<8x8xbf16>, vector<8x32xbf16>, vector<8x32xf32> -> vector<8x32xf32>
    %c0_36 = arith.constant 0 : index
    %c96 = arith.constant 96 : index
    %105 = vector.load %arg31[%c0_36, %c96] : memref<8x128xf32, #tpu.memory_space<vmem>>, vector<8x32xf32>
    tpu.vector_store %arg31[%c0_36, %c96], %104 {strides = array<i32>} : memref<8x128xf32, #tpu.memory_space<vmem>>, vector<8x32xf32>,
    %c0_37 = arith.constant 0 : index
    %c0_38 = arith.constant 0 : index
    %106 = vector.load %arg31[%c0_37, %c0_38] : memref<8x128xf32, #tpu.memory_space<vmem>>, vector<8x128xf32>
    %107 = arith.truncf %106 : vector<8x128xf32> to vector<8x128xbf16>
    %c0_39 = arith.constant 0 : index
    %c0_40 = arith.constant 0 : index
    %c0_41 = arith.constant 0 : index
    %108 = vector.load %arg11[%c0_39, %c0_40, %c0_41] : memref<1x128x128xbf16, #tpu.memory_space<vmem>>, vector<1x128x128xbf16>
    %109 = vector.shape_cast %108 : vector<1x128x128xbf16> to vector<128x128xbf16>
    %cst_42 = arith.constant dense<0.000000e+00> : vector<8x128xf32>
    %110 = tpu.matmul %107, %109, %cst_42 {dimension_numbers = #tpu.dot_dimension_numbers<[1], [0], [0], [1], [0, 0, 1, 1], [], []>} : vector<8x128xbf16>, vector<128x128xbf16>, vector<8x128xf32> -> vector<8x128xf32>
    %111 = arith.addf %3, %110 : vector<8x128xf32>
    %c0_43 = arith.constant 0 : index
    %c0_44 = arith.constant 0 : index
    %c0_45 = arith.constant 0 : index
    %112 = vector.load %arg12[%c0_43, %c0_44, %c0_45] : memref<1x1x128xf32, #tpu.memory_space<vmem>>, vector<1x1x128xf32>
    %113 = vector.shape_cast %112 : vector<1x1x128xf32> to vector<1x128xf32>
    %114 = vector.broadcast %113 : vector<1x128xf32> to vector<8x128xf32>
    %115 = arith.addf %111, %114 : vector<8x128xf32>
    %cst_46 = arith.constant dense<0.000000e+00> : vector<8xf32>
    %116 = vector.multi_reduction <add>, %115, %cst_46 [1] : vector<8x128xf32> to vector<8xf32>
    %117 = vector.shape_cast %116 : vector<8xf32> to vector<8x1xf32>
    %cst_47 = arith.constant 1.280000e+02 : f32
    %118 = vector.broadcast %cst_47 : f32 to vector<8x1xf32>
    %119 = arith.divf %117, %118 : vector<8x1xf32>
    %120 = vector.broadcast %119 : vector<8x1xf32> to vector<8x128xf32>
    %121 = arith.subf %115, %120 : vector<8x128xf32>
    %122 = arith.mulf %121, %121 : vector<8x128xf32>
    %cst_48 = arith.constant dense<0.000000e+00> : vector<8xf32>
    %123 = vector.multi_reduction <add>, %122, %cst_48 [1] : vector<8x128xf32> to vector<8xf32>
    %124 = vector.shape_cast %123 : vector<8xf32> to vector<8x1xf32>
    %cst_49 = arith.constant 1.280000e+02 : f32
    %125 = vector.broadcast %cst_49 : f32 to vector<8x1xf32>
    %126 = arith.divf %124, %125 : vector<8x1xf32>
    %cst_50 = arith.constant 9.99999974E-6 : f32
    %127 = vector.broadcast %cst_50 : f32 to vector<8x1xf32>
    %128 = arith.addf %126, %127 : vector<8x1xf32>
    %129 = math.rsqrt %128 : vector<8x1xf32>
    %130 = vector.broadcast %129 : vector<8x1xf32> to vector<8x128xf32>
    %131 = arith.mulf %121, %130 : vector<8x128xf32>
    %c0_51 = arith.constant 0 : index
    %c0_52 = arith.constant 0 : index
    %c0_53 = arith.constant 0 : index
    %132 = vector.load %arg13[%c0_51, %c0_52, %c0_53] : memref<1x1x128xf32, #tpu.memory_space<vmem>>, vector<1x1x128xf32>
    %133 = vector.shape_cast %132 : vector<1x1x128xf32> to vector<1x128xf32>
    %134 = vector.broadcast %133 : vector<1x128xf32> to vector<8x128xf32>
    %135 = arith.mulf %131, %134 : vector<8x128xf32>
    %c0_54 = arith.constant 0 : index
    %c0_55 = arith.constant 0 : index
    %c0_56 = arith.constant 0 : index
    %136 = vector.load %arg14[%c0_54, %c0_55, %c0_56] : memref<1x1x128xf32, #tpu.memory_space<vmem>>, vector<1x1x128xf32>
    %137 = vector.shape_cast %136 : vector<1x1x128xf32> to vector<1x128xf32>
    %138 = vector.broadcast %137 : vector<1x128xf32> to vector<8x128xf32>
    %139 = arith.addf %135, %138 : vector<8x128xf32>
    %140 = arith.truncf %139 : vector<8x128xf32> to vector<8x128xbf16>
    %c0_57 = arith.constant 0 : index
    %c0_58 = arith.constant 0 : index
    %141 = vector.load %arg32[%c0_57, %c0_58] : memref<8x128xbf16, #tpu.memory_space<vmem>>, vector<8x128xbf16>
    %c0_59 = arith.constant 0 : index
    %c0_60 = arith.constant 0 : index
    %c0_61 = arith.constant 0 : index
    %142 = vector.load %arg15[%c0_59, %c0_60, %c0_61] : memref<1x128x128xbf16, #tpu.memory_space<vmem>>, vector<1x128x128xbf16>
    %143 = vector.shape_cast %142 : vector<1x128x128xbf16> to vector<128x128xbf16>
    %cst_62 = arith.constant dense<0.000000e+00> : vector<8x128xf32>
    %144 = tpu.matmul %140, %143, %cst_62 {dimension_numbers = #tpu.dot_dimension_numbers<[1], [0], [0], [1], [0, 0, 1, 1], [], []>} : vector<8x128xbf16>, vector<128x128xbf16>, vector<8x128xf32> -> vector<8x128xf32>
    %145 = arith.truncf %144 : vector<8x128xf32> to vector<8x128xbf16>
    %c0_63 = arith.constant 0 : index
    %c0_64 = arith.constant 0 : index
    %c0_65 = arith.constant 0 : index
    %146 = vector.load %arg16[%c0_63, %c0_64, %c0_65] : memref<1x128x256xbf16, #tpu.memory_space<vmem>>, vector<1x128x256xbf16>
    %147 = vector.shape_cast %146 : vector<1x128x256xbf16> to vector<128x256xbf16>
    %cst_66 = arith.constant dense<0.000000e+00> : vector<8x256xf32>
    %148 = tpu.matmul %141, %147, %cst_66 {dimension_numbers = #tpu.dot_dimension_numbers<[1], [0], [0], [1], [0, 0, 1, 1], [], []>} : vector<8x128xbf16>, vector<128x256xbf16>, vector<8x256xf32> -> vector<8x256xf32>
    %149 = vector.extract_strided_slice %148 {offsets = [0, 0], sizes = [8, 128], strides = [1, 1]} : vector<8x256xf32> to vector<8x128xf32>
    %150 = arith.truncf %149 : vector<8x128xf32> to vector<8x128xbf16>
    %151 = vector.extract_strided_slice %148 {offsets = [0, 128], sizes = [8, 128], strides = [1, 1]} : vector<8x256xf32> to vector<8x128xf32>
    %152 = arith.truncf %151 : vector<8x128xf32> to vector<8x128xbf16>
    %153 = vector.extract_strided_slice %145 {offsets = [0, 0], sizes = [8, 32], strides = [1, 1]} : vector<8x128xbf16> to vector<8x32xbf16>
    %154 = vector.extract_strided_slice %150 {offsets = [0, 0], sizes = [8, 32], strides = [1, 1]} : vector<8x128xbf16> to vector<8x32xbf16>
    %155 = vector.extract_strided_slice %152 {offsets = [0, 0], sizes = [8, 32], strides = [1, 1]} : vector<8x128xbf16> to vector<8x32xbf16>
    %cst_67 = arith.constant dense<0.000000e+00> : vector<8x8xf32>
    %156 = tpu.matmul %153, %154, %cst_67 {dimension_numbers = #tpu.dot_dimension_numbers<[1], [1], [0], [0], [0, 0, 1, 0], [], []>} : vector<8x32xbf16>, vector<8x32xbf16>, vector<8x8xf32> -> vector<8x8xf32>
    %cst_68 = arith.constant dense<0xFF800000> : vector<8xf32>
    %157 = vector.multi_reduction <maximumf>, %156, %cst_68 [1] : vector<8x8xf32> to vector<8xf32>
    %158 = vector.shape_cast %157 : vector<8xf32> to vector<8x1xf32>
    %159 = vector.broadcast %158 : vector<8x1xf32> to vector<8x8xf32>
    %160 = arith.subf %156, %159 : vector<8x8xf32>
    %161 = math.exp %160 : vector<8x8xf32>
    %cst_69 = arith.constant dense<0.000000e+00> : vector<8xf32>
    %162 = vector.multi_reduction <add>, %161, %cst_69 [1] : vector<8x8xf32> to vector<8xf32>
    %163 = vector.shape_cast %162 : vector<8xf32> to vector<8x1xf32>
    %164 = tpu.reciprocal %163 {approx = true} : vector<8x1xf32> -> vector<8x1xf32>
    %165 = vector.broadcast %164 : vector<8x1xf32> to vector<8x8xf32>
    %166 = arith.mulf %161, %165 : vector<8x8xf32>
    %167 = arith.truncf %166 : vector<8x8xf32> to vector<8x8xbf16>
    %cst_70 = arith.constant dense<0.000000e+00> : vector<8x32xf32>
    %168 = tpu.matmul %167, %155, %cst_70 {dimension_numbers = #tpu.dot_dimension_numbers<[1], [0], [0], [1], [0, 0, 1, 1], [], []>} : vector<8x8xbf16>, vector<8x32xbf16>, vector<8x32xf32> -> vector<8x32xf32>
    %c0_71 = arith.constant 0 : index
    %c0_72 = arith.constant 0 : index
    %169 = vector.load %arg31[%c0_71, %c0_72] : memref<8x128xf32, #tpu.memory_space<vmem>>, vector<8x32xf32>
    tpu.vector_store %arg31[%c0_71, %c0_72], %168 {strides = array<i32>} : memref<8x128xf32, #tpu.memory_space<vmem>>, vector<8x32xf32>,
    %170 = vector.extract_strided_slice %145 {offsets = [0, 32], sizes = [8, 32], strides = [1, 1]} : vector<8x128xbf16> to vector<8x32xbf16>
    %171 = vector.extract_strided_slice %150 {offsets = [0, 32], sizes = [8, 32], strides = [1, 1]} : vector<8x128xbf16> to vector<8x32xbf16>
    %172 = vector.extract_strided_slice %152 {offsets = [0, 32], sizes = [8, 32], strides = [1, 1]} : vector<8x128xbf16> to vector<8x32xbf16>
    %cst_73 = arith.constant dense<0.000000e+00> : vector<8x8xf32>
    %173 = tpu.matmul %170, %171, %cst_73 {dimension_numbers = #tpu.dot_dimension_numbers<[1], [1], [0], [0], [0, 0, 1, 0], [], []>} : vector<8x32xbf16>, vector<8x32xbf16>, vector<8x8xf32> -> vector<8x8xf32>
    %cst_74 = arith.constant dense<0xFF800000> : vector<8xf32>
    %174 = vector.multi_reduction <maximumf>, %173, %cst_74 [1] : vector<8x8xf32> to vector<8xf32>
    %175 = vector.shape_cast %174 : vector<8xf32> to vector<8x1xf32>
    %176 = vector.broadcast %175 : vector<8x1xf32> to vector<8x8xf32>
    %177 = arith.subf %173, %176 : vector<8x8xf32>
    %178 = math.exp %177 : vector<8x8xf32>
    %cst_75 = arith.constant dense<0.000000e+00> : vector<8xf32>
    %179 = vector.multi_reduction <add>, %178, %cst_75 [1] : vector<8x8xf32> to vector<8xf32>
    %180 = vector.shape_cast %179 : vector<8xf32> to vector<8x1xf32>
    %181 = tpu.reciprocal %180 {approx = true} : vector<8x1xf32> -> vector<8x1xf32>
    %182 = vector.broadcast %181 : vector<8x1xf32> to vector<8x8xf32>
    %183 = arith.mulf %178, %182 : vector<8x8xf32>
    %184 = arith.truncf %183 : vector<8x8xf32> to vector<8x8xbf16>
    %cst_76 = arith.constant dense<0.000000e+00> : vector<8x32xf32>
    %185 = tpu.matmul %184, %172, %cst_76 {dimension_numbers = #tpu.dot_dimension_numbers<[1], [0], [0], [1], [0, 0, 1, 1], [], []>} : vector<8x8xbf16>, vector<8x32xbf16>, vector<8x32xf32> -> vector<8x32xf32>
    %c0_77 = arith.constant 0 : index
    %c32_78 = arith.constant 32 : index
    %186 = vector.load %arg31[%c0_77, %c32_78] : memref<8x128xf32, #tpu.memory_space<vmem>>, vector<8x32xf32>
    tpu.vector_store %arg31[%c0_77, %c32_78], %185 {strides = array<i32>} : memref<8x128xf32, #tpu.memory_space<vmem>>, vector<8x32xf32>,
    %187 = vector.extract_strided_slice %145 {offsets = [0, 64], sizes = [8, 32], strides = [1, 1]} : vector<8x128xbf16> to vector<8x32xbf16>
    %188 = vector.extract_strided_slice %150 {offsets = [0, 64], sizes = [8, 32], strides = [1, 1]} : vector<8x128xbf16> to vector<8x32xbf16>
    %189 = vector.extract_strided_slice %152 {offsets = [0, 64], sizes = [8, 32], strides = [1, 1]} : vector<8x128xbf16> to vector<8x32xbf16>
    %cst_79 = arith.constant dense<0.000000e+00> : vector<8x8xf32>
    %190 = tpu.matmul %187, %188, %cst_79 {dimension_numbers = #tpu.dot_dimension_numbers<[1], [1], [0], [0], [0, 0, 1, 0], [], []>} : vector<8x32xbf16>, vector<8x32xbf16>, vector<8x8xf32> -> vector<8x8xf32>
    %cst_80 = arith.constant dense<0xFF800000> : vector<8xf32>
    %191 = vector.multi_reduction <maximumf>, %190, %cst_80 [1] : vector<8x8xf32> to vector<8xf32>
    %192 = vector.shape_cast %191 : vector<8xf32> to vector<8x1xf32>
    %193 = vector.broadcast %192 : vector<8x1xf32> to vector<8x8xf32>
    %194 = arith.subf %190, %193 : vector<8x8xf32>
    %195 = math.exp %194 : vector<8x8xf32>
    %cst_81 = arith.constant dense<0.000000e+00> : vector<8xf32>
    %196 = vector.multi_reduction <add>, %195, %cst_81 [1] : vector<8x8xf32> to vector<8xf32>
    %197 = vector.shape_cast %196 : vector<8xf32> to vector<8x1xf32>
    %198 = tpu.reciprocal %197 {approx = true} : vector<8x1xf32> -> vector<8x1xf32>
    %199 = vector.broadcast %198 : vector<8x1xf32> to vector<8x8xf32>
    %200 = arith.mulf %195, %199 : vector<8x8xf32>
    %201 = arith.truncf %200 : vector<8x8xf32> to vector<8x8xbf16>
    %cst_82 = arith.constant dense<0.000000e+00> : vector<8x32xf32>
    %202 = tpu.matmul %201, %189, %cst_82 {dimension_numbers = #tpu.dot_dimension_numbers<[1], [0], [0], [1], [0, 0, 1, 1], [], []>} : vector<8x8xbf16>, vector<8x32xbf16>, vector<8x32xf32> -> vector<8x32xf32>
    %c0_83 = arith.constant 0 : index
    %c64_84 = arith.constant 64 : index
    %203 = vector.load %arg31[%c0_83, %c64_84] : memref<8x128xf32, #tpu.memory_space<vmem>>, vector<8x32xf32>
    tpu.vector_store %arg31[%c0_83, %c64_84], %202 {strides = array<i32>} : memref<8x128xf32, #tpu.memory_space<vmem>>, vector<8x32xf32>,
    %204 = vector.extract_strided_slice %145 {offsets = [0, 96], sizes = [8, 32], strides = [1, 1]} : vector<8x128xbf16> to vector<8x32xbf16>
    %205 = vector.extract_strided_slice %150 {offsets = [0, 96], sizes = [8, 32], strides = [1, 1]} : vector<8x128xbf16> to vector<8x32xbf16>
    %206 = vector.extract_strided_slice %152 {offsets = [0, 96], sizes = [8, 32], strides = [1, 1]} : vector<8x128xbf16> to vector<8x32xbf16>
    %cst_85 = arith.constant dense<0.000000e+00> : vector<8x8xf32>
    %207 = tpu.matmul %204, %205, %cst_85 {dimension_numbers = #tpu.dot_dimension_numbers<[1], [1], [0], [0], [0, 0, 1, 0], [], []>} : vector<8x32xbf16>, vector<8x32xbf16>, vector<8x8xf32> -> vector<8x8xf32>
    %cst_86 = arith.constant dense<0xFF800000> : vector<8xf32>
    %208 = vector.multi_reduction <maximumf>, %207, %cst_86 [1] : vector<8x8xf32> to vector<8xf32>
    %209 = vector.shape_cast %208 : vector<8xf32> to vector<8x1xf32>
    %210 = vector.broadcast %209 : vector<8x1xf32> to vector<8x8xf32>
    %211 = arith.subf %207, %210 : vector<8x8xf32>
    %212 = math.exp %211 : vector<8x8xf32>
    %cst_87 = arith.constant dense<0.000000e+00> : vector<8xf32>
    %213 = vector.multi_reduction <add>, %212, %cst_87 [1] : vector<8x8xf32> to vector<8xf32>
    %214 = vector.shape_cast %213 : vector<8xf32> to vector<8x1xf32>
    %215 = tpu.reciprocal %214 {approx = true} : vector<8x1xf32> -> vector<8x1xf32>
    %216 = vector.broadcast %215 : vector<8x1xf32> to vector<8x8xf32>
    %217 = arith.mulf %212, %216 : vector<8x8xf32>
    %218 = arith.truncf %217 : vector<8x8xf32> to vector<8x8xbf16>
    %cst_88 = arith.constant dense<0.000000e+00> : vector<8x32xf32>
    %219 = tpu.matmul %218, %206, %cst_88 {dimension_numbers = #tpu.dot_dimension_numbers<[1], [0], [0], [1], [0, 0, 1, 1], [], []>} : vector<8x8xbf16>, vector<8x32xbf16>, vector<8x32xf32> -> vector<8x32xf32>
    %c0_89 = arith.constant 0 : index
    %c96_90 = arith.constant 96 : index
    %220 = vector.load %arg31[%c0_89, %c96_90] : memref<8x128xf32, #tpu.memory_space<vmem>>, vector<8x32xf32>
    tpu.vector_store %arg31[%c0_89, %c96_90], %219 {strides = array<i32>} : memref<8x128xf32, #tpu.memory_space<vmem>>, vector<8x32xf32>,
    %c0_91 = arith.constant 0 : index
    %c0_92 = arith.constant 0 : index
    %221 = vector.load %arg31[%c0_91, %c0_92] : memref<8x128xf32, #tpu.memory_space<vmem>>, vector<8x128xf32>
    %222 = arith.truncf %221 : vector<8x128xf32> to vector<8x128xbf16>
    %c0_93 = arith.constant 0 : index
    %c0_94 = arith.constant 0 : index
    %c0_95 = arith.constant 0 : index
    %223 = vector.load %arg17[%c0_93, %c0_94, %c0_95] : memref<1x128x128xbf16, #tpu.memory_space<vmem>>, vector<1x128x128xbf16>
    %224 = vector.shape_cast %223 : vector<1x128x128xbf16> to vector<128x128xbf16>
    %cst_96 = arith.constant dense<0.000000e+00> : vector<8x128xf32>
    %225 = tpu.matmul %222, %224, %cst_96 {dimension_numbers = #tpu.dot_dimension_numbers<[1], [0], [0], [1], [0, 0, 1, 1], [], []>} : vector<8x128xbf16>, vector<128x128xbf16>, vector<8x128xf32> -> vector<8x128xf32>
    %226 = arith.addf %115, %225 : vector<8x128xf32>
    %c0_97 = arith.constant 0 : index
    %c0_98 = arith.constant 0 : index
    %c0_99 = arith.constant 0 : index
    %227 = vector.load %arg18[%c0_97, %c0_98, %c0_99] : memref<1x1x128xf32, #tpu.memory_space<vmem>>, vector<1x1x128xf32>
    %228 = vector.shape_cast %227 : vector<1x1x128xf32> to vector<1x128xf32>
    %229 = vector.broadcast %228 : vector<1x128xf32> to vector<8x128xf32>
    %230 = arith.addf %226, %229 : vector<8x128xf32>
    %cst_100 = arith.constant dense<0.000000e+00> : vector<8xf32>
    %231 = vector.multi_reduction <add>, %230, %cst_100 [1] : vector<8x128xf32> to vector<8xf32>
    %232 = vector.shape_cast %231 : vector<8xf32> to vector<8x1xf32>
    %cst_101 = arith.constant 1.280000e+02 : f32
    %233 = vector.broadcast %cst_101 : f32 to vector<8x1xf32>
    %234 = arith.divf %232, %233 : vector<8x1xf32>
    %235 = vector.broadcast %234 : vector<8x1xf32> to vector<8x128xf32>
    %236 = arith.subf %230, %235 : vector<8x128xf32>
    %237 = arith.mulf %236, %236 : vector<8x128xf32>
    %cst_102 = arith.constant dense<0.000000e+00> : vector<8xf32>
    %238 = vector.multi_reduction <add>, %237, %cst_102 [1] : vector<8x128xf32> to vector<8xf32>
    %239 = vector.shape_cast %238 : vector<8xf32> to vector<8x1xf32>
    %cst_103 = arith.constant 1.280000e+02 : f32
    %240 = vector.broadcast %cst_103 : f32 to vector<8x1xf32>
    %241 = arith.divf %239, %240 : vector<8x1xf32>
    %cst_104 = arith.constant 9.99999974E-6 : f32
    %242 = vector.broadcast %cst_104 : f32 to vector<8x1xf32>
    %243 = arith.addf %241, %242 : vector<8x1xf32>
    %244 = math.rsqrt %243 : vector<8x1xf32>
    %245 = vector.broadcast %244 : vector<8x1xf32> to vector<8x128xf32>
    %246 = arith.mulf %236, %245 : vector<8x128xf32>
    %c0_105 = arith.constant 0 : index
    %c0_106 = arith.constant 0 : index
    %c0_107 = arith.constant 0 : index
    %247 = vector.load %arg19[%c0_105, %c0_106, %c0_107] : memref<1x1x128xf32, #tpu.memory_space<vmem>>, vector<1x1x128xf32>
    %248 = vector.shape_cast %247 : vector<1x1x128xf32> to vector<1x128xf32>
    %249 = vector.broadcast %248 : vector<1x128xf32> to vector<8x128xf32>
    %250 = arith.mulf %246, %249 : vector<8x128xf32>
    %c0_108 = arith.constant 0 : index
    %c0_109 = arith.constant 0 : index
    %c0_110 = arith.constant 0 : index
    %251 = vector.load %arg20[%c0_108, %c0_109, %c0_110] : memref<1x1x128xf32, #tpu.memory_space<vmem>>, vector<1x1x128xf32>
    %252 = vector.shape_cast %251 : vector<1x1x128xf32> to vector<1x128xf32>
    %253 = vector.broadcast %252 : vector<1x128xf32> to vector<8x128xf32>
    %254 = arith.addf %250, %253 : vector<8x128xf32>
    %255 = arith.truncf %254 : vector<8x128xf32> to vector<8x128xbf16>
    %c0_111 = arith.constant 0 : index
    %c0_112 = arith.constant 0 : index
    %c0_113 = arith.constant 0 : index
    %256 = vector.load %arg21[%c0_111, %c0_112, %c0_113] : memref<1x128x128xbf16, #tpu.memory_space<vmem>>, vector<1x128x128xbf16>
    %257 = vector.shape_cast %256 : vector<1x128x128xbf16> to vector<128x128xbf16>
    %cst_114 = arith.constant dense<0.000000e+00> : vector<8x128xf32>
    %258 = tpu.matmul %255, %257, %cst_114 {dimension_numbers = #tpu.dot_dimension_numbers<[1], [0], [0], [1], [0, 0, 1, 1], [], []>} : vector<8x128xbf16>, vector<128x128xbf16>, vector<8x128xf32> -> vector<8x128xf32>
    %c0_115 = arith.constant 0 : index
    %c0_116 = arith.constant 0 : index
    %c0_117 = arith.constant 0 : index
    %259 = vector.load %arg22[%c0_115, %c0_116, %c0_117] : memref<1x1x128xf32, #tpu.memory_space<vmem>>, vector<1x1x128xf32>
    %260 = vector.shape_cast %259 : vector<1x1x128xf32> to vector<1x128xf32>
    %261 = vector.broadcast %260 : vector<1x128xf32> to vector<8x128xf32>
    %262 = arith.addf %258, %261 : vector<8x128xf32>
    %c0_118 = arith.constant 0 : index
    %c0_119 = arith.constant 0 : index
    %c0_120 = arith.constant 0 : index
    %263 = vector.load %arg23[%c0_118, %c0_119, %c0_120] : memref<1x128x128xbf16, #tpu.memory_space<vmem>>, vector<1x128x128xbf16>
    %264 = vector.shape_cast %263 : vector<1x128x128xbf16> to vector<128x128xbf16>
    %cst_121 = arith.constant dense<0.000000e+00> : vector<8x128xf32>
    %265 = tpu.matmul %255, %264, %cst_121 {dimension_numbers = #tpu.dot_dimension_numbers<[1], [0], [0], [1], [0, 0, 1, 1], [], []>} : vector<8x128xbf16>, vector<128x128xbf16>, vector<8x128xf32> -> vector<8x128xf32>
    %c0_122 = arith.constant 0 : index
    %c0_123 = arith.constant 0 : index
    %c0_124 = arith.constant 0 : index
    %266 = vector.load %arg24[%c0_122, %c0_123, %c0_124] : memref<1x1x128xf32, #tpu.memory_space<vmem>>, vector<1x1x128xf32>
    %267 = vector.shape_cast %266 : vector<1x1x128xf32> to vector<1x128xf32>
    %268 = vector.broadcast %267 : vector<1x128xf32> to vector<8x128xf32>
    %269 = arith.addf %265, %268 : vector<8x128xf32>
    %270 = arith.negf %262 : vector<8x128xf32>
    %271 = math.exp %270 : vector<8x128xf32>
    %cst_125 = arith.constant 1.000000e+00 : f32
    %272 = vector.broadcast %cst_125 : f32 to vector<8x128xf32>
    %273 = arith.addf %272, %271 : vector<8x128xf32>
    %274 = arith.divf %272, %273 : vector<8x128xf32>
    %275 = arith.mulf %262, %274 : vector<8x128xf32>
    %276 = arith.mulf %275, %269 : vector<8x128xf32>
    %277 = arith.truncf %276 : vector<8x128xf32> to vector<8x128xbf16>
    %c0_126 = arith.constant 0 : index
    %c0_127 = arith.constant 0 : index
    %c0_128 = arith.constant 0 : index
    %278 = vector.load %arg25[%c0_126, %c0_127, %c0_128] : memref<1x128x128xbf16, #tpu.memory_space<vmem>>, vector<1x128x128xbf16>
    %279 = vector.shape_cast %278 : vector<1x128x128xbf16> to vector<128x128xbf16>
    %cst_129 = arith.constant dense<0.000000e+00> : vector<8x128xf32>
    %280 = tpu.matmul %277, %279, %cst_129 {dimension_numbers = #tpu.dot_dimension_numbers<[1], [0], [0], [1], [0, 0, 1, 1], [], []>} : vector<8x128xbf16>, vector<128x128xbf16>, vector<8x128xf32> -> vector<8x128xf32>
    %281 = arith.addf %230, %280 : vector<8x128xf32>
    %c0_130 = arith.constant 0 : index
    %c0_131 = arith.constant 0 : index
    %c0_132 = arith.constant 0 : index
    %282 = vector.load %arg26[%c0_130, %c0_131, %c0_132] : memref<1x1x128xf32, #tpu.memory_space<vmem>>, vector<1x1x128xf32>
    %283 = vector.shape_cast %282 : vector<1x1x128xf32> to vector<1x128xf32>
    %284 = vector.broadcast %283 : vector<1x128xf32> to vector<8x128xf32>
    %285 = arith.addf %281, %284 : vector<8x128xf32>
    %c0_133 = arith.constant 0 : index
    %c0_134 = arith.constant 0 : index
    %286 = vector.load %arg30[%c0_133, %c0_134] : memref<8x128xf32, #tpu.memory_space<vmem>>, vector<8x128xf32>
    tpu.vector_store %arg30[%c0_133, %c0_134], %285 {strides = array<i32>} : memref<8x128xf32, #tpu.memory_space<vmem>>, vector<8x128xf32>,
    %c1_i32 = arith.constant 1 : i32
    %287 = arith.cmpi eq, %arg1, %c1_i32 : i32
    %288 = arith.extui %287 : i1 to i32
    %c0_i32_135 = arith.constant 0 : i32
    %289 = arith.cmpi ne, %288, %c0_i32_135 : i32
    scf.if %289 {
      %cst_136 = arith.constant dense<0.000000e+00> : vector<8xf32>
      %290 = vector.multi_reduction <add>, %285, %cst_136 [1] : vector<8x128xf32> to vector<8xf32>
      %291 = vector.shape_cast %290 : vector<8xf32> to vector<8x1xf32>
      %cst_137 = arith.constant 1.280000e+02 : f32
      %292 = vector.broadcast %cst_137 : f32 to vector<8x1xf32>
      %293 = arith.divf %291, %292 : vector<8x1xf32>
      %294 = vector.broadcast %293 : vector<8x1xf32> to vector<8x128xf32>
      %295 = arith.subf %285, %294 : vector<8x128xf32>
      %296 = arith.mulf %295, %295 : vector<8x128xf32>
      %cst_138 = arith.constant dense<0.000000e+00> : vector<8xf32>
      %297 = vector.multi_reduction <add>, %296, %cst_138 [1] : vector<8x128xf32> to vector<8xf32>
      %298 = vector.shape_cast %297 : vector<8xf32> to vector<8x1xf32>
      %cst_139 = arith.constant 1.280000e+02 : f32
      %299 = vector.broadcast %cst_139 : f32 to vector<8x1xf32>
      %300 = arith.divf %298, %299 : vector<8x1xf32>
      %cst_140 = arith.constant 9.99999974E-6 : f32
      %301 = vector.broadcast %cst_140 : f32 to vector<8x1xf32>
      %302 = arith.addf %300, %301 : vector<8x1xf32>
      %303 = math.rsqrt %302 : vector<8x1xf32>
      %304 = vector.broadcast %303 : vector<8x1xf32> to vector<8x128xf32>
      %305 = arith.mulf %295, %304 : vector<8x128xf32>
      %c0_141 = arith.constant 0 : index
      %c0_142 = arith.constant 0 : index
      %306 = vector.load %arg27[%c0_141, %c0_142] : memref<1x128xf32, #tpu.memory_space<vmem>>, vector<1x128xf32>
      %307 = vector.broadcast %306 : vector<1x128xf32> to vector<8x128xf32>
      %308 = arith.mulf %305, %307 : vector<8x128xf32>
      %c0_143 = arith.constant 0 : index
      %c0_144 = arith.constant 0 : index
      %309 = vector.load %arg28[%c0_143, %c0_144] : memref<1x128xf32, #tpu.memory_space<vmem>>, vector<1x128xf32>
      %310 = vector.broadcast %309 : vector<1x128xf32> to vector<8x128xf32>
      %311 = arith.addf %308, %310 : vector<8x128xf32>
      %312 = arith.truncf %311 : vector<8x128xf32> to vector<8x128xbf16>
      %c0_145 = arith.constant 0 : index
      %c0_146 = arith.constant 0 : index
      %c0_147 = arith.constant 0 : index
      %313 = vector.load %arg29[%c0_145, %c0_146, %c0_147] : memref<1x8x128xbf16, #tpu.memory_space<vmem>>, vector<1x8x128xbf16>
      %314 = vector.shape_cast %313 : vector<1x8x128xbf16> to vector<8x128xbf16>
      %315 = vector.shape_cast %312 : vector<8x128xbf16> to vector<1x8x128xbf16>
      tpu.vector_store %arg29[%c0_145, %c0_146, %c0_147], %315 {strides = array<i32>} : memref<1x8x128xbf16, #tpu.memory_space<vmem>>, vector<1x8x128xbf16>,
    } else {
    }
    return
  }
  func.func @transform_0(%arg0: i32, %arg1: i32) -> (i32, i32, i32) {
    %c0_i32 = arith.constant 0 : i32
    %c0_i32_0 = arith.constant 0 : i32
    %c0_i32_1 = arith.constant 0 : i32
    return %arg0, %c0_i32, %c0_i32_0 : i32, i32, i32
  }
  func.func @transform_1(%arg0: i32, %arg1: i32) -> (i32, i32) {
    %c0_i32 = arith.constant 0 : i32
    %c0_i32_0 = arith.constant 0 : i32
    %c0_i32_1 = arith.constant 0 : i32
    return %c0_i32, %c0_i32_0 : i32, i32
  }
  func.func @transform_2(%arg0: i32, %arg1: i32) -> (i32, i32) {
    %c0_i32 = arith.constant 0 : i32
    %c0_i32_0 = arith.constant 0 : i32
    %c0_i32_1 = arith.constant 0 : i32
    return %c0_i32, %c0_i32_0 : i32, i32
  }
  func.func @transform_3(%arg0: i32, %arg1: i32) -> (i32, i32, i32) {
    %c0_i32 = arith.constant 0 : i32
    %c0_i32_0 = arith.constant 0 : i32
    %c0_i32_1 = arith.constant 0 : i32
    %c0_i32_2 = arith.constant 0 : i32
    return %c0_i32, %c0_i32_0, %c0_i32_1 : i32, i32, i32
  }
  func.func @transform_4(%arg0: i32, %arg1: i32) -> (i32, i32, i32) {
    %c0_i32 = arith.constant 0 : i32
    %c0_i32_0 = arith.constant 0 : i32
    %c0_i32_1 = arith.constant 0 : i32
    return %arg0, %c0_i32, %c0_i32_0 : i32, i32, i32
  }
  func.func @transform_5(%arg0: i32, %arg1: i32) -> (i32, i32) {
    %c0_i32 = arith.constant 0 : i32
    %c0_i32_0 = arith.constant 0 : i32
    %c0_i32_1 = arith.constant 0 : i32
    return %c0_i32, %c0_i32_0 : i32, i32
  }
  func.func @transform_6(%arg0: i32, %arg1: i32) -> (i32, i32, i32) {
    %c0_i32 = arith.constant 0 : i32
    %c0_i32_0 = arith.constant 0 : i32
    %c0_i32_1 = arith.constant 0 : i32
    return %arg1, %c0_i32, %c0_i32_0 : i32, i32, i32
  }
  func.func @transform_7(%arg0: i32, %arg1: i32) -> (i32, i32, i32) {
    %c0_i32 = arith.constant 0 : i32
    %c0_i32_0 = arith.constant 0 : i32
    %c0_i32_1 = arith.constant 0 : i32
    return %arg1, %c0_i32, %c0_i32_0 : i32, i32, i32
  }
  func.func @transform_8(%arg0: i32, %arg1: i32) -> (i32, i32, i32) {
    %c0_i32 = arith.constant 0 : i32
    %c0_i32_0 = arith.constant 0 : i32
    %c0_i32_1 = arith.constant 0 : i32
    return %arg1, %c0_i32, %c0_i32_0 : i32, i32, i32
  }
  func.func @transform_9(%arg0: i32, %arg1: i32) -> (i32, i32, i32) {
    %c0_i32 = arith.constant 0 : i32
    %c0_i32_0 = arith.constant 0 : i32
    %c0_i32_1 = arith.constant 0 : i32
    return %arg1, %c0_i32, %c0_i32_0 : i32, i32, i32
  }
  func.func @transform_10(%arg0: i32, %arg1: i32) -> (i32, i32, i32) {
    %c0_i32 = arith.constant 0 : i32
    %c0_i32_0 = arith.constant 0 : i32
    %c0_i32_1 = arith.constant 0 : i32
    return %arg1, %c0_i32, %c0_i32_0 : i32, i32, i32
  }
  func.func @transform_11(%arg0: i32, %arg1: i32) -> (i32, i32, i32) {
    %c0_i32 = arith.constant 0 : i32
    %c0_i32_0 = arith.constant 0 : i32
    %c0_i32_1 = arith.constant 0 : i32
    return %arg1, %c0_i32, %c0_i32_0 : i32, i32, i32
  }
  func.func @transform_12(%arg0: i32, %arg1: i32) -> (i32, i32, i32) {
    %c0_i32 = arith.constant 0 : i32
    %c0_i32_0 = arith.constant 0 : i32
    %c0_i32_1 = arith.constant 0 : i32
    return %arg1, %c0_i32, %c0_i32_0 : i32, i32, i32
  }
  func.func @transform_13(%arg0: i32, %arg1: i32) -> (i32, i32, i32) {
    %c0_i32 = arith.constant 0 : i32
    %c0_i32_0 = arith.constant 0 : i32
    %c0_i32_1 = arith.constant 0 : i32
    return %arg1, %c0_i32, %c0_i32_0 : i32, i32, i32
  }
  func.func @transform_14(%arg0: i32, %arg1: i32) -> (i32, i32, i32) {
    %c0_i32 = arith.constant 0 : i32
    %c0_i32_0 = arith.constant 0 : i32
    %c0_i32_1 = arith.constant 0 : i32
    return %arg1, %c0_i32, %c0_i32_0 : i32, i32, i32
  }
  func.func @transform_15(%arg0: i32, %arg1: i32) -> (i32, i32, i32) {
    %c0_i32 = arith.constant 0 : i32
    %c0_i32_0 = arith.constant 0 : i32
    %c0_i32_1 = arith.constant 0 : i32
    return %arg1, %c0_i32, %c0_i32_0 : i32, i32, i32
  }
  func.func @transform_16(%arg0: i32, %arg1: i32) -> (i32, i32, i32) {
    %c0_i32 = arith.constant 0 : i32
    %c0_i32_0 = arith.constant 0 : i32
    %c0_i32_1 = arith.constant 0 : i32
    return %arg1, %c0_i32, %c0_i32_0 : i32, i32, i32
  }
  func.func @transform_17(%arg0: i32, %arg1: i32) -> (i32, i32, i32) {
    %c0_i32 = arith.constant 0 : i32
    %c0_i32_0 = arith.constant 0 : i32
    %c0_i32_1 = arith.constant 0 : i32
    return %arg1, %c0_i32, %c0_i32_0 : i32, i32, i32
  }
  func.func @transform_18(%arg0: i32, %arg1: i32) -> (i32, i32, i32) {
    %c0_i32 = arith.constant 0 : i32
    %c0_i32_0 = arith.constant 0 : i32
    %c0_i32_1 = arith.constant 0 : i32
    return %arg1, %c0_i32, %c0_i32_0 : i32, i32, i32
  }
  func.func @transform_19(%arg0: i32, %arg1: i32) -> (i32, i32, i32) {
    %c0_i32 = arith.constant 0 : i32
    %c0_i32_0 = arith.constant 0 : i32
    %c0_i32_1 = arith.constant 0 : i32
    return %arg1, %c0_i32, %c0_i32_0 : i32, i32, i32
  }
  func.func @transform_20(%arg0: i32, %arg1: i32) -> (i32, i32, i32) {
    %c0_i32 = arith.constant 0 : i32
    %c0_i32_0 = arith.constant 0 : i32
    %c0_i32_1 = arith.constant 0 : i32
    return %arg1, %c0_i32, %c0_i32_0 : i32, i32, i32
  }
  func.func @transform_21(%arg0: i32, %arg1: i32) -> (i32, i32, i32) {
    %c0_i32 = arith.constant 0 : i32
    %c0_i32_0 = arith.constant 0 : i32
    %c0_i32_1 = arith.constant 0 : i32
    return %arg1, %c0_i32, %c0_i32_0 : i32, i32, i32
  }
  func.func @transform_22(%arg0: i32, %arg1: i32) -> (i32, i32, i32) {
    %c0_i32 = arith.constant 0 : i32
    %c0_i32_0 = arith.constant 0 : i32
    %c0_i32_1 = arith.constant 0 : i32
    return %arg1, %c0_i32, %c0_i32_0 : i32, i32, i32
  }
  func.func @transform_23(%arg0: i32, %arg1: i32) -> (i32, i32, i32) {
    %c0_i32 = arith.constant 0 : i32
    %c0_i32_0 = arith.constant 0 : i32
    %c0_i32_1 = arith.constant 0 : i32
    return %arg1, %c0_i32, %c0_i32_0 : i32, i32, i32
  }
  func.func @transform_24(%arg0: i32, %arg1: i32) -> (i32, i32, i32) {
    %c0_i32 = arith.constant 0 : i32
    %c0_i32_0 = arith.constant 0 : i32
    %c0_i32_1 = arith.constant 0 : i32
    return %arg1, %c0_i32, %c0_i32_0 : i32, i32, i32
  }
  func.func @transform_25(%arg0: i32, %arg1: i32) -> (i32, i32) {
    %c0_i32 = arith.constant 0 : i32
    %c0_i32_0 = arith.constant 0 : i32
    %c0_i32_1 = arith.constant 0 : i32
    return %c0_i32, %c0_i32_0 : i32, i32
  }
  func.func @transform_26(%arg0: i32, %arg1: i32) -> (i32, i32) {
    %c0_i32 = arith.constant 0 : i32
    %c0_i32_0 = arith.constant 0 : i32
    %c0_i32_1 = arith.constant 0 : i32
    return %c0_i32, %c0_i32_0 : i32, i32
  }
  func.func @transform_27(%arg0: i32, %arg1: i32) -> (i32, i32, i32) {
    %c0_i32 = arith.constant 0 : i32
    %c0_i32_0 = arith.constant 0 : i32
    %c0_i32_1 = arith.constant 0 : i32
    return %arg0, %c0_i32, %c0_i32_0 : i32, i32, i32
  }
}

</mosaic_0001>

<bundles_post_ra>
// kernel: _lambda_.3
= control target key start
LH: loop header
LB: loop body
LE: loop exit
PB: predicated region body
PF: predicated region fallthrough
CT: control target
= control target key end

     0   :  { %8 = vsyncpa [#allocation3], 0  ;;  %s373_s0 = inlined_call_operand.vmem [shape: bf16[16,128], index: 0, kind: input, shape index: {}]   ;;  %s374_s1 = inlined_call_operand.hbm [shape: bf16[128,256], index: 1, kind: input, shape index: {}]   ;;  %s375_s2 = inlined_call_operand.vmem [shape: f32[1,256], index: 2, kind: input, shape index: {}]   ;;  %s376_s3 = inlined_call_operand.hbm [shape: f32[16,256], index: 3, kind: output, shape index: {}]  }
   0x1   :  { %9 = vsyncpa [#allocation4], 0  ;;  %s16_s14 = sshll.u32 %s374_s1, 4  ;;  %s335_s15 = smov [#allocation2]   ;;  %s17_s14 = int_to_ptr.hbm [resolvable:$true] %s16_s14 }
   0x2   :  { %s18_s16 = sshll.u32 %s335_s15, 4  ;;  %s336_s17 = smov 128   ;;  %s19_s16 = int_to_ptr.vmem [resolvable:$true] %s18_s16 }
   0x3   :  { %s337_s18 = smov 8  }
   0x4   :  { %24 = dma.hbm_to_vmem [thread:$0]  %s17_s14, 2048, %s19_s16, [#allocation3], %s336_s17, %s336_s17, %s337_s18  }
   0x5   :  { %331 = dma.done.wait [#allocation3], 2048  }
   0x6   :  { %332 = vsyncadd [#allocation3], 4294965248  ;;  %v254_v0 = vld [vmem:[#allocation2 + $0x70] sm:$0xf]  ;;  %v276_v1 = vld [vmem:[#allocation2 + $0x74] sm:$0xf0] }
   0x7   :  { %v275_v2 = vld [vmem:[#allocation2 + $0x74] sm:$0xf]  ;;  %v255_v3 = vor.u32 %v276_v1, %v254_v0  ;;  %v256_v4 = vld [vmem:[#allocation2 + $0x78] sm:$0xf0]  ;;  %v246_v5 = vld [vmem:[#allocation2 + $0x60] sm:$0xf] }
   0x8   :  { %v274_v6 = vld [vmem:[#allocation2 + $0x64] sm:$0xf0]  ;;  %v259_v7 = vor.u32 %v275_v2, %v256_v4  ;;  %v273_v8 = vld [vmem:[#allocation2 + $0x64] sm:$0xf]  ;;  %v248_v9 = vld [vmem:[#allocation2 + $0x68] sm:$0xf0] }
   0x9   :  { %141 = vmatpush.bf16.msra.mxu0 %v255_v3  ;;  %v247_v10 = vor.u32 %v274_v6, %v246_v5  ;;  %v251_v11 = vor.u32 %v273_v8, %v248_v9  ;;  %v238_v12 = vld [vmem:[#allocation2 + $0x50] sm:$0xf]  ;;  %v272_v13 = vld [vmem:[#allocation2 + $0x54] sm:$0xf0]  ;;  %v271_v14 = vld [vmem:[#allocation2 + $0x54] sm:$0xf] }
   0xa   :  { %155 = vmatpush.bf16.msra.mxu1 %v259_v7  ;;  %v240_v15 = vld [vmem:[#allocation2 + $0x58] sm:$0xf0]  ;;  %v239_v16 = vor.u32 %v272_v13, %v238_v12  ;;  %v230_v18 = vld [vmem:[#allocation2 + $0x40] sm:$0xf]  ;;  %v270_v19 = vld [vmem:[#allocation2 + $0x44] sm:$0xf0] }
   0xb   :  { %v243_v17 = vor.u32 %v271_v14, %v240_v15  ;;  %v269_v20 = vld [vmem:[#allocation2 + $0x44] sm:$0xf]  ;;  %v232_v21 = vld [vmem:[#allocation2 + $0x48] sm:$0xf0]  ;;  %v231_v22 = vor.u32 %v270_v19, %v230_v18  ;;  %v222_v24 = vld [vmem:[#allocation2 + $0x30] sm:$0xf] }
   0xc   :  { %v235_v23 = vor.u32 %v269_v20, %v232_v21  ;;  %v268_v25 = vld [vmem:[#allocation2 + $0x34] sm:$0xf0]  ;;  %v267_v26 = vld [vmem:[#allocation2 + $0x34] sm:$0xf]  ;;  %v224_v27 = vld [vmem:[#allocation2 + $0x38] sm:$0xf0] }
   0xd   :  { %142 = vmatpush.bf16.msra.mxu0 %v247_v10  ;;  %v223_v28 = vor.u32 %v268_v25, %v222_v24  ;;  %v227_v29 = vor.u32 %v267_v26, %v224_v27  ;;  %v214_v30 = vld [vmem:[#allocation2 + $0x20] sm:$0xf]  ;;  %v266_v31 = vld [vmem:[#allocation2 + $0x24] sm:$0xf0]  ;;  %v265_v32 = vld [vmem:[#allocation2 + $0x24] sm:$0xf] }
   0xe   :  { %156 = vmatpush.bf16.msra.mxu1 %v251_v11  ;;  %v216_v33 = vld [vmem:[#allocation2 + $0x28] sm:$0xf0]  ;;  %v215_v34 = vor.u32 %v266_v31, %v214_v30  ;;  %v206_v36 = vld [vmem:[#allocation2 + $0x10] sm:$0xf]  ;;  %v264_v37 = vld [vmem:[#allocation2 + $0x14] sm:$0xf0] }
   0xf   :  { %v219_v35 = vor.u32 %v265_v32, %v216_v33  ;;  %v263_v38 = vld [vmem:[#allocation2 + $0x14] sm:$0xf]  ;;  %v208_v39 = vld [vmem:[#allocation2 + $0x18] sm:$0xf0]  ;;  %v207_v40 = vor.u32 %v264_v37, %v206_v36  ;;  %v198_v42 = vld [vmem:[#allocation2] sm:$0xf] }
  0x10   :  { %v211_v41 = vor.u32 %v263_v38, %v208_v39  ;;  %v262_v43 = vld [vmem:[#allocation2 + $0x4] sm:$0xf0]  ;;  %v261_v44 = vld [vmem:[#allocation2 + $0x4] sm:$0xf]  ;;  %v200_v45 = vld [vmem:[#allocation2 + $0x8] sm:$0xf0] }
  0x11   :  { %143 = vmatpush.bf16.msra.mxu0 %v239_v16  ;;  %v199_v46 = vor.u32 %v262_v43, %v198_v42  ;;  %v203_v47 = vor.u32 %v261_v44, %v200_v45  ;;  %v260_v48 = vld [vmem:[%s373_s0] sm:$0xff]  ;;  %s338_s22 = smov [#allocation5]   ;;  %s179_s25 = sshll.u32 %s376_s3, 4  ;;  %s180_s25 = int_to_ptr.hbm [resolvable:$true] %s179_s25 }
  0x12   :  { %157 = vmatpush.bf16.msra.mxu1 %v243_v17  ;;  %v49_v49 = vld [vmem:[%s375_s2] sm:$0x3]  ;;  %s177_s23 = sshll.u32 %s338_s22, 4  ;;  %s339_s2 = smov 256   ;;  %s178_s23 = int_to_ptr.vmem [resolvable:$true] %s177_s23 }
  0x13   :  { %v51_v50 = vperm.slane %v49_v49, 0  ;;  %v52_v51 = vperm.slane %v49_v49, 1  ;;  %s340_s26 = smov 16  }
  0x15   :  { %144 = vmatpush.bf16.msra.mxu0 %v231_v22 }
  0x16   :  { %158 = vmatpush.bf16.msra.mxu1 %v235_v23 }
  0x19   :  { %145 = vmatpush.bf16.msra.mxu0 %v223_v28 }
  0x1a   :  { %159 = vmatpush.bf16.msra.mxu1 %v227_v29 }
  0x1d   :  { %146 = vmatpush.bf16.msra.mxu0 %v215_v34 }
  0x1e   :  { %160 = vmatpush.bf16.msra.mxu1 %v219_v35 }
  0x21   :  { %147 = vmatpush.bf16.msra.mxu0 %v207_v40 }
  0x22   :  { %161 = vmatpush.bf16.msra.mxu1 %v211_v41 }
  0x25   :  { %148 = vmatpush.bf16.msra.mxu0 %v199_v46 }
  0x26   :  { %162 = vmatpush.bf16.msra.mxu1 %v203_v47 }
  0x28   :  { %149 = vmatmul.bf16.vlgmr.msra.gmra.mxu0 %v260_v48 }
  0x29   :  { %163 = vmatmul.bf16.vlgmr.msra.gmra.mxu1 %v260_v48 }
  0xa5   :  { %v150_v52 = vpop.f32.mrf.mxu0 }
  0xa6   :  { %v151_v53 = vadd.f32 %v150_v52, %v51_v50  ;;  %v164_v54 = vpop.f32.mrf.mxu1 }
  0xa7   :  { %v165_v55 = vadd.f32 %v164_v54, %v52_v51 }
  0xa8   :  { %169 = vst [vmem:[#allocation5] sm:$0xff] %v151_v53 }
  0xa9   :  { %170 = vst [vmem:[#allocation5 + $0x8] sm:$0xff] %v165_v55 }
  0xad   :  { %v152_v56 = vpop.f32.mrf.mxu0 }
  0xae   :  { %v153_v57 = vadd.f32 %v152_v56, %v51_v50  ;;  %v166_v58 = vpop.f32.mrf.mxu1 }
  0xaf   :  { %v167_v59 = vadd.f32 %v166_v58, %v52_v51 }
  0xb0   :  { %171 = vst [vmem:[#allocation5 + $0x10] sm:$0xff] %v153_v57 }
  0xb1   :  { %172 = vst [vmem:[#allocation5 + $0x18] sm:$0xff] %v167_v59 }
  0xb2   :  { %185 = dma.vmem_to_hbm [thread:$0]  %s178_s23, 512, %s180_s25, [#allocation4], %s339_s2, %s339_s2, %s340_s26  }
  0xb3   :  { %333 = dma.done.wait [#allocation4], 512  }
  0xb4   :  { %334 = vsyncadd [#allocation4], 4294966784 }
  0xb5   :  { %190 = vsyncpa [#allocation3], 1 }
  0xb6   :  { %191 = vsyncpa [#allocation4], 1 }

// kernel: _lambda_.2
= control target key start
LH: loop header
LB: loop body
LE: loop exit
PB: predicated region body
PF: predicated region fallthrough
CT: control target
= control target key end

     0   :  { %s5838_s0 = inlined_call_operand.vmem [shape: f32[2,8,16], index: 0, kind: input, shape index: {}]   ;;  %s5839_s1 = inlined_call_operand.vmem [shape: bf16[16,128], index: 1, kind: input, shape index: {}]   ;;  %s5840_s2 = inlined_call_operand.hbm [shape: f32[1,128], index: 2, kind: input, shape index: {}]   ;;  %s5841_s3 = inlined_call_operand.vmem [shape: f32[1,8,128], index: 3, kind: input, shape index: {}]   ;;  %s5842_s4 = inlined_call_operand.vmem [shape: bf16[2,8,64], index: 4, kind: input, shape index: {}]   ;;  %s5843_s5 = inlined_call_operand.hbm [shape: bf16[64,128], index: 5, kind: input, shape index: {}]   ;;  %s5844_s6 = inlined_call_operand.vmem [shape: f32[2,1,128], index: 6, kind: input, shape index: {}]   ;;  %s5845_s7 = inlined_call_operand.hbm [shape: f32[2,1,128], index: 7, kind: input, shape index: {}]   ;;  %s5846_s8 = inlined_call_operand.hbm [shape: bf16[2,128,384], index: 8, kind: input, shape index: {}]   ;;  %s5847_s9 = inlined_call_operand.hbm [shape: bf16[2,128,128], index: 9, kind: input, shape index: {}]   ;;  %s5848_s10 = inlined_call_operand.hbm [shape: f32[2,1,128], index: 10, kind: input, shape index: {}]   ;;  %s5849_s11 = inlined_call_operand.hbm [shape: f32[2,1,128], index: 11, kind: input, shape index: {}]   ;;  %s5850_s12 = inlined_call_operand.hbm [shape: f32[2,1,128], index: 12, kind: input, shape index: {}]   ;;  %s5851_s13 = inlined_call_operand.hbm [shape: bf16[2,128,128], index: 13, kind: input, shape index: {}]   ;;  %s5852_s14 = inlined_call_operand.hbm [shape: bf16[2,128,256], index: 14, kind: input, shape index: {}]   ;;  %s5853_s15 = inlined_call_operand.hbm [shape: bf16[2,128,128], index: 15, kind: input, shape index: {}]   ;;  %s5854_s16 = inlined_call_operand.hbm [shape: f32[2,1,128], index: 16, kind: input, shape index: {}]   ;;  %s5855_s17 = inlined_call_operand.hbm [shape: f32[2,1,128], index: 17, kind: input, shape index: {}]   ;;  %s5856_s18 = inlined_call_operand.hbm [shape: f32[2,1,128], index: 18, kind: input, shape index: {}]   ;;  %s5857_s19 = inlined_call_operand.hbm [shape: bf16[2,128,128], index: 19, kind: input, shape index: {}]   ;;  %s5858_s20 = inlined_call_operand.hbm [shape: f32[2,1,128], index: 20, kind: input, shape index: {}]   ;;  %s5859_s21 = inlined_call_operand.hbm [shape: bf16[2,128,128], index: 21, kind: input, shape index: {}]   ;;  %s5860_s22 = inlined_call_operand.hbm [shape: f32[2,1,128], index: 22, kind: input, shape index: {}]   ;;  %s5861_s23 = inlined_call_operand.hbm [shape: bf16[2,128,128], index: 23, kind: input, shape index: {}]   ;;  %s5862_s24 = inlined_call_operand.hbm [shape: f32[2,1,128], index: 24, kind: input, shape index: {}]   ;;  %s5863_s25 = inlined_call_operand.hbm [shape: f32[1,128], index: 25, kind: input, shape index: {}]   ;;  %s5864_s26 = inlined_call_operand.hbm [shape: f32[1,128], index: 26, kind: input, shape index: {}]   ;;  %s5865_s27 = inlined_call_operand.vmem [shape: bf16[2,8,128], index: 27, kind: output, shape index: {}]  }
   0x1   :  { %5883 = sst [smem:[#allocation47_spill]] %s5838_s0 }
   0x2   :  { %5884 = sst [smem:[#allocation48_spill]] %s5839_s1 }
   0x3   :  { %5885 = sst [smem:[#allocation49_spill]] %s5840_s2 }
   0x4   :  { %5886 = sst [smem:[#allocation50_spill]] %s5841_s3 }
   0x5   :  { %5887 = sst [smem:[#allocation51_spill]] %s5842_s4 }
   0x6   :  { %5888 = sst [smem:[#allocation52_spill]] %s5843_s5 }
   0x7   :  { %5889 = sst [smem:[#allocation53_spill]] %s5844_s6 }
   0x8   :  { %5890 = sst [smem:[#allocation54_spill]] %s5845_s7 }
   0x9   :  { %5891 = sst [smem:[#allocation55_spill]] %s5846_s8 }
   0xa   :  { %5892 = sst [smem:[#allocation56_spill]] %s5847_s9 }
   0xb   :  { %5893 = sst [smem:[#allocation57_spill]] %s5848_s10 }
   0xc   :  { %5894 = sst [smem:[#allocation58_spill]] %s5849_s11 }
   0xd   :  { %5895 = sst [smem:[#allocation59_spill]] %s5850_s12 }
   0xe   :  { %5896 = sst [smem:[#allocation60_spill]] %s5851_s13 }
   0xf   :  { %5897 = sst [smem:[#allocation61_spill]] %s5852_s14 }
  0x10   :  { %5898 = sst [smem:[#allocation62_spill]] %s5853_s15 }
  0x11   :  { %5899 = sst [smem:[#allocation63_spill]] %s5854_s16 }
  0x12   :  { %5900 = sst [smem:[#allocation64_spill]] %s5855_s17 }
  0x13   :  { %5901 = sst [smem:[#allocation65_spill]] %s5856_s18 }
  0x14   :  { %5902 = sst [smem:[#allocation66_spill]] %s5857_s19 }
  0x15   :  { %5903 = sst [smem:[#allocation67_spill]] %s5858_s20 }
  0x16   :  { %5904 = sst [smem:[#allocation68_spill]] %s5859_s21 }
  0x17   :  { %5905 = sst [smem:[#allocation69_spill]] %s5860_s22 }
  0x18   :  { %5906 = sst [smem:[#allocation70_spill]] %s5861_s23 }
  0x19   :  { %5907 = sst [smem:[#allocation71_spill]] %s5862_s24 }
  0x1a   :  { %5908 = sst [smem:[#allocation72_spill]] %s5863_s25 }
  0x1b   :  { %5909 = sst [smem:[#allocation73_spill]] %s5864_s26 }
  0x1c   :  { %5910 = sst [smem:[#allocation74_spill]] %s5865_s27 }
  0x1d   :  { %32 = vsyncpa [#allocation6], 0 }
  0x1e   :  { %33 = vsyncpa [#allocation8], 0 }
  0x1f   :  { %34 = vsyncpa [#allocation29], 0  ;;  %s5180_s7 = smov 0   ;;  %s5182_s4 = smov 0  }
  0x20   :  { %s5184_s8 = smov 0   ;;  %s5186_s30 = smov 0  }
  0x21   :  { %s5188_s9 = smov 0   ;;  %s5190_s5 = smov 0  }
  0x22   :  { %s5192_s28 = smov 0   ;;  %s5194_s0 = smov 0  }
  0x23 LB: > { %5911 = sst [smem:[#allocation35_spill]] %s4998_s4  ;;  %s5868_s10 = sadd.s32 4294967295, %s5022_s0   ;;  %s5022_s0 = sphi %s5194_s0, %s40_s0   ;;  %s5018_s28 = sphi %s5192_s28, %s5983_s28   ;;  %s5014_s5 = sphi %s5190_s5, %s5982_s5   ;;  %s5010_s9 = sphi %s5188_s9, %s5981_s9   ;;  %s5006_s30 = sphi %s5186_s30, %s5980_s30   ;;  %s5002_s8 = sphi %s5184_s8, %s5979_s8   ;;  %s4998_s4 = sphi %s5182_s4, %s5978_s4   ;;  %s4994_s7 = sphi %s5180_s7, %s5977_s7  }
  0x24   : > { %5912 = sst [smem:[#allocation36_spill]] %s5002_s8  ;;  %s49_s29 = sadd.s32 1, %s5014_s5 }
  0x25   : > { %5913 = sst [smem:[#allocation37_spill]] %s5006_s30  ;;  %p50_p0 = scmp.ge.s32.totalorder %s49_s29, 2 }
  0x26   : > { %5914 = sst [smem:[#allocation38_spill]] %s5010_s9  ;;  %s52_s1 = sadd.s32 1, %s5018_s28 }
  0x27   : > { %5915 = sst [smem:[#allocation39_spill]] %s5014_s5  ;;  %s221_s6 = sadd.s32 1, %s5002_s8 }
  0x28   : > { %5916 = sst [smem:[#allocation40_spill]] %s5018_s28  ;;  %p228_p1 = scmp.ne.s32.totalorder %s5002_s8, %s4998_s4 }
  0x29   : > { %s5985_s29 = smov (%p50_p0, %s49_s29), 0  ;;  %s5987_s1 = smov (!%p50_p0, %s52_s1), %s5018_s28 }
  0x2a   : > { %5917 = sst [smem:[#allocation41_spill]] %s5985_s29  ;;  %s218_s11 = ssub.s32 %s5014_s5, %s5985_s29 }
  0x2b   : > { %p229_p2 = scmp.eq.s32.totalorder %s5022_s0, 0  ;;  %p54_p3 = scmp.ge.s32.totalorder %s5987_s1, 2 }
  0x2c   : > { %p219_p4 = scmp.eq.s32.totalorder %s218_s11, 0  ;;  %p234_p6 = scmp.ne.s32.totalorder %s4998_s4, %s4994_s7 }
  0x2d   : > { %p5230_p5 = por %p229_p2, %p228_p1  ;;  %s5989_s1 = smov (%p54_p3, %s5987_s1), 0 }
  0x2e   : > { %5919 = sst [smem:[#allocation42_spill]] %s5989_s1  ;;  %p5242_p7 = scmp.eq.s32.totalorder %s5868_s10, 0 }
  0x2f   : > { %s5238_s3 = scalar_select %p219_p4, %s5002_s8, %s221_s6  }
  0x30   : > { %s5921_s27 = scalar_select %p5242_p7, 1, 0 }
  0x31   : > { %5920 = sst [smem:[#allocation43_spill]] %s5238_s3  ;;  %p3562_p8 = scmp.ge.s32.totalorder %s5022_s0, 1 }
  0x32   : > { %5922 = sst [smem:[#allocation44_spill]] %s5921_s27  ;;  %p755_p9 = scmp.lt.s32.totalorder %s5022_s0, 5 }
  0x33   : > { %p5250_p10 = por %p5242_p7, %p234_p6  ;;  %s5925_s28 = sld [smem:[#allocation52_spill]] }
  0x34   : > { %p5257_p11 = pnand %p3562_p8, %p755_p9  ;;  %s5024_s10 = smov [#allocation7]  }
  0x35   : > { %s5923_s11 = scalar_select %p5250_p10, 1, 0 }
  0x36   : > { %s5926_s6 = scalar_select %p5257_p11, 1, 0 }
  0x37   : > { %5924 = sst [smem:[#allocation45_spill]] %s5923_s11  ;;  %p4155_p12 = pneg %p5257_p11 }
  0x38   : > { %5927 = sst [smem:[#allocation46_spill]] %s5926_s6  ;;  %s786_s3 = sshll.u32 %s5024_s10, 4  ;;  %s787_s3 = int_to_ptr.vmem [resolvable:$true] %s786_s3 }
  0x39   : > { %s784_s1 = sshll.u32 %s5925_s28, 4  ;;  %p5265_p13 = pnand %p4155_p12, %p5242_p7  ;;  %s785_s1 = int_to_ptr.hbm [resolvable:$true] %s784_s1 }
  0x3a   : > { %s5025_s28 = smov 64   ;;  %s5026_s29 = smov 4  }
  0x3b   : > { %4161 = dma.hbm_to_vmem [thread:$0]  (!%p5265_p13), %s785_s1, 512, %s787_s3, [#allocation8], %s5025_s28, %s5025_s28, %s5026_s29  }
  0x3c   : > { %s5929_s11 = sld [smem:[#allocation49_spill]]  ;;  %s5027_s10 = smov [#allocation5]  }
  0x3d   : > { %s772_s6 = sshll.u32 %s5027_s10, 4  ;;  %s5930_s25 = sld [smem:[#allocation72_spill]]  ;;  %s773_s6 = int_to_ptr.vmem [resolvable:$true] %s772_s6 }
  0x3e   : > { %s5028_s22 = smov [#allocation27]   ;;  %s5931_s26 = sld [smem:[#allocation73_spill]] }
  0x3f   : > { %s801_s21 = sshll.u32 %s5028_s22, 4  ;;  %s5029_s9 = smov [#allocation28]   ;;  %s802_s21 = int_to_ptr.vmem [resolvable:$true] %s801_s21 }
  0x40   : > { %p3567_p0 = scmp.ge.s32.totalorder %s5022_s0, 4 }
  0x41   : > { %s844_s22 = sand.u32 (!%p3567_p0), 1, %s5022_s0   ;;  %s5289_s20 = sand.u32 (!%p3567_p0), 1, %s5002_s8  }
  0x42   : > { %s770_s4 = sshll.u32 %s5929_s11, 4  ;;  %s813_s11 = sshll.u32 %s5029_s9, 4  ;;  %s771_s4 = int_to_ptr.hbm [resolvable:$true] %s770_s4  ;;  %s814_s11 = int_to_ptr.vmem [resolvable:$true] %s813_s11 }
  0x43   : > { %s799_s23 = sshll.u32 %s5930_s25, 4  ;;  %820 = sbr.rel (%p3567_p0) target bundleno = 149 (0x95), region = 40  ;;  %s800_s23 = int_to_ptr.hbm [resolvable:$true] %s799_s23 }
  0x44   : > { %4158 = dma.hbm_to_vmem [thread:$0]  (!%p5265_p13), %s771_s4, 16, %s773_s6, [#allocation6]  }
  0x45   : > { %s811_s3 = sshll.u32 %s5931_s26, 4  ;;  %s847_s4 = scalar_lea.vmem (!%p3567_p0), [#allocation9], %s5289_s20  ;;  %s812_s3 = int_to_ptr.hbm [resolvable:$true] %s811_s3 }
  0x46   : > { %4164 = dma.hbm_to_vmem [thread:$0]  (!%p5265_p13), %s800_s23, 16, %s802_s21, [#allocation8]  }
  0x47   : > { %4167 = dma.hbm_to_vmem [thread:$0]  (!%p5265_p13), %s812_s3, 16, %s814_s11, [#allocation29]  }
  0x48   : > { %s5932_s21 = sld [smem:[#allocation54_spill]]  ;;  %s854_s30 = sshll.u32 %s847_s4, 4  ;;  %s855_s30 = int_to_ptr.vmem [resolvable:$true] %s854_s30 }
  0x49   : > { %s4100_s28 = smul.u32 192, %s5289_s20  ;;  %s5297_s29 = scalar_lea.sflag [#allocation6], %s844_s22 }
  0x4a   : > { %s4101_s7 = smul.u32 192, %s5014_s5  ;;  %s5933_s11 = sld [smem:[#allocation55_spill]] }
  0x4b   : > { %s865_s10 = scalar_lea.vmem [#allocation10], %s4100_s28  ;;  %s5307_s22 = sshll.u32 %s5289_s20, 6 }
  0x4c   : > { %s873_s1 = sshll.u32 %s865_s10, 4  ;;  %s5313_s4 = sshll.u32 %s5014_s5, 6  ;;  %s874_s1 = int_to_ptr.vmem [resolvable:$true] %s873_s1 }
  0x4d   : > { %s5934_s28 = sld [smem:[#allocation56_spill]]  ;;  %s887_s10 = scalar_lea.vmem [#allocation11], %s5307_s22 }
  0x4e   : > { %s850_s23 = scalar_lea.hbm %s5932_s21, %s5014_s5  ;;  %s5030_s21 = smov 192  }
  0x4f   : > { %s852_s6 = sshll.u32 %s850_s23, 4  ;;  %s5031_s23 = smov 12   ;;  %s853_s6 = int_to_ptr.hbm [resolvable:$true] %s852_s6 }
  0x50   : > { %4111 = dma.hbm_to_vmem [thread:$0]  (%p5230_p5), %s853_s6, 16, %s855_s30, %s5297_s29  }
  0x51   : > { %s870_s24 = scalar_lea.hbm %s5933_s11, %s4101_s7  ;;  %s895_s3 = sshll.u32 %s887_s10, 4  ;;  %s896_s3 = int_to_ptr.vmem [resolvable:$true] %s895_s3 }
  0x52   : > { %s871_s27 = sshll.u32 %s870_s24, 4  ;;  %s5877_s11 = smov 64   ;;  %s872_s27 = int_to_ptr.hbm [resolvable:$true] %s871_s27 }
  0x53   : > { %4112 = dma.hbm_to_vmem [thread:$0]  (%p5230_p5), %s872_s27, 3072, %s874_s1, %s5297_s29, %s5030_s21, %s5030_s21, %s5031_s23  }
  0x54   : > { %s892_s7 = scalar_lea.hbm %s5934_s28, %s5313_s4  ;;  %s5879_s1 = smov 4  }
  0x55   : > { %s893_s9 = sshll.u32 %s892_s7, 4  ;;  %s5935_s21 = sld [smem:[#allocation57_spill]]  ;;  %s894_s9 = int_to_ptr.hbm [resolvable:$true] %s893_s9 }
  0x56   : > { %4113 = dma.hbm_to_vmem [thread:$0]  (%p5230_p5), %s894_s9, 1024, %s896_s3, %s5297_s29, %s5877_s11, %s5877_s11, %s5879_s1  }
  0x57   : > { %s908_s30 = scalar_lea.vmem [#allocation12], %s5289_s20  ;;  %s5936_s25 = sld [smem:[#allocation58_spill]] }
  0x58   : > { %s915_s6 = sshll.u32 %s908_s30, 4  ;;  %s925_s9 = scalar_lea.vmem [#allocation13], %s5289_s20  ;;  %s916_s6 = int_to_ptr.vmem [resolvable:$true] %s915_s6 }
  0x59   : > { %s932_s11 = sshll.u32 %s925_s9, 4  ;;  %s5937_s12 = sld [smem:[#allocation59_spill]]  ;;  %s933_s11 = int_to_ptr.vmem [resolvable:$true] %s932_s11 }
  0x5a   : > { %s942_s30 = scalar_lea.vmem [#allocation14], %s5289_s20  ;;  %s5938_s13 = sld [smem:[#allocation60_spill]] }
  0x5b   : > { %s911_s23 = scalar_lea.hbm %s5935_s21, %s5014_s5  ;;  %s5939_s27 = smov 64  }
  0x5c   : > { %s913_s28 = sshll.u32 %s911_s23, 4  ;;  %s4002_s21 = sshll.u32 %s5014_s5, 7  ;;  %s914_s28 = int_to_ptr.hbm [resolvable:$true] %s913_s28 }
  0x5d   : > { %4114 = dma.hbm_to_vmem [thread:$0]  (%p5230_p5), %s914_s28, 16, %s916_s6, %s5297_s29  }
  0x5e   : > { %s928_s3 = scalar_lea.hbm %s5936_s25, %s5014_s5  ;;  %s949_s6 = sshll.u32 %s942_s30, 4  ;;  %s950_s6 = int_to_ptr.vmem [resolvable:$true] %s949_s6 }
  0x5f   : > { %s930_s24 = sshll.u32 %s928_s3, 4  ;;  %s945_s23 = scalar_lea.hbm %s5937_s12, %s5014_s5  ;;  %s931_s24 = int_to_ptr.hbm [resolvable:$true] %s930_s24 }
  0x60   : > { %4115 = dma.hbm_to_vmem [thread:$0]  (%p5230_p5), %s931_s24, 16, %s933_s11, %s5297_s29  }
  0x61   : > { %s947_s28 = sshll.u32 %s945_s23, 4  ;;  %s965_s10 = scalar_lea.hbm %s5938_s13, %s5313_s4  ;;  %s948_s28 = int_to_ptr.hbm [resolvable:$true] %s947_s28 }
  0x62   : > { %4116 = dma.hbm_to_vmem [thread:$0]  (%p5230_p5), %s948_s28, 16, %s950_s6, %s5297_s29  }
  0x63   : > { %s960_s3 = scalar_lea.vmem [#allocation15], %s5307_s22  ;;  %s966_s9 = sshll.u32 %s965_s10, 4  ;;  %s967_s9 = int_to_ptr.hbm [resolvable:$true] %s966_s9 }
  0x64   : > { %s968_s11 = sshll.u32 %s960_s3, 4  ;;  %s3575_s24 = sshll.u32 %s5289_s20, 7  ;;  %s969_s11 = int_to_ptr.vmem [resolvable:$true] %s968_s11 }
  0x65   : > { %4117 = dma.hbm_to_vmem [thread:$0]  (%p5230_p5), %s967_s9, 1024, %s969_s11, %s5297_s29, %s5939_s27, %s5939_s27, %s5879_s1  }
  0x66   : > { %s5940_s14 = sld [smem:[#allocation61_spill]]  ;;  %s982_s28 = scalar_lea.vmem [#allocation16], %s3575_s24 }
  0x67   : > { %s990_s25 = sshll.u32 %s982_s28, 4  ;;  %s5034_s10 = smov 128   ;;  %s991_s25 = int_to_ptr.vmem [resolvable:$true] %s990_s25 }
  0x68   : > { %s5035_s3 = smov 8   ;;  %s5941_s15 = sld [smem:[#allocation62_spill]] }
  0x69   : > { %s5942_s16 = sld [smem:[#allocation63_spill]]  ;;  %s5948_s28 = smov 4  }
  0x6a   : > { %s5943_s17 = sld [smem:[#allocation64_spill]]  ;;  %s1155_s13 = scalar_lea.vmem [#allocation25], %s5307_s22 }
  0x6b   : > { %s5944_s18 = sld [smem:[#allocation65_spill]] }
  0x6c   : > { %s987_s6 = scalar_lea.hbm %s5940_s14, %s4002_s21  ;;  %s1004_s21 = scalar_lea.vmem [#allocation17], %s5307_s22 }
  0x6d   : > { %s988_s7 = sshll.u32 %s987_s6, 4  ;;  %s1012_s30 = sshll.u32 %s1004_s21, 4  ;;  %s989_s7 = int_to_ptr.hbm [resolvable:$true] %s988_s7  ;;  %s1013_s30 = int_to_ptr.vmem [resolvable:$true] %s1012_s30 }
  0x6e   : > { %4118 = dma.hbm_to_vmem [thread:$0]  (%p5230_p5), %s989_s7, 2048, %s991_s25, %s5297_s29, %s5034_s10, %s5034_s10, %s5035_s3  }
  0x6f   : > { %s1009_s23 = scalar_lea.hbm %s5941_s15, %s5313_s4  ;;  %s1028_s25 = scalar_lea.hbm %s5942_s16, %s5014_s5 }
  0x70   : > { %s1010_s24 = sshll.u32 %s1009_s23, 4  ;;  %s1025_s7 = scalar_lea.vmem [#allocation18], %s5289_s20  ;;  %s1011_s24 = int_to_ptr.hbm [resolvable:$true] %s1010_s24 }
  0x71   : > { %4119 = dma.hbm_to_vmem [thread:$0]  (%p5230_p5), %s1011_s24, 1024, %s1013_s30, %s5297_s29, %s5939_s27, %s5939_s27, %s5879_s1  }
  0x72   : > { %s1032_s10 = sshll.u32 %s1025_s7, 4  ;;  %s1030_s3 = sshll.u32 %s1028_s25, 4  ;;  %s1033_s10 = int_to_ptr.vmem [resolvable:$true] %s1032_s10  ;;  %s1031_s3 = int_to_ptr.hbm [resolvable:$true] %s1030_s3 }
  0x73   : > { %4120 = dma.hbm_to_vmem [thread:$0]  (%p5230_p5), %s1031_s3, 16, %s1033_s10, %s5297_s29  }
  0x74   : > { %s1045_s23 = scalar_lea.hbm %s5943_s17, %s5014_s5  ;;  %s1042_s21 = scalar_lea.vmem [#allocation19], %s5289_s20 }
  0x75   : > { %s1049_s30 = sshll.u32 %s1042_s21, 4  ;;  %s1047_s24 = sshll.u32 %s1045_s23, 4  ;;  %s1050_s30 = int_to_ptr.vmem [resolvable:$true] %s1049_s30  ;;  %s1048_s24 = int_to_ptr.hbm [resolvable:$true] %s1047_s24 }
  0x76   : > { %4121 = dma.hbm_to_vmem [thread:$0]  (%p5230_p5), %s1048_s24, 16, %s1050_s30, %s5297_s29  }
  0x77   : > { %s1062_s25 = scalar_lea.hbm %s5944_s18, %s5014_s5  ;;  %s1059_s7 = scalar_lea.vmem [#allocation20], %s5289_s20 }
  0x78   : > { %s1066_s10 = sshll.u32 %s1059_s7, 4  ;;  %s1064_s3 = sshll.u32 %s1062_s25, 4  ;;  %s1067_s10 = int_to_ptr.vmem [resolvable:$true] %s1066_s10  ;;  %s1065_s3 = int_to_ptr.hbm [resolvable:$true] %s1064_s3 }
  0x79   : > { %4122 = dma.hbm_to_vmem [thread:$0]  (%p5230_p5), %s1065_s3, 16, %s1067_s10, %s5297_s29  }
  0x7a   : > { %s5945_s19 = sld [smem:[#allocation66_spill]]  ;;  %s1077_s21 = scalar_lea.vmem [#allocation21], %s5307_s22 }
  0x7b   : > { %s1085_s30 = sshll.u32 %s1077_s21, 4  ;;  %s5946_s25 = sld [smem:[#allocation67_spill]]  ;;  %s1086_s30 = int_to_ptr.vmem [resolvable:$true] %s1085_s30 }
  0x7c   : > { %s1098_s10 = scalar_lea.vmem [#allocation22], %s5289_s20  ;;  %s5947_s21 = sld [smem:[#allocation68_spill]] }
  0x7d   : > { %s1105_s3 = sshll.u32 %s1098_s10, 4  ;;  %s5949_s10 = sld [smem:[#allocation69_spill]]  ;;  %s1106_s3 = int_to_ptr.vmem [resolvable:$true] %s1105_s3 }
  0x80   : > { %s1082_s23 = scalar_lea.hbm %s5945_s19, %s5313_s4 }
  0x81   : > { %s1083_s24 = sshll.u32 %s1082_s23, 4  ;;  %s1101_s7 = scalar_lea.hbm %s5946_s25, %s5014_s5  ;;  %s1084_s24 = int_to_ptr.hbm [resolvable:$true] %s1083_s24 }
  0x82   : > { %4123 = dma.hbm_to_vmem [thread:$0]  (%p5230_p5), %s1084_s24, 1024, %s1086_s30, %s5297_s29, %s5939_s27, %s5939_s27, %s5879_s1  }
  0x83   : > { %s1103_s11 = sshll.u32 %s1101_s7, 4  ;;  %s1121_s30 = scalar_lea.hbm %s5947_s21, %s5313_s4  ;;  %s1104_s11 = int_to_ptr.hbm [resolvable:$true] %s1103_s11 }
  0x84   : > { %4124 = dma.hbm_to_vmem [thread:$0]  (%p5230_p5), %s1104_s11, 16, %s1106_s3, %s5297_s29  }
  0x85   : > { %s1116_s24 = scalar_lea.vmem [#allocation23], %s5307_s22  ;;  %s1122_s6 = sshll.u32 %s1121_s30, 4  ;;  %s1123_s6 = int_to_ptr.hbm [resolvable:$true] %s1122_s6 }
  0x86   : > { %s1124_s1 = sshll.u32 %s1116_s24, 4  ;;  %s1140_s3 = scalar_lea.hbm %s5949_s10, %s5014_s5  ;;  %s1125_s1 = int_to_ptr.vmem [resolvable:$true] %s1124_s1 }
  0x87   : > { %4125 = dma.hbm_to_vmem [thread:$0]  (%p5230_p5), %s1123_s6, 1024, %s1125_s1, %s5297_s29, %s5939_s27, %s5939_s27, %s5948_s28  }
  0x88   : > { %s1137_s11 = scalar_lea.vmem [#allocation24], %s5289_s20  ;;  %s1142_s23 = sshll.u32 %s1140_s3, 4  ;;  %s1143_s23 = int_to_ptr.hbm [resolvable:$true] %s1142_s23 }
  0x89   : > { %s1144_s9 = sshll.u32 %s1137_s11, 4  ;;  %s5950_s24 = sld [smem:[#allocation70_spill]]  ;;  %s1145_s9 = int_to_ptr.vmem [resolvable:$true] %s1144_s9 }
  0x8a   : > { %4126 = dma.hbm_to_vmem [thread:$0]  (%p5230_p5), %s1143_s23, 16, %s1145_s9, %s5297_s29  }
  0x8b   : > { %s1163_s1 = sshll.u32 %s1155_s13, 4  ;;  %s5951_s10 = sld [smem:[#allocation71_spill]]  ;;  %s1164_s1 = int_to_ptr.vmem [resolvable:$true] %s1163_s1 }
  0x8c   : > { %s1176_s11 = scalar_lea.vmem [#allocation26], %s5289_s20 }
  0x8d   : > { %s1183_s9 = sshll.u32 %s1176_s11, 4  ;;  %s1184_s9 = int_to_ptr.vmem [resolvable:$true] %s1183_s9 }
  0x8f   : > { %s1160_s12 = scalar_lea.hbm %s5950_s24, %s5313_s4 }
  0x90   : > { %s1161_s6 = sshll.u32 %s1160_s12, 4  ;;  %s1162_s6 = int_to_ptr.hbm [resolvable:$true] %s1161_s6 }
  0x91   : > { %4127 = dma.hbm_to_vmem [thread:$0]  (%p5230_p5), %s1162_s6, 1024, %s1164_s1, %s5297_s29, %s5939_s27, %s5939_s27, %s5948_s28  }
  0x92   : > { %s1179_s3 = scalar_lea.hbm %s5951_s10, %s5014_s5 }
  0x93   : > { %s1181_s23 = sshll.u32 %s1179_s3, 4  ;;  %s1182_s23 = int_to_ptr.hbm [resolvable:$true] %s1181_s23 }
  0x94   : > { %4128 = dma.hbm_to_vmem [thread:$0]  (%p5230_p5), %s1182_s23, 16, %s1184_s9, %s5297_s29  }
  0x95 PF: > { %1192 = sbr.rel (%p5257_p11) target bundleno = 4065 (0xfe1), region = 128 }
  0x9a   : > { %4973 = dma.done.wait (%p5242_p7), [#allocation6], 16  }
  0x9b   : > { %4975 = vsyncadd (%p5242_p7), [#allocation6], 4294967280 }
  0x9c   : > { %4977 = dma.done.wait (%p5242_p7), [#allocation8], 512  }
  0x9d   : > { %4979 = vsyncadd (%p5242_p7), [#allocation8], 4294966784  ;;  %s5954_s20 = sadd.s32 4294967295, %s5022_s0   ;;  %s5955_s2 = sld [smem:[#allocation35_spill]] }
  0x9e   : > { %s1204_s22 = sand.u32 1, %s5954_s20  }
  0x9f   : > { %s1205_s27 = scalar_lea.sflag [#allocation6], %s1204_s22 }
  0xa3   : > { %s5474_s4 = sand.u32 1, %s5955_s2  }
  0xa4   : > { %4981 = dma.done.wait (%p5250_p10), %s1205_s27, 11424  }
  0xa5   : > { %4983 = vsyncadd (%p5250_p10), %s1205_s27, 4294955872  ;;  %s4102_s21 = smul.u32 192, %s5474_s4  ;;  %s3593_s30 = sshll.u32 %s5474_s4, 6 }
  0xa6   : > { %s3595_s24 = sshll.u32 %s5474_s4, 7  ;;  %s5486_s6 = scalar_lea.vmem [#allocation11], %s3593_s30 }
  0xa7   : > { %s5484_s1 = scalar_lea.vmem [#allocation10], %s4102_s21  ;;  %s5491_s3 = scalar_lea.vmem [#allocation15], %s3593_s30 }
  0xa8   : > { %s5493_s11 = scalar_lea.vmem [#allocation16], %s3595_s24  ;;  %s5495_s9 = scalar_lea.vmem [#allocation17], %s3593_s30 }
  0xa9   : > { %s5500_s2 = scalar_lea.vmem [#allocation21], %s3593_s30  ;;  %s5503_s22 = scalar_lea.vmem [#allocation23], %s3593_s30 }
  0xaa   : > { %s5506_s21 = scalar_lea.vmem [#allocation25], %s3593_s30 }
  0xab   : > { %4985 = dma.done.wait (%p5242_p7), [#allocation8], 16  }
  0xac   : > { %4987 = vsyncadd (%p5242_p7), [#allocation8], 4294967280 }
  0xad   : > { %4989 = dma.done.wait (%p5242_p7), [#allocation29], 16  }
  0xae   : > { %4991 = vsyncadd (%p5242_p7), [#allocation29], 4294967280  ;;  %s5957_s24 = sld [smem:[#allocation38_spill]] }
  0xaf   : > { %s5958_s20 = sld [smem:[#allocation37_spill]] }
  0xb0   : > { %s5959_s23 = sld [smem:[#allocation47_spill]] }
  0xb1   : > { %s5960_s13 = sld [smem:[#allocation51_spill]] }
  0xb2   : > { %s5961_s17 = sld [smem:[#allocation53_spill]] }
  0xb3   : > { %s5962_s5 = sld [smem:[#allocation74_spill]] }
  0xb4   : > { %p1535_p1 = scmp.lt.s32.totalorder %s5957_s24, 1 }
  0xb5   : > { %p1543_p2 = scmp.lt.s32.totalorder %s5958_s20, 1  ;;  %p3605_p3 = scmp.ne.s32.totalorder %s5958_s20, 0 }
  0xb6   : > { %s5991_s24 = smov (!%p1535_p1, %s5957_s24), 1 }
  0xb7   : > { %s5521_s30 = scalar_select %p1543_p2, %s5958_s20, 1 }
  0xb8   : > { %s3602_s25 = sshll.u32 %s5991_s24, 3  ;;  %s3603_s27 = sshll.u32 %s5991_s24, 2 }
  0xb9   : > { %s1538_s10 = scalar_lea.vmem %s5959_s23, %s3602_s25  ;;  %s1542_s14 = scalar_lea.vmem %s5960_s13, %s3603_s27 }
  0xba   : > { %s1545_s18 = scalar_lea.vmem %s5961_s17, %s5521_s30  ;;  %s5536_s8 = scalar_lea.vmem %s5962_s5, %s3603_s27 }
  0xbb   : > { %1554 = sbr.rel (%p3605_p3) target bundleno = 342 (0x156), region = 220  ;;  %s5963_s25 = sld [smem:[#allocation48_spill]] (!%p3605_p3) }
  0xbc   : > { %s5964_s17 = sld [smem:[#allocation50_spill]] (!%p3605_p3) }
  0xc0   : > { %v4011_v0 = vld [vmem:[#allocation7 + $0x18] sm:$0xff]  ;;  %v1555_v2 = vld [vmem:[%s1538_s10] sm:$0xff]  ;;  %vm1569_vm0 = vcmask 130048   ;;  %v4008_v6 = vld [vmem:[#allocation7] sm:$0xff]  ;;  %vm1622_vm1 = vcmask 523264  }
  0xc1   : > { %v4007_v1 = vld [vmem:[%s5963_s25] sm:$0xff]  ;;  %1630 = vmatpush.bf16.msra.mxu1 %v4011_v0  ;;  %v1556_v4 = vpack.c.bf16 %v1555_v2, %v1555_v2  ;;  %v4256_v8 = vld [vmem:[#allocation5] ss:$0 sm:$0xff] }
  0xc2   : > { %1580 = vmatpush.bf16.msra.mxu0 %v4007_v1  ;;  %v4010_v3 = vld [vmem:[#allocation7 + $0x10] sm:$0xff]  ;;  %v4009_v5 = vld [vmem:[#allocation7 + $0x8] sm:$0xff] }
  0xc3   : > { %v1589_v7 = vld [vmem:[%s1542_s14] sm:$0xf] }
  0xc4   : > { %v1586_v10 = vld [vmem:[%s5964_s17] sm:$0xff] }
  0xc5   : > { %3610 = vmatmul.msk.bf16.vlgmr.msra.gmra.mxu0 %vm1569_vm0, %v1556_v4  ;;  %1631 = vmatpush.bf16.msra.mxu1 %v4010_v3 }
  0xc9   : > { %1632 = vmatpush.bf16.msra.mxu1 %v4009_v5 }
  0xcd   : > { %1633 = vmatpush.bf16.msra.mxu1 %v4008_v6 }
  0xd0   : > { %3627 = vmatmul.msk.bf16.vlgmr.msra.gmra.mxu1 %vm1622_vm1, %v1589_v7 }
 0x142   : > { %v1582_v9 = vpop.f32.mrf.mxu0 }
 0x143   : > { %v1583_v11 = vadd.f32 %v4256_v8, %v1582_v9 }
 0x145   : > { %v1587_v12 = vadd.f32 %v1586_v10, %v1583_v11 }
 0x147   : > { %1588 = vst [vmem:[#allocation2] sm:$0xff] %v1587_v12 }
 0x14a   : > { %v1584_v13 = vpop.f32.mrf.mxu0 }
 0x14d   : > { %v1635_v14 = vpop.f32.mrf.mxu1 }
 0x14e   : > { %v1639_v15 = vpack.c.bf16 %v1635_v14, %v1635_v14 }
 0x150   : > { %1640 = vst [vmem:[#allocation4] sm:$0xf] %v1639_v15 }
 0x155   : > { %v1637_v16 = vpop.f32.mrf.mxu1 }
 0x156 PF: > { %v5545_v17 = vld [vmem:[#allocation2] sm:$0xff]  ;;  %v5036_v18 = vmov 128.0   ;;  %v4034_v20 = vld [vmem:[%s5484_s1 + $0xb0] sm:$0xf0]  ;;  %v3716_v23 = vld [vmem:[%s5484_s1 + $0xb4] sm:$0xf0] }
 0x157   : > { %1642 = vadd.xlane.f32.xlu0 %v5545_v17  ;;  %4268 = vrcp.f32 %v5036_v18  ;;  %v3714_v19 = vld [vmem:[%s5484_s1 + $0xa8] sm:$0xf]  ;;  %v4033_v21 = vld [vmem:[%s5484_s1 + $0xac] sm:$0xf]  ;;  %v3722_v24 = vld [vmem:[%s5484_s1 + $0xb0] sm:$0xf] }
 0x158   : > { %v3715_v22 = vor.u32 %v4034_v20, %v3714_v19  ;;  %v4035_v25 = vld [vmem:[%s5484_s1 + $0xb8] sm:$0xf0]  ;;  %v3719_v26 = vor.u32 %v4033_v21, %v3716_v23  ;;  %v3702_v38 = vld [vmem:[%s5484_s1 + $0x90] sm:$0xf]  ;;  %v4030_v40 = vld [vmem:[%s5484_s1 + $0x94] sm:$0xf] }
 0x159   : > { %v3723_v27 = vor.u32 %v4035_v25, %v3722_v24  ;;  %v4031_v39 = vld [vmem:[%s5484_s1 + $0x98] sm:$0xf0]  ;;  %v3704_v42 = vld [vmem:[%s5484_s1 + $0x9c] sm:$0xf0]  ;;  %v3710_v43 = vld [vmem:[%s5484_s1 + $0x98] sm:$0xf] }
 0x15a   : > { %1840 = vmatpush.bf16.msra.mxu0 %v3715_v22  ;;  %1853 = vmatpush.bf16.msra.mxu1 %v3719_v26  ;;  %v3703_v41 = vor.u32 %v4031_v39, %v3702_v38  ;;  %v4032_v44 = vld [vmem:[%s5484_s1 + $0xa0] sm:$0xf0]  ;;  %v3707_v45 = vor.u32 %v4030_v40, %v3704_v42  ;;  %v3690_v47 = vld [vmem:[%s5484_s1 + $0x78] sm:$0xf]  ;;  %v4027_v49 = vld [vmem:[%s5484_s1 + $0x7c] sm:$0xf] }
 0x15b   : > { %1866 = vmatpush.bf16.msra.mxu2 %v3723_v27  ;;  %v3711_v46 = vor.u32 %v4032_v44, %v3710_v43  ;;  %v4028_v48 = vld [vmem:[%s5484_s1 + $0x80] sm:$0xf0]  ;;  %v3692_v51 = vld [vmem:[%s5484_s1 + $0x84] sm:$0xf0]  ;;  %v3698_v52 = vld [vmem:[%s5484_s1 + $0x80] sm:$0xf] }
 0x15c   : > { %v3691_v50 = vor.u32 %v4028_v48, %v3690_v47  ;;  %v4029_v53 = vld [vmem:[%s5484_s1 + $0x88] sm:$0xf0]  ;;  %v3695_v54 = vor.u32 %v4027_v49, %v3692_v51  ;;  %v3678_v56 = vld [vmem:[%s5484_s1 + $0x60] sm:$0xf]  ;;  %v4024_v58 = vld [vmem:[%s5484_s1 + $0x64] sm:$0xf] }
 0x15d   : > { %v4269_v28 = vpop.eup %4268  ;;  %v3699_v55 = vor.u32 %v4029_v53, %v3698_v52  ;;  %v4025_v57 = vld [vmem:[%s5484_s1 + $0x68] sm:$0xf0]  ;;  %v3680_v60 = vld [vmem:[%s5484_s1 + $0x6c] sm:$0xf0]  ;;  %v3686_v61 = vld [vmem:[%s5484_s1 + $0x68] sm:$0xf] }
 0x15e   : > { %v1645_v29 = vmul.f32 128.0, %v4269_v28  ;;  %vm1649_vm2 = vweird.f32 %v4269_v28  ;;  %1841 = vmatpush.bf16.msra.mxu0 %v3703_v41  ;;  %1854 = vmatpush.bf16.msra.mxu1 %v3707_v45  ;;  %v3679_v59 = vor.u32 %v4025_v57, %v3678_v56  ;;  %v4026_v62 = vld [vmem:[%s5484_s1 + $0x70] sm:$0xf0]  ;;  %v3683_v63 = vor.u32 %v4024_v58, %v3680_v60  ;;  %v3666_v1 = vld [vmem:[%s5484_s1 + $0x48] sm:$0xf]  ;;  %s5966_s5 = scalar_lea.vmem [#allocation9], %s5474_s4 }
 0x15f   : > { %1867 = vmatpush.bf16.msra.mxu2 %v3711_v46  ;;  %v3687_v0 = vor.u32 %v4026_v62, %v3686_v61  ;;  %v4022_v2 = vld [vmem:[%s5484_s1 + $0x50] sm:$0xf0]  ;;  %v4021_v3 = vld [vmem:[%s5484_s1 + $0x4c] sm:$0xf]  ;;  %v3668_v5 = vld [vmem:[%s5484_s1 + $0x54] sm:$0xf0] }
 0x160   : > { %v1646_v30 = vsub.f32 1.0, %v1645_v29  ;;  %v3667_v4 = vor.u32 %v4022_v2, %v3666_v1  ;;  %v3674_v6 = vld [vmem:[%s5484_s1 + $0x50] sm:$0xf]  ;;  %v4023_v7 = vld [vmem:[%s5484_s1 + $0x58] sm:$0xf0]  ;;  %v3671_v8 = vor.u32 %v4021_v3, %v3668_v5  ;;  %vm1882_vm6 = vcmask 261120  }
 0x161   : > { %v3675_v9 = vor.u32 %v4023_v7, %v3674_v6  ;;  %v3654_v10 = vld [vmem:[%s5484_s1 + $0x30] sm:$0xf]  ;;  %v4019_v11 = vld [vmem:[%s5484_s1 + $0x38] sm:$0xf0]  ;;  %v4018_v12 = vld [vmem:[%s5484_s1 + $0x34] sm:$0xf] }
 0x162   : > { %v1647_v31 = vmul.f32 %v4269_v28, %v1646_v30  ;;  %1842 = vmatpush.bf16.msra.mxu0 %v3691_v50  ;;  %1855 = vmatpush.bf16.msra.mxu1 %v3695_v54  ;;  %v3655_v13 = vor.u32 %v4019_v11, %v3654_v10  ;;  %v3656_v14 = vld [vmem:[%s5484_s1 + $0x3c] sm:$0xf0]  ;;  %v3662_v15 = vld [vmem:[%s5484_s1 + $0x38] sm:$0xf]  ;;  %v4020_v16 = vld [vmem:[%s5484_s1 + $0x40] sm:$0xf0] }
 0x163   : > { %1868 = vmatpush.bf16.msra.mxu2 %v3699_v55  ;;  %v3659_v18 = vor.u32 %v4018_v12, %v3656_v14  ;;  %v3663_v19 = vor.u32 %v4020_v16, %v3662_v15  ;;  %v3642_v20 = vld [vmem:[%s5484_s1 + $0x18] sm:$0xf]  ;;  %v4016_v21 = vld [vmem:[%s5484_s1 + $0x20] sm:$0xf0]  ;;  %v4015_v22 = vld [vmem:[%s5484_s1 + $0x1c] sm:$0xf] }
 0x164   : > { %v1648_v32 = vadd.f32 %v4269_v28, %v1647_v31  ;;  %v3643_v23 = vor.u32 %v4016_v21, %v3642_v20  ;;  %v3644_v24 = vld [vmem:[%s5484_s1 + $0x24] sm:$0xf0]  ;;  %v3650_v25 = vld [vmem:[%s5484_s1 + $0x20] sm:$0xf]  ;;  %v4017_v26 = vld [vmem:[%s5484_s1 + $0x28] sm:$0xf0] }
 0x165   : > { %v3647_v27 = vor.u32 %v4015_v22, %v3644_v24  ;;  %v3630_v29 = vld [vmem:[%s5484_s1] sm:$0xf]  ;;  %v4013_v30 = vld [vmem:[%s5484_s1 + $0x8] sm:$0xf0]  ;;  %v4012_v31 = vld [vmem:[%s5484_s1 + $0x4] sm:$0xf] }
 0x166   : > { %v5554_v33 = vsel %vm1649_vm2, %v4269_v28, %v1648_v32  ;;  %1843 = vmatpush.bf16.msra.mxu0 %v3679_v59  ;;  %1856 = vmatpush.bf16.msra.mxu1 %v3683_v63  ;;  %v3651_v28 = vor.u32 %v4017_v26, %v3650_v25  ;;  %v3631_v32 = vor.u32 %v4013_v30, %v3630_v29  ;;  %v4257_v49 = vld [vmem:[%s1545_s18] ss:$0 sm:$0xff]  ;;  %s5037_s18 = smov 64   ;;  %s5038_s28 = smov 96   ;;  %vm1918_vm7 = vcmask 1043456  }
 0x167   : > { %1869 = vmatpush.bf16.msra.mxu2 %v3687_v0  ;;  %v4258_v52 = vld [vmem:[%s5966_s5] ss:$0 sm:$0xff]  ;;  %vm1902_vm8 = vcmask 64512   ;;  %vm2005_vm9 = vcmask 523520   ;;  %vm2067_vm10 = vcmask 785920   ;;  %vm2129_vm11 = vcmask 1048320  }
 0x168   : > { %s5968_s7 = scalar_lea.vmem [#allocation13], %s5474_s4  ;;  %s5969_s10 = scalar_lea.vmem [#allocation14], %s5474_s4 }
 0x169   : > { %s5973_s23 = scalar_lea.vmem [#allocation22], %s5474_s4  ;;  %s5974_s20 = scalar_lea.vmem [#allocation24], %s5474_s4 }
 0x16a   : > { %1844 = vmatpush.bf16.msra.mxu0 %v3667_v4  ;;  %1857 = vmatpush.bf16.msra.mxu1 %v3671_v8  ;;  %s5976_s29 = sld [smem:[#allocation37_spill]] }
 0x16b   : > { %1870 = vmatpush.bf16.msra.mxu2 %v3675_v9 }
 0x16e   : > { %1845 = vmatpush.bf16.msra.mxu0 %v3655_v13  ;;  %1858 = vmatpush.bf16.msra.mxu1 %v3659_v18 }
 0x16f   : > { %1871 = vmatpush.bf16.msra.mxu2 %v3663_v19 }
 0x170   : > { %p3997_p4 = scmp.ne.s32.totalorder %s5976_s29, 1 }
 0x172   : > { %1846 = vmatpush.bf16.msra.mxu0 %v3643_v23  ;;  %1859 = vmatpush.bf16.msra.mxu1 %v3647_v27 }
 0x173   : > { %1872 = vmatpush.bf16.msra.mxu2 %v3651_v28 }
 0x176   : > { %1847 = vmatpush.bf16.msra.mxu0 %v3631_v32 }
 0x1ca   : > { %v1643_v34 = vpop.xlane.xlu0 %1642 }
 0x1cb   : > { %v1651_v35 = vmul.f32 %v5554_v33, %v1643_v34  ;;  %v3632_v34 = vld [vmem:[%s5484_s1 + $0xc] sm:$0xf0] }
 0x1cc   : > { %v3635_v38 = vor.u32 %v4012_v31, %v3632_v34 }
 0x1cd   : > { %v5558_v36 = vsub.f32 %v5545_v17, %v1651_v35  ;;  %v3638_v35 = vld [vmem:[%s5484_s1 + $0x8] sm:$0xf] }
 0x1ce   : > { %1860 = vmatpush.bf16.msra.mxu1 %v3635_v38 }
 0x1cf   : > { %v1653_v37 = vmul.f32 %v5558_v36, %v5558_v36 }
 0x1d1   : > { %1654 = vadd.xlane.f32.xlu0 %v1653_v37  ;;  %v4014_v37 = vld [vmem:[%s5484_s1 + $0x10] sm:$0xf0]  ;;  %s5039_s1 = smov 32  }
 0x1d2   : > { %v3639_v39 = vor.u32 %v4014_v37, %v3638_v35 }
 0x1d4   : > { %1873 = vmatpush.bf16.msra.mxu2 %v3639_v39 }
 0x244   : > { %v1655_v40 = vpop.xlane.xlu0 %1654 }
 0x245   : > { %v1656_v41 = vmul.f32 %v1655_v40, %v5554_v33 }
 0x247   : > { %v1657_v42 = vadd.f32 1e-05, %v1656_v41 }
 0x249   : > { %4270 = vrsqrt.f32 %v1657_v42  ;;  %vm1664_vm4 = vweird.f32 %v1657_v42 }
 0x24f   : > { %v4271_v43 = vpop.eup %4270 }
 0x250   : > { %v1659_v44 = vmul.f32 %v4271_v43, %v1657_v42  ;;  %vm1665_vm3 = vweird.f32 %v4271_v43 }
 0x251   : > { %vm1666_vm5 = vmor %vm1664_vm4, %vm1665_vm3 }
 0x252   : > { %v1660_v45 = vmul.f32 %v4271_v43, %v1659_v44 }
 0x254   : > { %v1661_v46 = vmul.f32 0.5, %v1660_v45 }
 0x256   : > { %v1662_v47 = vsub.f32 1.5, %v1661_v46 }
 0x258   : > { %v1663_v48 = vmul.f32 %v4271_v43, %v1662_v47 }
 0x25a   : > { %v1667_v50 = vsel %vm1666_vm5, %v4271_v43, %v1663_v48 }
 0x25b   : > { %v1668_v51 = vmul.f32 %v1667_v50, %v5558_v36 }
 0x25d   : > { %v1673_v53 = vmul.f32 %v4257_v49, %v1668_v51 }
 0x25f   : > { %v1678_v54 = vadd.f32 %v4258_v52, %v1673_v53 }
 0x261   : > { %v1679_v55 = vpack.c.bf16 %v1678_v54, %v1678_v54 }
 0x263   : > { %1848 = vmatmul.bf16.vlgmr.msra.gmra.mxu0 %v1679_v55  ;;  %1861 = vmatmul.bf16.vlgmr.msra.gmra.mxu1 %v1679_v55 }
 0x264   : > { %1874 = vmatmul.bf16.vlgmr.msra.gmra.mxu2 %v1679_v55 }
 0x2e0   : > { %v1849_v56 = vpop.f32.mrf.mxu0  ;;  %v1862_v57 = vpop.f32.mrf.mxu1 }
 0x2e1   : > { %v1880_v58 = vpack.c.bf16 %v1862_v57, %v1862_v57  ;;  %v1879_v61 = vpack.c.bf16 %v1849_v56, %v1849_v56 }
 0x2e3   : > { %v1942_v59 = vunpack.c.l.b16 %v1880_v58  ;;  %v1887_v60 = vsel %vm1882_vm6, %v1880_v58, 0  ;;  %v1937_v2 = vunpack.c.l.b16 %v1879_v61 }
 0x2e4   : > { %1896 = vmatpush.bf16.xpose.msra.mxu3 %v1887_v60 }
 0x2e5   : > { %v1943_v62 = vpack.c.b16 %v1942_v59, %v1942_v59  ;;  %v1938_v4 = vpack.c.b16 %v1937_v2, %v1937_v2 }
 0x2e7   : > { %v1875_v63 = vpop.f32.mrf.mxu2  ;;  %2009 = vrot.lane.b32.xlu0 %v1943_v62, %s5037_s18  ;;  %1944 = vrot.lane.b32.xlu2 %v1943_v62, %s5038_s28 }
 0x2e8   : > { %v1881_v36 = vpack.c.bf16 %v1875_v63, %v1875_v63  ;;  %v1851_v0 = vpop.f32.mrf.mxu0  ;;  %v1864_v1 = vpop.f32.mrf.mxu1 }
 0x2ea   : > { %v1920_v3 = vsel %vm1918_vm7, %v1881_v36, 0  ;;  %v1978_v23 = vunpack.c.l.b16 %v1881_v36 }
 0x2eb   : > { %3724 = vmatmul.msk.bf16.vlgmr.msra.gmra.mxu3 %vm1882_vm6, %v1879_v61 }
 0x2ec   : > { %1929 = vmatpush.bf16.msrb.mxu3 %v1920_v3  ;;  %v1979_v25 = vpack.c.b16 %v1978_v23, %v1978_v23  ;;  %v4038_v23 = vld [vmem:[%s5486_s6 + $0x10] sm:$0xff] }
 0x2ef   : > { %v1877_v5 = vpop.f32.mrf.mxu2  ;;  %1939 = vrot.lane.b32.xlu2 %v1938_v4, %s5038_s28 }
 0x2f7   : > { %2007 = vrot.lane.b32.xlu2 %v1938_v4, %s5037_s18 }
 0x2ff   : > { %2069 = vrot.lane.b32.xlu2 %v1938_v4, %s5039_s1 }
 0x341   : > { %v1945_v6 = vpop.permute.xlu2 %1944 }
 0x342   : > { %v1950_v7 = vsel %vm1882_vm6, %v1945_v6, 0 }
 0x343   : > { %1959 = vmatpush.bf16.xpose.msra.mxu3 %v1950_v7 }
 0x349   : > { %v1940_v8 = vpop.permute.xlu2 %1939 }
 0x351   : > { %v2008_v11 = vpop.permute.xlu2 %2007 }
 0x359   : > { %v2010_v9 = vpop.permute.xlu0 %2009  ;;  %v2070_v37 = vpop.permute.xlu2 %2069 }
 0x35a   : > { %v2015_v10 = vsel %vm1882_vm6, %v2010_v9, 0 }
 0x35b   : > { %2024 = vmatpush.bf16.xpose.msrb.mxu1 %v2015_v10 }
 0x362   : > { %3728 = vmatmul.msk.bf16.vlgmr.msrb.gmra.mxu1 %vm1882_vm6, %v2008_v11 }
 0x36e   : > { %v1898_v12 = vpop.f32.mrf.mxu3 }
 0x36f   : > { %v1903_v13 = vsel %vm1902_vm8, %v1898_v12, -inf }
 0x370   : > { %1904 = vmax.xlane.f32.xlu1 %v1903_v13 }
 0x376   : > { %v1900_v14 = vpop.f32.mrf.mxu3 }
 0x377   : > { %v4043_v14 = vld [vmem:[%s5486_s6 + $0x38] sm:$0xff] }
 0x378   : > { %2197 = vmatpush.bf16.msra.mxu1 %v4043_v14 }
 0x3df   : > { %v2026_v15 = vpop.f32.mrf.mxu1 }
 0x3e0   : > { %v2030_v16 = vsel %vm1902_vm8, %v2026_v15, -inf }
 0x3e1   : > { %2031 = vmax.xlane.f32.xlu0 %v2030_v16 }
 0x3e3   : > { %v1905_v18 = vpop.xlane.xlu1 %1904 }
 0x3e4   : > { %v1906_v19 = vsub.f32 %v1898_v12, %v1905_v18  ;;  %v4041_v18 = vld [vmem:[%s5486_s6 + $0x28] sm:$0xff] }
 0x3e6   : > { %v1907_v20 = vmul.f32 1.442695, %v1906_v19 }
 0x3e7   : > { %v2028_v21 = vpop.f32.mrf.mxu1 }
 0x3e8   : > { %4272 = vpow2.f32 %v1907_v20  ;;  %v4040_v21 = vld [vmem:[%s5486_s6 + $0x20] sm:$0xff] }
 0x3ee   : > { %v4273_v22 = vpop.eup %4272 }
 0x3ef   : > { %v1909_v24 = vsel %vm1902_vm8, %v4273_v22, 0.0 }
 0x3f0   : > { %1910 = vadd.xlane.f32.xlu1 %v1909_v24  ;;  %v4037_v24 = vld [vmem:[%s5486_s6 + $0x8] sm:$0xff] }
 0x3f5   : > { %1980 = vrot.lane.b32.xlu0 %v1979_v25, %s5038_s28 }
 0x409   : > { %2071 = vrot.lane.b32.xlu1 %v1943_v62, %s5039_s1 }
 0x454   : > { %v2032_v26 = vpop.xlane.xlu0 %2031 }
 0x455   : > { %v2033_v39 = vsub.f32 %v2026_v15, %v2032_v26  ;;  %v4042_v15 = vld [vmem:[%s5486_s6 + $0x30] sm:$0xff] }
 0x456   : > { %2198 = vmatpush.bf16.msra.mxu1 %v4042_v15 }
 0x457   : > { %v2034_v41 = vmul.f32 1.442695, %v2033_v39  ;;  %v4067_v39 = vld [vmem:[%s5493_s11 + $0x74] sm:$0xf0] }
 0x45a   : > { %2199 = vmatpush.bf16.msra.mxu1 %v4041_v18 }
 0x45e   : > { %2200 = vmatpush.bf16.msra.mxu1 %v4040_v21 }
 0x463   : > { %v1911_v27 = vpop.xlane.xlu1 %1910 }
 0x464   : > { %4274 = vrcp.f32 %v1911_v27 }
 0x465   : > { %4276 = vpow2.f32 %v2034_v41 }
 0x467   : > { %v1981_v28 = vpop.permute.xlu0 %1980 }
 0x468   : > { %v1986_v29 = vsel %vm1918_vm7, %v1981_v28, 0 }
 0x469   : > { %1995 = vmatpush.bf16.msrb.mxu0 %v1986_v29 }
 0x46a   : > { %v4275_v30 = vpop.eup %4274 }
 0x46b   : > { %v1913_v31 = vmul.f32 %v4275_v30, %v4273_v22  ;;  %v4277_v44 = vpop.eup %4276  ;;  %v4039_v22 = vld [vmem:[%s5486_s6 + $0x18] sm:$0xff] }
 0x46c   : > { %v2036_v46 = vsel %vm1902_vm8, %v4277_v44, 0.0  ;;  %2201 = vmatpush.bf16.msra.mxu1 %v4039_v22  ;;  %v4261_v22 = vld [vmem:[%s5969_s10] ss:$0 sm:$0xff] }
 0x46d   : > { %v1914_v32 = vpack.c.bf16 %v1913_v31, %v1913_v31 }
 0x46f   : > { %3725 = vmatmul.msk.bf16.vlgmr.msrb.gmra.mxu3 %vm1902_vm8, %v1914_v32 }
 0x470   : > { %2202 = vmatpush.bf16.msra.mxu1 %v4038_v23 }
 0x474   : > { %2203 = vmatpush.bf16.msra.mxu1 %v4037_v24 }
 0x47b   : > { %v2072_v34 = vpop.permute.xlu1 %2071 }
 0x47c   : > { %v2077_v35 = vsel %vm1882_vm6, %v2072_v34, 0 }
 0x47d   : > { %2086 = vmatpush.bf16.xpose.msrb.mxu3 %v2077_v35 }
 0x47f   : > { %3726 = vmatmul.msk.bf16.vlgmr.msra.gmra.mxu3 %vm1882_vm6, %v1940_v8 }
 0x48f   : > { %3730 = vmatmul.msk.bf16.vlgmr.msrb.gmra.mxu3 %vm1882_vm6, %v2070_v37 }
 0x4f2   : > { %v1931_v38 = vpop.f32.mrf.mxu3 }
 0x4f3   : > { %1935 = vst.msk [vmem:[#allocation3] sm:$0xff] %vm1882_vm6, %v1931_v38  ;;  %v3854_v38 = vld [vmem:[%s5493_s11 + $0x70] sm:$0xf] }
 0x4f4   : > { %v3855_v41 = vor.u32 %v4067_v39, %v3854_v38 }
 0x4f6   : > { %2422 = vmatpush.bf16.msra.mxu3 %v3855_v41 }
 0x4fa   : > { %v1933_v40 = vpop.f32.mrf.mxu3 }
 0x4fb   : > { %v3846_v40 = vld [vmem:[%s5493_s11 + $0x60] sm:$0xf] }
 0x502   : > { %v1961_v42 = vpop.f32.mrf.mxu3 }
 0x503   : > { %v1965_v43 = vsel %vm1902_vm8, %v1961_v42, -inf }
 0x504   : > { %1966 = vmax.xlane.f32.xlu2 %v1965_v43 }
 0x50a   : > { %v1963_v45 = vpop.f32.mrf.mxu3 }
 0x50b   : > { %v4051_v45 = vld [vmem:[%s5491_s3 + $0x38] sm:$0xff] }
 0x50c   : > { %2037 = vadd.xlane.f32.xlu2 %v2036_v46 }
 0x512   : > { %v2088_v47 = vpop.f32.mrf.mxu3 }
 0x513   : > { %v2092_v48 = vsel %vm1902_vm8, %v2088_v47, -inf }
 0x514   : > { %2093 = vmax.xlane.f32.xlu1 %v2092_v48  ;;  %v4061_v48 = vld [vmem:[%s5493_s11 + $0x44] sm:$0xf0] }
 0x51a   : > { %v2090_v49 = vpop.f32.mrf.mxu3 }
 0x577   : > { %v1967_v50 = vpop.xlane.xlu2 %1966 }
 0x578   : > { %v1968_v51 = vsub.f32 %v1961_v42, %v1967_v50  ;;  %v4065_v42 = vld [vmem:[%s5493_s11 + $0x64] sm:$0xf0]  ;;  %v3822_v50 = vld [vmem:[%s5493_s11 + $0x30] sm:$0xf] }
 0x579   : > { %v3847_v43 = vor.u32 %v4065_v42, %v3846_v40 }
 0x57a   : > { %v1969_v52 = vmul.f32 1.442695, %v1968_v51  ;;  %v4059_v51 = vld [vmem:[%s5493_s11 + $0x34] sm:$0xf0] }
 0x57b   : > { %2423 = vmatpush.bf16.msra.mxu3 %v3847_v43 }
 0x57c   : > { %4278 = vpow2.f32 %v1969_v52  ;;  %v3823_v52 = vor.u32 %v4059_v51, %v3822_v50 }
 0x57f   : > { %v2038_v60 = vpop.xlane.xlu2 %2037 }
 0x582   : > { %v4279_v53 = vpop.eup %4278 }
 0x583   : > { %v1971_v54 = vsel %vm1902_vm8, %v4279_v53, 0.0 }
 0x584   : > { %1972 = vadd.xlane.f32.xlu2 %v1971_v54  ;;  %v4057_v54 = vld [vmem:[%s5493_s11 + $0x24] sm:$0xf0] }
 0x587   : > { %v2094_v55 = vpop.xlane.xlu1 %2093 }
 0x588   : > { %v2095_v56 = vsub.f32 %v2088_v47, %v2094_v55  ;;  %v3830_v47 = vld [vmem:[%s5493_s11 + $0x40] sm:$0xf] }
 0x589   : > { %v3831_v49 = vor.u32 %v4061_v48, %v3830_v47 }
 0x58a   : > { %v2096_v57 = vmul.f32 1.442695, %v2095_v56  ;;  %v3806_v56 = vld [vmem:[%s5493_s11 + $0x10] sm:$0xf] }
 0x58c   : > { %4280 = vpow2.f32 %v2096_v57  ;;  %v4055_v57 = vld [vmem:[%s5493_s11 + $0x14] sm:$0xf0] }
 0x58d   : > { %4282 = vrcp.f32 %v2038_v60 }
 0x592   : > { %v4281_v58 = vpop.eup %4280 }
 0x593   : > { %v2098_v59 = vsel %vm1902_vm8, %v4281_v58, 0.0  ;;  %v4283_v62 = vpop.eup %4282 }
 0x594   : > { %2099 = vadd.xlane.f32.xlu1 %v2098_v59  ;;  %v2040_v36 = vmul.f32 %v4283_v62, %v4277_v44  ;;  %v3838_v44 = vld [vmem:[%s5493_s11 + $0x50] sm:$0xf] }
 0x596   : > { %v2041_v4 = vpack.c.bf16 %v2040_v36, %v2040_v36  ;;  %v4053_v36 = vld [vmem:[%s5493_s11 + $0x4] sm:$0xf0] }
 0x59c   : > { %2042 = vrot.lane.b32.xlu2 %v1979_v25, %s5037_s18 }
 0x5ad   : > { %2104 = vrot.lane.b32.xlu1 %v1979_v25, %s5039_s1  ;;  %v4036_v25 = vld [vmem:[%s5486_s6] sm:$0xff]  ;;  %s5967_s6 = scalar_lea.vmem [#allocation12], %s5474_s4 }
 0x5ae   : > { %2204 = vmatpush.bf16.msra.mxu1 %v4036_v25  ;;  %v4259_v31 = vld [vmem:[%s5967_s6] ss:$0 sm:$0xff] }
 0x5f7   : > { %v1973_v61 = vpop.xlane.xlu2 %1972 }
 0x5f8   : > { %4284 = vrcp.f32 %v1973_v61 }
 0x5fe   : > { %v4285_v63 = vpop.eup %4284 }
 0x5ff   : > { %v1975_v0 = vmul.f32 %v4285_v63, %v4279_v53  ;;  %v2043_v1 = vpop.permute.xlu2 %2042  ;;  %v3814_v53 = vld [vmem:[%s5493_s11 + $0x20] sm:$0xf] }
 0x600   : > { %v2048_v2 = vsel %vm1918_vm7, %v2043_v1, 0  ;;  %v3815_v55 = vor.u32 %v4057_v54, %v3814_v53  ;;  %v3798_v63 = vld [vmem:[%s5493_s11] sm:$0xf]  ;;  %v3840_v53 = vld [vmem:[%s5493_s11 + $0x58] sm:$0xf0] }
 0x601   : > { %2057 = vmatpush.bf16.msrb.mxu2 %v2048_v2  ;;  %v1976_v3 = vpack.c.bf16 %v1975_v0, %v1975_v0  ;;  %v4050_v0 = vld [vmem:[%s5491_s3 + $0x30] sm:$0xff]  ;;  %v3799_v1 = vor.u32 %v4053_v36, %v3798_v63  ;;  %v3816_v63 = vld [vmem:[%s5493_s11 + $0x28] sm:$0xf0] }
 0x602   : > { %v5687_v2 = vld [vmem:[#allocation4] sm:$0xf] }
 0x603   : > { %3727 = vmatmul.msk.bf16.vlgmr.msrb.gmra.mxu0 %vm1902_vm8, %v1976_v3  ;;  %v4049_v3 = vld [vmem:[%s5491_s3 + $0x28] sm:$0xff] }
 0x604   : > { %3729 = vmatmul.msk.bf16.vlgmr.msrb.gmra.mxu2 %vm1902_vm8, %v2041_v4  ;;  %v4048_v4 = vld [vmem:[%s5491_s3 + $0x20] sm:$0xff] }
 0x605   : > { %2312 = vmatpush.bf16.msra.mxu2 %v4051_v45  ;;  %v3856_v45 = vld [vmem:[%s5493_s11 + $0x78] sm:$0xf0] }
 0x607   : > { %v2100_v5 = vpop.xlane.xlu1 %2099 }
 0x608   : > { %4286 = vrcp.f32 %v2100_v5  ;;  %v4047_v5 = vld [vmem:[%s5491_s3 + $0x18] sm:$0xff] }
 0x609   : > { %2313 = vmatpush.bf16.msra.mxu2 %v4050_v0 }
 0x60d   : > { %2314 = vmatpush.bf16.msra.mxu2 %v4049_v3  ;;  %v3808_v3 = vld [vmem:[%s5493_s11 + $0x18] sm:$0xf0] }
 0x60e   : > { %v4287_v6 = vpop.eup %4286 }
 0x60f   : > { %v2102_v7 = vmul.f32 %v4287_v6, %v4281_v58  ;;  %v3807_v58 = vor.u32 %v4055_v57, %v3806_v56  ;;  %v4046_v6 = vld [vmem:[%s5491_s3 + $0x10] sm:$0xff]  ;;  %v3832_v56 = vld [vmem:[%s5493_s11 + $0x48] sm:$0xf0] }
 0x611   : > { %v2103_v10 = vpack.c.bf16 %v2102_v7, %v2102_v7  ;;  %2315 = vmatpush.bf16.msra.mxu2 %v4048_v4  ;;  %v4045_v7 = vld [vmem:[%s5491_s3 + $0x8] sm:$0xff] }
 0x615   : > { %2316 = vmatpush.bf16.msra.mxu2 %v4047_v5 }
 0x619   : > { %2317 = vmatpush.bf16.msra.mxu2 %v4046_v6  ;;  %v4052_v6 = vld [vmem:[%s5493_s11 + $0x4] sm:$0xf] }
 0x61d   : > { %2318 = vmatpush.bf16.msra.mxu2 %v4045_v7  ;;  %v3800_v7 = vld [vmem:[%s5493_s11 + $0x8] sm:$0xf0] }
 0x61f   : > { %v2105_v8 = vpop.permute.xlu1 %2104 }
 0x620   : > { %v2110_v9 = vsel %vm1918_vm7, %v2105_v8, 0  ;;  %v4044_v8 = vld [vmem:[%s5491_s3] sm:$0xff]  ;;  %s5970_s3 = scalar_lea.vmem [#allocation18], %s5474_s4 }
 0x621   : > { %2119 = vmatpush.bf16.msra.mxu0 %v2110_v9  ;;  %2319 = vmatpush.bf16.msra.mxu2 %v4044_v8 }
 0x624   : > { %3731 = vmatmul.msk.bf16.vlgmr.msra.gmra.mxu0 %vm1902_vm8, %v2103_v10 }
 0x680   : > { %v1997_v11 = vpop.f32.mrf.mxu0 }
 0x681   : > { %2002 = vrot.lane.b32.xlu0 %v1997_v11, %s5039_s1 }
 0x687   : > { %v2059_v12 = vpop.f32.mrf.mxu2 }
 0x688   : > { %v1999_v13 = vpop.f32.mrf.mxu0 }
 0x689   : > { %2064 = vrot.lane.b32.xlu0 %v2059_v12, %s5037_s18 }
 0x68f   : > { %v2061_v16 = vpop.f32.mrf.mxu2 }
 0x6a1   : > { %v2121_v19 = vpop.f32.mrf.mxu0 }
 0x6a2   : > { %2126 = vrot.lane.b32.xlu2 %v2121_v19, %s5038_s28  ;;  %v4260_v19 = vld [vmem:[%s5968_s7] ss:$0 sm:$0xff] }
 0x6a9   : > { %v2123_v20 = vpop.f32.mrf.mxu0 }
 0x6f3   : > { %v2003_v26 = vpop.permute.xlu0 %2002 }
 0x6f4   : > { %2006 = vst.msk [vmem:[#allocation3] sm:$0xff] %vm2005_vm9, %v2003_v26 }
 0x6fb   : > { %v2065_v27 = vpop.permute.xlu0 %2064 }
 0x6fc   : > { %2068 = vst.msk [vmem:[#allocation3] sm:$0xff] %vm2067_vm10, %v2065_v27  ;;  %v2127_v28 = vpop.permute.xlu2 %2126 }
 0x6fd   : > { %2130 = vst.msk [vmem:[#allocation3] sm:$0xff] %vm2129_vm11, %v2127_v28 }
 0x704   : > { %v2131_v29 = vld [vmem:[#allocation3] sm:$0xff] }
 0x705   : > { %v2132_v30 = vpack.c.bf16 %v2131_v29, %v2131_v29 }
 0x707   : > { %2205 = vmatmul.bf16.vlgmr.msra.gmra.mxu1 %v2132_v30 }
 0x784   : > { %v2206_v32 = vpop.f32.mrf.mxu1 }
 0x785   : > { %v2210_v34 = vadd.f32 %v2206_v32, %v5545_v17  ;;  %v4063_v17 = vld [vmem:[%s5493_s11 + $0x54] sm:$0xf0] }
 0x786   : > { %v3839_v46 = vor.u32 %v4063_v17, %v3838_v44  ;;  %v4066_v17 = vld [vmem:[%s5493_s11 + $0x74] sm:$0xf] }
 0x787   : > { %v5664_v35 = vadd.f32 %v4259_v31, %v2210_v34  ;;  %v3859_v48 = vor.u32 %v4066_v17, %v3856_v45 }
 0x788   : > { %2424 = vmatpush.bf16.msra.mxu3 %v3839_v46  ;;  %v4064_v46 = vld [vmem:[%s5493_s11 + $0x64] sm:$0xf] }
 0x789   : > { %2216 = vadd.xlane.f32.xlu0 %v5664_v35  ;;  %2435 = vmatpush.bf16.msrb.mxu0 %v3859_v48 }
 0x78c   : > { %v2208_v37 = vpop.f32.mrf.mxu1  ;;  %2425 = vmatpush.bf16.msra.mxu3 %v3831_v49  ;;  %v3848_v49 = vld [vmem:[%s5493_s11 + $0x68] sm:$0xf0] }
 0x78d   : > { %v3851_v51 = vor.u32 %v4064_v46, %v3848_v49 }
 0x78f   : > { %2436 = vmatpush.bf16.msrb.mxu0 %v3851_v51 }
 0x790   : > { %2426 = vmatpush.bf16.msra.mxu3 %v3823_v52  ;;  %v4062_v52 = vld [vmem:[%s5493_s11 + $0x54] sm:$0xf] }
 0x791   : > { %v3843_v54 = vor.u32 %v4062_v52, %v3840_v53 }
 0x793   : > { %2437 = vmatpush.bf16.msrb.mxu0 %v3843_v54 }
 0x794   : > { %2427 = vmatpush.bf16.msra.mxu3 %v3815_v55  ;;  %v4060_v55 = vld [vmem:[%s5493_s11 + $0x44] sm:$0xf] }
 0x798   : > { %2428 = vmatpush.bf16.msra.mxu3 %v3807_v58  ;;  %v3835_v58 = vor.u32 %v4060_v55, %v3832_v56 }
 0x79a   : > { %2438 = vmatpush.bf16.msrb.mxu0 %v3835_v58 }
 0x79c   : > { %2429 = vmatpush.bf16.msra.mxu3 %v3799_v1  ;;  %v4054_v1 = vld [vmem:[%s5493_s11 + $0x14] sm:$0xf] }
 0x79d   : > { %v3811_v4 = vor.u32 %v4054_v1, %v3808_v3 }
 0x79f   : > { %2430 = vmatmul.bf16.vlgmr.msra.gmra.mxu3 %v5687_v2 }
 0x7fc   : > { %v2217_v59 = vpop.xlane.xlu0 %2216 }
 0x7fd   : > { %v2218_v60 = vmul.f32 %v2217_v59, %v5554_v33  ;;  %v4058_v59 = vld [vmem:[%s5493_s11 + $0x34] sm:$0xf] }
 0x7ff   : > { %v2219_v61 = vsub.f32 %v5664_v35, %v2218_v60  ;;  %v3824_v60 = vld [vmem:[%s5493_s11 + $0x38] sm:$0xf0] }
 0x801   : > { %v2220_v62 = vmul.f32 %v2219_v61, %v2219_v61 }
 0x803   : > { %2221 = vadd.xlane.f32.xlu1 %v2220_v62  ;;  %v4056_v62 = vld [vmem:[%s5493_s11 + $0x24] sm:$0xf]  ;;  %s5971_s11 = scalar_lea.vmem [#allocation19], %s5474_s4 }
 0x804   : > { %v3819_v0 = vor.u32 %v4056_v62, %v3816_v63 }
 0x822   : > { %v2431_v26 = vpop.f32.mrf.mxu3 }
 0x823   : > { %v2448_v27 = vpack.c.bf16 %v2431_v26, %v2431_v26 }
 0x825   : > { %v2454_v28 = vsel %vm1882_vm6, %v2448_v27, 0  ;;  %v2507_v29 = vunpack.c.l.b16 %v2448_v27 }
 0x826   : > { %2463 = vmatpush.bf16.xpose.msrb.mxu1 %v2454_v28 }
 0x827   : > { %v2508_v30 = vpack.c.b16 %v2507_v29, %v2507_v29 }
 0x829   : > { %2509 = vrot.lane.b32.xlu2 %v2508_v30, %s5038_s28 }
 0x82a   : > { %v2433_v31 = vpop.f32.mrf.mxu3 }
 0x831   : > { %2573 = vrot.lane.b32.xlu2 %v2508_v30, %s5037_s18 }
 0x876   : > { %v2222_v9 = vpop.xlane.xlu1 %2221 }
 0x877   : > { %v2223_v10 = vmul.f32 %v2222_v9, %v5554_v33  ;;  %v3803_v9 = vor.u32 %v4052_v6, %v3800_v7 }
 0x879   : > { %v2224_v11 = vadd.f32 1e-05, %v2223_v10 }
 0x87b   : > { %4288 = vrsqrt.f32 %v2224_v11  ;;  %vm2231_vm13 = vweird.f32 %v2224_v11 }
 0x881   : > { %v4289_v12 = vpop.eup %4288 }
 0x882   : > { %v2226_v13 = vmul.f32 %v4289_v12, %v2224_v11  ;;  %vm2232_vm12 = vweird.f32 %v4289_v12 }
 0x883   : > { %vm2233_vm14 = vmor %vm2231_vm13, %vm2232_vm12  ;;  %v2510_v40 = vpop.permute.xlu2 %2509 }
 0x884   : > { %v2227_v14 = vmul.f32 %v4289_v12, %v2226_v13  ;;  %v2515_v41 = vsel %vm1882_vm6, %v2510_v40, 0 }
 0x885   : > { %2524 = vmatpush.bf16.xpose.msrb.mxu3 %v2515_v41 }
 0x886   : > { %v2228_v15 = vmul.f32 0.5, %v2227_v14 }
 0x888   : > { %v2229_v16 = vsub.f32 1.5, %v2228_v15 }
 0x88a   : > { %v2230_v18 = vmul.f32 %v4289_v12, %v2229_v16 }
 0x88b   : > { %v2574_v42 = vpop.permute.xlu2 %2573 }
 0x88c   : > { %v2234_v20 = vsel %vm2233_vm14, %v4289_v12, %v2230_v18  ;;  %v2579_v43 = vsel %vm1882_vm6, %v2574_v42, 0 }
 0x88d   : > { %v2235_v21 = vmul.f32 %v2234_v20, %v2219_v61  ;;  %2588 = vmatpush.bf16.xpose.msra.mxu1 %v2579_v43  ;;  %v3827_v61 = vor.u32 %v4058_v59, %v3824_v60 }
 0x88f   : > { %v2240_v23 = vmul.f32 %v4260_v19, %v2235_v21  ;;  %2439 = vmatpush.bf16.msrb.mxu0 %v3827_v61 }
 0x891   : > { %v2245_v24 = vadd.f32 %v4261_v22, %v2240_v23 }
 0x893   : > { %v2246_v25 = vpack.c.bf16 %v2245_v24, %v2245_v24  ;;  %2440 = vmatpush.bf16.msrb.mxu0 %v3819_v0 }
 0x895   : > { %2320 = vmatmul.bf16.vlgmr.msra.gmra.mxu2 %v2246_v25 }
 0x897   : > { %2441 = vmatpush.bf16.msrb.mxu0 %v3811_v4 }
 0x89b   : > { %2442 = vmatpush.bf16.msrb.mxu0 %v3803_v9 }
 0x89e   : > { %2443 = vmatmul.bf16.vlgmr.msrb.gmra.mxu0 %v5687_v2 }
 0x918   : > { %v2321_v32 = vpop.f32.mrf.mxu2 }
 0x919   : > { %v2325_v34 = vpack.c.bf16 %v2321_v32, %v2321_v32 }
 0x91b   : > { %v2502_v37 = vunpack.c.l.b16 %v2325_v34  ;;  %3860 = vmatmul.msk.bf16.vlgmr.msrb.gmra.mxu1 %vm1882_vm6, %v2325_v34  ;;  %v2444_v25 = vpop.f32.mrf.mxu0 }
 0x91c   : > { %v2449_v26 = vpack.c.bf16 %v2444_v25, %v2444_v25 }
 0x91d   : > { %v2503_v38 = vpack.c.b16 %v2502_v37, %v2502_v37 }
 0x91e   : > { %v2485_v27 = vsel %vm1918_vm7, %v2449_v26, 0  ;;  %v2543_v28 = vunpack.c.l.b16 %v2449_v26 }
 0x91f   : > { %2632 = vrot.lane.b32.xlu0 %v2503_v38, %s5039_s1  ;;  %2504 = vrot.lane.b32.xlu2 %v2503_v38, %s5038_s28 }
 0x920   : > { %v2323_v39 = vpop.f32.mrf.mxu2  ;;  %2494 = vmatpush.bf16.msrb.mxu2 %v2485_v27  ;;  %v4262_v27 = vld [vmem:[%s5970_s3] ss:$0 sm:$0xff] }
 0x923   : > { %v2446_v29 = vpop.f32.mrf.mxu0 }
 0x927   : > { %2634 = vrot.lane.b32.xlu2 %v2508_v30, %s5039_s1  ;;  %v2544_v30 = vpack.c.b16 %v2543_v28, %v2543_v28 }
 0x92f   : > { %2571 = vrot.lane.b32.xlu2 %v2503_v38, %s5037_s18 }
 0x979   : > { %v2505_v44 = vpop.permute.xlu2 %2504 }
 0x97a   : > { %3862 = vmatmul.msk.bf16.vlgmr.msrb.gmra.mxu3 %vm1882_vm6, %v2505_v44 }
 0x981   : > { %v2635_v47 = vpop.permute.xlu2 %2634 }
 0x982   : > { %v2640_v50 = vsel %vm1882_vm6, %v2635_v47, 0 }
 0x983   : > { %2649 = vmatpush.bf16.xpose.msra.mxu3 %v2640_v50 }
 0x989   : > { %v2572_v57 = vpop.permute.xlu2 %2571 }
 0x98a   : > { %3864 = vmatmul.msk.bf16.vlgmr.msra.gmra.mxu1 %vm1882_vm6, %v2572_v57 }
 0x991   : > { %v2633_v36 = vpop.permute.xlu0 %2632 }
 0x992   : > { %3866 = vmatmul.msk.bf16.vlgmr.msra.gmra.mxu3 %vm1882_vm6, %v2633_v36 }
 0x998   : > { %v2465_v5 = vpop.f32.mrf.mxu1 }
 0x999   : > { %v2469_v8 = vsel %vm1902_vm8, %v2465_v5, -inf }
 0x99a   : > { %2470 = vmax.xlane.f32.xlu1 %v2469_v8 }
 0x9a0   : > { %v2467_v10 = vpop.f32.mrf.mxu1 }
 0x9fd   : > { %v2526_v11 = vpop.f32.mrf.mxu3 }
 0x9fe   : > { %v2530_v12 = vsel %vm1902_vm8, %v2526_v11, -inf }
 0x9ff   : > { %2531 = vmax.xlane.f32.xlu2 %v2530_v12 }
 0xa05   : > { %v2528_v13 = vpop.f32.mrf.mxu3 }
 0xa07   : > { %v2590_v14 = vpop.f32.mrf.mxu1 }
 0xa08   : > { %v2594_v15 = vsel %vm1902_vm8, %v2590_v14, -inf }
 0xa09   : > { %2595 = vmax.xlane.f32.xlu1 %v2594_v15  ;;  %v4074_v15 = vld [vmem:[%s5495_s9 + $0x30] sm:$0xff] }
 0xa0d   : > { %v2471_v16 = vpop.xlane.xlu1 %2470 }
 0xa0e   : > { %v2472_v18 = vsub.f32 %v2465_v5, %v2471_v16  ;;  %v4073_v16 = vld [vmem:[%s5495_s9 + $0x28] sm:$0xff] }
 0xa0f   : > { %v2592_v19 = vpop.f32.mrf.mxu1 }
 0xa10   : > { %v2473_v20 = vmul.f32 1.442695, %v2472_v18  ;;  %v4072_v18 = vld [vmem:[%s5495_s9 + $0x20] sm:$0xff] }
 0xa12   : > { %4290 = vpow2.f32 %v2473_v20  ;;  %v4071_v20 = vld [vmem:[%s5495_s9 + $0x18] sm:$0xff] }
 0xa15   : > { %v2651_v21 = vpop.f32.mrf.mxu3 }
 0xa16   : > { %v2655_v22 = vsel %vm1902_vm8, %v2651_v21, -inf }
 0xa17   : > { %2656 = vmax.xlane.f32.xlu1 %v2655_v22  ;;  %v4069_v22 = vld [vmem:[%s5495_s9 + $0x8] sm:$0xff] }
 0xa18   : > { %v4291_v23 = vpop.eup %4290 }
 0xa19   : > { %v2475_v2 = vsel %vm1902_vm8, %v4291_v23, 0.0 }
 0xa1a   : > { %2476 = vadd.xlane.f32.xlu0 %v2475_v2 }
 0xa1d   : > { %v2653_v24 = vpop.f32.mrf.mxu3 }
 0xa2e   : > { %2667 = vrot.lane.b32.xlu0 %v2544_v30, %s5039_s1 }
 0xa30   : > { %2545 = vrot.lane.b32.xlu1 %v2544_v30, %s5038_s28 }
 0xa72   : > { %v2532_v31 = vpop.xlane.xlu2 %2531 }
 0xa73   : > { %v2533_v32 = vsub.f32 %v2526_v11, %v2532_v31 }
 0xa75   : > { %v2534_v34 = vmul.f32 1.442695, %v2533_v32  ;;  %v4083_v32 = vld [vmem:[%s5500_s2 + $0x38] sm:$0xff] }
 0xa77   : > { %4292 = vpow2.f32 %v2534_v34  ;;  %v4091_v34 = vld [vmem:[%s5503_s22 + $0x38] sm:$0xff] }
 0xa78   : > { %2958 = vmatpush.bf16.msrb.mxu3 %v4091_v34 }
 0xa7c   : > { %v2596_v37 = vpop.xlane.xlu1 %2595 }
 0xa7d   : > { %v4293_v38 = vpop.eup %4292  ;;  %v2597_v39 = vsub.f32 %v2590_v14, %v2596_v37  ;;  %v4075_v14 = vld [vmem:[%s5495_s9 + $0x38] sm:$0xff] }
 0xa7e   : > { %v2536_v40 = vsel %vm1902_vm8, %v4293_v38, 0.0  ;;  %2759 = vmatpush.bf16.msrb.mxu1 %v4075_v14 }
 0xa7f   : > { %v2598_v41 = vmul.f32 1.442695, %v2597_v39  ;;  %2537 = vadd.xlane.f32.xlu1 %v2536_v40  ;;  %v4082_v40 = vld [vmem:[%s5500_s2 + $0x30] sm:$0xff] }
 0xa81   : > { %4294 = vpow2.f32 %v2598_v41  ;;  %v4090_v41 = vld [vmem:[%s5503_s22 + $0x30] sm:$0xff] }
 0xa82   : > { %2760 = vmatpush.bf16.msrb.mxu1 %v4074_v15  ;;  %2959 = vmatpush.bf16.msrb.mxu3 %v4090_v41  ;;  %v4092_v15 = vld [vmem:[%s5506_s21] sm:$0xff] }
 0xa86   : > { %2761 = vmatpush.bf16.msrb.mxu1 %v4073_v16 }
 0xa87   : > { %v4295_v42 = vpop.eup %4294 }
 0xa88   : > { %v2600_v43 = vsel %vm1902_vm8, %v4295_v42, 0.0 }
 0xa89   : > { %2601 = vadd.xlane.f32.xlu2 %v2600_v43  ;;  %v4089_v43 = vld [vmem:[%s5503_s22 + $0x28] sm:$0xff] }
 0xa8a   : > { %v2657_v44 = vpop.xlane.xlu1 %2656  ;;  %2762 = vmatpush.bf16.msrb.mxu1 %v4072_v18  ;;  %2960 = vmatpush.bf16.msrb.mxu3 %v4089_v43 }
 0xa8b   : > { %v2658_v17 = vsub.f32 %v2651_v21, %v2657_v44  ;;  %v4070_v21 = vld [vmem:[%s5495_s9 + $0x10] sm:$0xff]  ;;  %v4080_v44 = vld [vmem:[%s5500_s2 + $0x20] sm:$0xff] }
 0xa8d   : > { %v2659_v45 = vmul.f32 1.442695, %v2658_v17  ;;  %v2477_v46 = vpop.xlane.xlu0 %2476  ;;  %v4088_v17 = vld [vmem:[%s5503_s22 + $0x20] sm:$0xff] }
 0xa8e   : > { %4296 = vrcp.f32 %v2477_v46  ;;  %2763 = vmatpush.bf16.msrb.mxu1 %v4071_v20  ;;  %2961 = vmatpush.bf16.msrb.mxu3 %v4088_v17  ;;  %v4087_v46 = vld [vmem:[%s5503_s22 + $0x18] sm:$0xff] }
 0xa8f   : > { %4298 = vpow2.f32 %v2659_v45  ;;  %v4079_v45 = vld [vmem:[%s5500_s2 + $0x18] sm:$0xff] }
 0xa92   : > { %2764 = vmatpush.bf16.msrb.mxu1 %v4070_v21  ;;  %2962 = vmatpush.bf16.msrb.mxu3 %v4087_v46 }
 0xa94   : > { %v4297_v47 = vpop.eup %4296 }
 0xa95   : > { %v4299_v48 = vpop.eup %4298  ;;  %v2479_v49 = vmul.f32 %v4297_v47, %v4291_v23  ;;  %v4068_v23 = vld [vmem:[%s5495_s9] sm:$0xff]  ;;  %v4078_v47 = vld [vmem:[%s5500_s2 + $0x10] sm:$0xff]  ;;  %s5972_s9 = scalar_lea.vmem [#allocation20], %s5474_s4 }
 0xa96   : > { %v2661_v50 = vsel %vm1902_vm8, %v4299_v48, 0.0  ;;  %2765 = vmatpush.bf16.msrb.mxu1 %v4069_v22 }
 0xa97   : > { %v2480_v51 = vpack.c.bf16 %v2479_v49, %v2479_v49  ;;  %2662 = vadd.xlane.f32.xlu2 %v2661_v50  ;;  %v4077_v49 = vld [vmem:[%s5500_s2 + $0x8] sm:$0xff] }
 0xa98   : > { %2606 = vrot.lane.b32.xlu1 %v2544_v30, %s5037_s18  ;;  %v4085_v50 = vld [vmem:[%s5503_s22 + $0x8] sm:$0xff] }
 0xa99   : > { %3861 = vmatmul.msk.bf16.vlgmr.msrb.gmra.mxu2 %vm1902_vm8, %v2480_v51  ;;  %v4076_v51 = vld [vmem:[%s5500_s2] sm:$0xff] }
 0xa9a   : > { %2766 = vmatpush.bf16.msrb.mxu1 %v4068_v23 }
 0xaa0   : > { %v2668_v52 = vpop.permute.xlu0 %2667 }
 0xaa1   : > { %v2673_v54 = vsel %vm1918_vm7, %v2668_v52, 0  ;;  %v4084_v52 = vld [vmem:[%s5503_s22] sm:$0xff] }
 0xaa2   : > { %v2546_v53 = vpop.permute.xlu1 %2545 }
 0xaa3   : > { %v2551_v55 = vsel %vm1918_vm7, %v2546_v53, 0 }
 0xaa4   : > { %2560 = vmatpush.bf16.msra.mxu0 %v2551_v55 }
 0xaa8   : > { %2682 = vmatpush.bf16.msrb.mxu0 %v2673_v54 }
 0xaf2   : > { %v2538_v56 = vpop.xlane.xlu1 %2537 }
 0xaf3   : > { %4300 = vrcp.f32 %v2538_v56 }
 0xaf9   : > { %v4301_v57 = vpop.eup %4300 }
 0xafa   : > { %v2540_v58 = vmul.f32 %v4301_v57, %v4293_v38 }
 0xafc   : > { %v2541_v59 = vpack.c.bf16 %v2540_v58, %v2540_v58  ;;  %v2602_v60 = vpop.xlane.xlu2 %2601 }
 0xafd   : > { %4302 = vrcp.f32 %v2602_v60 }
 0xafe   : > { %3863 = vmatmul.msk.bf16.vlgmr.msra.gmra.mxu0 %vm1902_vm8, %v2541_v59 }
 0xb03   : > { %v4303_v61 = vpop.eup %4302 }
 0xb04   : > { %v2604_v62 = vmul.f32 %v4303_v61, %v4295_v42  ;;  %v4081_v42 = vld [vmem:[%s5500_s2 + $0x28] sm:$0xff]  ;;  %s5975_s2 = scalar_lea.vmem [#allocation26], %s5474_s4 }
 0xb06   : > { %v2605_v1 = vpack.c.bf16 %v2604_v62, %v2604_v62  ;;  %v4263_v62 = vld [vmem:[%s5971_s11] ss:$0 sm:$0xff] }
 0xb0a   : > { %v2663_v63 = vpop.xlane.xlu2 %2662  ;;  %v2607_v36 = vpop.permute.xlu1 %2606 }
 0xb0b   : > { %4304 = vrcp.f32 %v2663_v63  ;;  %v2612_v0 = vsel %vm1918_vm7, %v2607_v36, 0 }
 0xb0c   : > { %2621 = vmatpush.bf16.msra.mxu2 %v2612_v0  ;;  %v4264_v0 = vld [vmem:[%s5972_s9] ss:$0 sm:$0xff] }
 0xb0f   : > { %3865 = vmatmul.msk.bf16.vlgmr.msra.gmra.mxu2 %vm1902_vm8, %v2605_v1 }
 0xb10   : > { %2877 = vmatpush.bf16.msrb.mxu2 %v4083_v32 }
 0xb11   : > { %v4305_v3 = vpop.eup %4304 }
 0xb12   : > { %v2665_v4 = vmul.f32 %v4305_v3, %v4299_v48  ;;  %v4086_v48 = vld [vmem:[%s5503_s22 + $0x10] sm:$0xff] }
 0xb13   : > { %2963 = vmatpush.bf16.msrb.mxu3 %v4086_v48 }
 0xb14   : > { %v2666_v5 = vpack.c.bf16 %v2665_v4, %v2665_v4  ;;  %2878 = vmatpush.bf16.msrb.mxu2 %v4082_v40  ;;  %v4267_v40 = vld [vmem:[%s5975_s2] ss:$0 sm:$0xff] }
 0xb16   : > { %3867 = vmatmul.msk.bf16.vlgmr.msrb.gmra.mxu0 %vm1902_vm8, %v2666_v5  ;;  %v4099_v5 = vld [vmem:[%s5506_s21 + $0x38] sm:$0xff] }
 0xb17   : > { %2964 = vmatpush.bf16.msrb.mxu3 %v4085_v50  ;;  %3057 = vmatpush.bf16.msra.mxu0 %v4099_v5 }
 0xb18   : > { %2879 = vmatpush.bf16.msrb.mxu2 %v4081_v42 }
 0xb1b   : > { %2965 = vmatpush.bf16.msrb.mxu3 %v4084_v52 }
 0xb1c   : > { %v2496_v6 = vpop.f32.mrf.mxu2  ;;  %2880 = vmatpush.bf16.msrb.mxu2 %v4080_v44 }
 0xb1d   : > { %2500 = vst.msk [vmem:[#allocation3] sm:$0xff] %vm1882_vm6, %v2496_v6  ;;  %v4098_v6 = vld [vmem:[%s5506_s21 + $0x30] sm:$0xff] }
 0xb1e   : > { %3058 = vmatpush.bf16.msra.mxu0 %v4098_v6 }
 0xb20   : > { %2881 = vmatpush.bf16.msrb.mxu2 %v4079_v45 }
 0xb24   : > { %v2498_v7 = vpop.f32.mrf.mxu2  ;;  %2882 = vmatpush.bf16.msrb.mxu2 %v4078_v47 }
 0xb25   : > { %v4097_v7 = vld [vmem:[%s5506_s21 + $0x28] sm:$0xff] }
 0xb26   : > { %3059 = vmatpush.bf16.msra.mxu0 %v4097_v7 }
 0xb28   : > { %2883 = vmatpush.bf16.msrb.mxu2 %v4077_v49 }
 0xb2c   : > { %2884 = vmatpush.bf16.msrb.mxu2 %v4076_v51 }
 0xb7b   : > { %v2562_v8 = vpop.f32.mrf.mxu0 }
 0xb7c   : > { %2567 = vrot.lane.b32.xlu2 %v2562_v8, %s5039_s1  ;;  %v4096_v8 = vld [vmem:[%s5506_s21 + $0x20] sm:$0xff] }
 0xb7d   : > { %3060 = vmatpush.bf16.msra.mxu0 %v4096_v8 }
 0xb83   : > { %v2564_v9 = vpop.f32.mrf.mxu0 }
 0xb84   : > { %v4095_v9 = vld [vmem:[%s5506_s21 + $0x18] sm:$0xff] }
 0xb85   : > { %3061 = vmatpush.bf16.msra.mxu0 %v4095_v9 }
 0xb92   : > { %v2623_v10 = vpop.f32.mrf.mxu2 }
 0xb93   : > { %2628 = vrot.lane.b32.xlu1 %v2623_v10, %s5037_s18  ;;  %v2684_v11 = vpop.f32.mrf.mxu0  ;;  %v4094_v10 = vld [vmem:[%s5506_s21 + $0x10] sm:$0xff] }
 0xb94   : > { %3062 = vmatpush.bf16.msra.mxu0 %v4094_v10 }
 0xb9a   : > { %v2625_v12 = vpop.f32.mrf.mxu2 }
 0xb9b   : > { %2689 = vrot.lane.b32.xlu1 %v2684_v11, %s5038_s28  ;;  %v2686_v13 = vpop.f32.mrf.mxu0  ;;  %v4093_v11 = vld [vmem:[%s5506_s21 + $0x8] sm:$0xff]  ;;  %v4265_v12 = vld [vmem:[%s5973_s23] ss:$0 sm:$0xff] }
 0xb9c   : > { %3063 = vmatpush.bf16.msra.mxu0 %v4093_v11 }
 0xba0   : > { %3064 = vmatpush.bf16.msra.mxu0 %v4092_v15 }
 0xbd6   : > { %v2568_v19 = vpop.permute.xlu2 %2567 }
 0xbd7   : > { %2570 = vst.msk [vmem:[#allocation3] sm:$0xff] %vm2005_vm9, %v2568_v19 }
 0xc05   : > { %v2629_v2 = vpop.permute.xlu1 %2628 }
 0xc06   : > { %2631 = vst.msk [vmem:[#allocation3] sm:$0xff] %vm2067_vm10, %v2629_v2 }
 0xc0d   : > { %v2690_v24 = vpop.permute.xlu1 %2689 }
 0xc0e   : > { %2692 = vst.msk [vmem:[#allocation3] sm:$0xff] %vm2129_vm11, %v2690_v24 }
 0xc15   : > { %v2693_v25 = vld [vmem:[#allocation3] sm:$0xff] }
 0xc16   : > { %v2694_v26 = vpack.c.bf16 %v2693_v25, %v2693_v25 }
 0xc18   : > { %2767 = vmatmul.bf16.vlgmr.msrb.gmra.mxu1 %v2694_v26 }
 0xc95   : > { %v2768_v28 = vpop.f32.mrf.mxu1 }
 0xc96   : > { %v2772_v29 = vadd.f32 %v2768_v28, %v5664_v35 }
 0xc98   : > { %v5769_v30 = vadd.f32 %v4262_v27, %v2772_v29  ;;  %v4266_v29 = vld [vmem:[%s5974_s20] ss:$0 sm:$0xff] }
 0xc9a   : > { %2778 = vadd.xlane.f32.xlu0 %v5769_v30 }
 0xc9d   : > { %v2770_v31 = vpop.f32.mrf.mxu1 }
 0xd0d   : > { %v2779_v37 = vpop.xlane.xlu0 %2778 }
 0xd0e   : > { %v2780_v38 = vmul.f32 %v2779_v37, %v5554_v33 }
 0xd10   : > { %v2781_v39 = vsub.f32 %v5769_v30, %v2780_v38 }
 0xd12   : > { %v2782_v35 = vmul.f32 %v2781_v39, %v2781_v39 }
 0xd14   : > { %2783 = vadd.xlane.f32.xlu1 %v2782_v35 }
 0xd87   : > { %v2784_v53 = vpop.xlane.xlu1 %2783 }
 0xd88   : > { %v2785_v54 = vmul.f32 %v2784_v53, %v5554_v33 }
 0xd8a   : > { %v2786_v55 = vadd.f32 1e-05, %v2785_v54 }
 0xd8c   : > { %4306 = vrsqrt.f32 %v2786_v55  ;;  %vm2793_vm0 = vweird.f32 %v2786_v55 }
 0xd92   : > { %v4307_v56 = vpop.eup %4306 }
 0xd93   : > { %v2788_v57 = vmul.f32 %v4307_v56, %v2786_v55  ;;  %vm2794_vm15 = vweird.f32 %v4307_v56 }
 0xd94   : > { %vm2795_vm1 = vmor %vm2793_vm0, %vm2794_vm15 }
 0xd95   : > { %v2789_v58 = vmul.f32 %v4307_v56, %v2788_v57 }
 0xd97   : > { %v2790_v59 = vmul.f32 0.5, %v2789_v58 }
 0xd99   : > { %v2791_v60 = vsub.f32 1.5, %v2790_v59 }
 0xd9b   : > { %v2792_v61 = vmul.f32 %v4307_v56, %v2791_v60 }
 0xd9d   : > { %v2796_v63 = vsel %vm2795_vm1, %v4307_v56, %v2792_v61 }
 0xd9e   : > { %v2797_v36 = vmul.f32 %v2796_v63, %v2781_v39 }
 0xda0   : > { %v2802_v1 = vmul.f32 %v4263_v62, %v2797_v36 }
 0xda2   : > { %v2807_v3 = vadd.f32 %v4264_v0, %v2802_v1 }
 0xda4   : > { %v2808_v4 = vpack.c.bf16 %v2807_v3, %v2807_v3 }
 0xda6   : > { %2885 = vmatmul.bf16.vlgmr.msrb.gmra.mxu2 %v2808_v4  ;;  %2966 = vmatmul.bf16.vlgmr.msrb.gmra.mxu3 %v2808_v4 }
 0xe29   : > { %v2886_v13 = vpop.f32.mrf.mxu2  ;;  %v2967_v14 = vpop.f32.mrf.mxu3 }
 0xe2a   : > { %v2887_v16 = vadd.f32 %v4265_v12, %v2886_v13  ;;  %v2968_v38 = vadd.f32 %v4266_v29, %v2967_v14 }
 0xe2c   : > { %v3964_v18 = vmul.f32 -1.442695, %v2887_v16 }
 0xe2e   : > { %4308 = vpow2.f32 %v3964_v18 }
 0xe31   : > { %v2888_v19 = vpop.f32.mrf.mxu2  ;;  %v2969_v20 = vpop.f32.mrf.mxu3 }
 0xe34   : > { %v4309_v21 = vpop.eup %4308 }
 0xe35   : > { %v2974_v22 = vadd.f32 1.0, %v4309_v21 }
 0xe37   : > { %4310 = vrcp.f32 %v2974_v22  ;;  %v2986_v25 = vand.u32 2147483648, %v2974_v22  ;;  %v2984_v27 = vand.u32 2147483647, %v2974_v22  ;;  %vm2980_vm3 = vweird.f32 %v2974_v22 }
 0xe39   : > { %v2987_v31 = vor.u32 1.1754944e-38, %v2986_v25  ;;  %vm2985_vm5 = vcmp.eq.f32.partialorder %v2984_v27, 8.507059e+37 }
 0xe3d   : > { %v4311_v23 = vpop.eup %4310 }
 0xe3e   : > { %v2976_v2 = vmul.f32 %v4311_v23, %v2974_v22  ;;  %vm2981_vm2 = vweird.f32 %v4311_v23 }
 0xe3f   : > { %vm2982_vm4 = vmor %vm2980_vm3, %vm2981_vm2 }
 0xe40   : > { %v2977_v24 = vsub.f32 1.0, %v2976_v2 }
 0xe42   : > { %v2978_v26 = vmul.f32 %v4311_v23, %v2977_v24 }
 0xe44   : > { %v2979_v28 = vadd.f32 %v4311_v23, %v2978_v26 }
 0xe46   : > { %v2983_v32 = vsel %vm2982_vm4, %v4311_v23, %v2979_v28 }
 0xe47   : > { %v2988_v34 = vsel %vm2985_vm5, %v2987_v31, %v2983_v32 }
 0xe48   : > { %v2990_v37 = vmul.f32 %v2988_v34, %v2887_v16 }
 0xe4a   : > { %v2991_v39 = vmul.f32 %v2990_v37, %v2968_v38 }
 0xe4c   : > { %v2992_v35 = vpack.c.bf16 %v2991_v39, %v2991_v39 }
 0xe4e   : > { %3065 = vmatmul.bf16.vlgmr.msra.gmra.mxu0 %v2992_v35 }
 0xecb   : > { %v3066_v41 = vpop.f32.mrf.mxu0 }
 0xecc   : > { %v3070_v42 = vadd.f32 %v3066_v41, %v5769_v30 }
 0xece   : > { %v3075_v43 = vadd.f32 %v4267_v40, %v3070_v42 }
 0xecf   : > { %3080 = sbr.rel (%p3997_p4) target bundleno = 4065 (0xfe1), region = 224 }
 0xed0   : > { %3076 = vst [vmem:[#allocation2] sm:$0xff] %v3075_v43 }
 0xed3   : > { %v3068_v44 = vpop.f32.mrf.mxu0 }
 0xed4   : > { %3081 = vadd.xlane.f32.xlu0 %v3075_v43  ;;  %v4312_v56 = vld [vmem:[#allocation27] ss:$0 sm:$0xff]  ;;  %v4313_v59 = vld [vmem:[#allocation28] ss:$0 sm:$0xff] }
 0xf47   : > { %v3082_v17 = vpop.xlane.xlu0 %3081 }
 0xf48   : > { %v3083_v45 = vmul.f32 %v3082_v17, %v5554_v33 }
 0xf4a   : > { %v3084_v46 = vsub.f32 %v3075_v43, %v3083_v45 }
 0xf4c   : > { %v3085_v47 = vmul.f32 %v3084_v46, %v3084_v46 }
 0xf4e   : > { %3086 = vadd.xlane.f32.xlu0 %v3085_v47 }
 0xfc1   : > { %v3087_v48 = vpop.xlane.xlu0 %3086 }
 0xfc2   : > { %v3088_v49 = vmul.f32 %v3087_v48, %v5554_v33 }
 0xfc4   : > { %v3089_v50 = vadd.f32 1e-05, %v3088_v49 }
 0xfc6   : > { %4314 = vrsqrt.f32 %v3089_v50  ;;  %vm3096_vm7 = vweird.f32 %v3089_v50 }
 0xfcc   : > { %v4315_v51 = vpop.eup %4314 }
 0xfcd   : > { %v3091_v30 = vmul.f32 %v4315_v51, %v3089_v50  ;;  %vm3097_vm6 = vweird.f32 %v4315_v51 }
 0xfce   : > { %vm3098_vm8 = vmor %vm3096_vm7, %vm3097_vm6 }
 0xfcf   : > { %v3092_v52 = vmul.f32 %v4315_v51, %v3091_v30 }
 0xfd1   : > { %v3093_v53 = vmul.f32 0.5, %v3092_v52 }
 0xfd3   : > { %v3094_v54 = vsub.f32 1.5, %v3093_v53 }
 0xfd5   : > { %v3095_v55 = vmul.f32 %v4315_v51, %v3094_v54 }
 0xfd7   : > { %v3099_v57 = vsel %vm3098_vm8, %v4315_v51, %v3095_v55 }
 0xfd8   : > { %v3100_v58 = vmul.f32 %v3099_v57, %v3084_v46 }
 0xfda   : > { %v3105_v60 = vmul.f32 %v4312_v56, %v3100_v58 }
 0xfdc   : > { %v3110_v61 = vadd.f32 %v4313_v59, %v3105_v60 }
 0xfde   : > { %v3111_v62 = vpack.c.bf16 %v3110_v61, %v3110_v61 }
 0xfe0   : > { %3112 = vst [vmem:[%s5536_s8] sm:$0xf] %v3111_v62 }
 0xfe1 PF: > { %s40_s0 = sadd.s32 1, %s5022_s0   ;;  %s5977_s7 = sld [smem:[#allocation35_spill]] }
 0xfe2   : > { %p37_p5 = scmp.ge.s32.totalorder %s40_s0, 6   ;;  %s5978_s4 = sld [smem:[#allocation36_spill]] }
 0xfe3   : > { %s5979_s8 = sld [smem:[#allocation43_spill]] }
 0xfe4   : > { %s5980_s30 = sld [smem:[#allocation39_spill]]  ;;  %39 = sbr.rel (!%p37_p5) target bundleno = 35 (0x23), region = 387 }
 0xfe5   : > { %s5981_s9 = sld [smem:[#allocation40_spill]] }
 0xfe6   : > { %s5982_s5 = sld [smem:[#allocation41_spill]] }
 0xfe7   : > { %s5983_s28 = sld [smem:[#allocation42_spill]] }
 0xfe9   :  { %3132 = vsyncpa [#allocation6], 1 }
 0xfea   :  { %3134 = vsyncpa [#allocation6 + $0x1], 1 }
 0xfeb   :  { %3135 = vsyncpa [#allocation8], 1 }
 0xfec   :  { %3136 = vsyncpa [#allocation29], 1 }

</bundles_post_ra>
